<compile_context>
chip_gen: v5e
topology: v5e:2x2
jax: 0.10.0
libtpu: 0.0.40
codegen_flags: <defaults>
</compile_context>

<pallas_src>
import math
import functools

import jax
import jax.numpy as jnp
from jax import lax
from jax.experimental import pallas as pl
from jax.experimental.pallas import tpu as pltpu

_MIB = 1024 * 1024


def _layernorm_cm(x, gamma, beta, eps=1e-5):
    """LayerNorm over the channel axis (axis 0) of a channel-major (C, L) tensor."""
    mean = jnp.mean(x, axis=0, keepdims=True)
    var = jnp.mean((x - mean) ** 2, axis=0, keepdims=True)
    return (x - mean) * lax.rsqrt(var + eps) * gamma + beta


def _erf(x):
    # Abramowitz & Stegun 7.1.26 (max abs err ~1.5e-7): uses only exp/mul/add/where.
    p = 0.3275911
    a1, a2, a3, a4, a5 = 0.254829592, -0.284496736, 1.421413741, -1.453152027, 1.061405429
    ax = jnp.abs(x)
    t = 1.0 / (1.0 + p * ax)
    poly = t * (a1 + t * (a2 + t * (a3 + t * (a4 + t * a5))))
    y = 1.0 - poly * jnp.exp(-(ax * ax))
    return jnp.where(x >= 0, y, -y)


def _gelu_exact(x):
    # PyTorch default nn.GELU() (erf form).
    return 0.5 * x * (1.0 + _erf(x * (1.0 / math.sqrt(2.0))))


def image_self_attention_kernel(
    x_ref,                      # (1, C, L)  f32, channel-major full image
    ln1_g_ref, ln1_b_ref,       # (C, 1) f32
    wq_ref, bq_ref,             # (C, C) bf16 (1/sqrt(hd) pre-folded), (C, 1) f32
    wkv_ref, bkv_ref,           # (2C, C) bf16, (2C, 1) f32
    wout_ref, bout_ref,         # (C, C) bf16, (C, 1) f32
    ln2_g_ref, ln2_b_ref,       # (C, 1) f32
    w1_ref, b1_ref,             # (C, C) bf16, (C, 1) f32
    w2_ref, b2_ref,             # (C, C) bf16, (C, 1) f32
    o_ref,                      # (1, C, TILE_L) f32
    *, n_heads: int, tile_l: int,
):
    bf16 = jnp.bfloat16
    C = x_ref.shape[1]
    L = x_ref.shape[2]
    hd = C // n_heads

    # ---- query tile (channel-major, pixels on lanes): no layout transposes ----
    start = pl.program_id(1) * tile_l
    if tile_l % 128 == 0:
        start = pl.multiple_of(start, 128)
    x_q = x_ref[0, :, pl.ds(start, tile_l)]                    # (C, TL) f32
    x_full = x_ref[0]                                          # (C, L)  f32

    # ---- LayerNorm #1 (f32, per-pixel over channels) ----
    ln1_g, ln1_b = ln1_g_ref[...], ln1_b_ref[...]
    xq_ln = _layernorm_cm(x_q, ln1_g, ln1_b)                   # (C, TL)  (query tile)
    xkv_ln = _layernorm_cm(x_full, ln1_g, ln1_b)               # (C, L)   (keys/values)

    # ---- projections: single dense matmuls contracting K=C, bf16 operands, f32 acc ----
    q = jnp.dot(wq_ref[...], xq_ln.astype(bf16),
                preferred_element_type=jnp.float32) + bq_ref[...]      # (C, TL), pre-scaled
    kv = jnp.dot(wkv_ref[...], xkv_ln.astype(bf16),
                 preferred_element_type=jnp.float32) + bkv_ref[...]    # (2C, L)
    k = kv[:C]                                                         # (C, L)
    v = kv[C:]                                                         # (C, L)

    # ---- per-head scaled dot-product attention (2-D matmuls only) ----
    # TODO(synk): flash-style KV tiling here for large L (online max/sum accumulators).
    head_outs = []
    for h in range(n_heads):
        sl = slice(h * hd, (h + 1) * hd)
        q_h = q[sl, :].astype(bf16)                            # (hd, TL)
        k_h = k[sl, :].astype(bf16)                            # (hd, L)
        v_h = v[sl, :].astype(bf16)                            # (hd, L)

        s = lax.dot_general(q_h, k_h, (((0,), (0,)), ((), ())),
                            preferred_element_type=jnp.float32)        # (TL, L)
        s = jnp.exp(s - jnp.max(s, axis=-1, keepdims=True))            # reuse s buffer
        p = (s * pl.reciprocal(jnp.sum(s, axis=-1, keepdims=True),
                               approx=True)).astype(bf16)              # (TL, L) bf16

        o_pm = lax.dot_general(p, v_h, (((1,), (1,)), ((), ())),
                               preferred_element_type=jnp.float32)     # (TL, hd)
        head_outs.append(o_pm.T)                                       # (hd, TL), tiny XLU

    o_all = jnp.concatenate(head_outs, axis=0)                         # (C, TL): heads -> channels

    # ---- output projection: one K=C matmul ----
    attn = jnp.dot(wout_ref[...], o_all.astype(bf16),
                   preferred_element_type=jnp.float32) + bout_ref[...]  # (C, TL)

    # ---- residual + feed-forward (LayerNorm -> Linear -> GELU -> Linear) ----
    y = attn + x_q
    y_ln = _layernorm_cm(y, ln2_g_ref[...], ln2_b_ref[...])
    h1 = jnp.dot(w1_ref[...], y_ln.astype(bf16),
                 preferred_element_type=jnp.float32) + b1_ref[...]
    g = _gelu_exact(h1)
    h2 = jnp.dot(w2_ref[...], g.astype(bf16),
                 preferred_element_type=jnp.float32) + b2_ref[...]

    o_ref[0] = (y + h2).astype(o_ref.dtype)                    # lane-dense (C, TL) store


def _pick_tile_l(L, requested=None):
    if requested is not None:
        assert L % requested == 0 and (requested == L or requested % 128 == 0)
        return requested
    for t in (512, 256, 128):
        if L % t == 0:
            return t
    return L


def _vmem_capacity_bytes():
    try:
        return int(pltpu.get_tpu_info().vmem_capacity_bytes)
    except Exception:
        return 64 * _MIB          # conservative fallback: v7x per-TensorCore VMEM


def image_self_attention(x_nchw, params, n_heads, tile_l=None):
    """x_nchw: (N, C, H, W) float32.  Returns (N, C, H, W)."""
    N, C, H, W = x_nchw.shape
    L = H * W
    assert C % n_heads == 0
    hd = C // n_heads
    scale = 1.0 / math.sqrt(hd)
    f32, bf16 = jnp.float32, jnp.bfloat16

    tile_l = _pick_tile_l(L, tile_l)
    n_tiles = L // tile_l

    # NCHW -> (N, C, L): pure reshape; data is already channel-major (pixels on lanes).
    x = x_nchw.reshape(N, C, L).astype(f32)

    def col(a):                                   # 1-D param -> (dim, 1) column
        return jnp.asarray(a).reshape(-1, 1).astype(f32)

    in_w = params["in_proj_w"].astype(f32)        # (3C, C), rows = [Wq; Wk; Wv]
    in_b = params["in_proj_b"].astype(f32)        # (3C,)

    weights = (
        col(params["ln1_g"]), col(params["ln1_b"]),
        (in_w[:C] * scale).astype(bf16), col(in_b[:C] * scale),   # scale folded into q
        in_w[C:].astype(bf16), col(in_b[C:]),
        params["out_proj_w"].astype(bf16), col(params["out_proj_b"]),
        col(params["ln2_g"]), col(params["ln2_b"]),
        params["ff_w1"].astype(bf16), col(params["ff_b1"]),
        params["ff_w2"].astype(bf16), col(params["ff_b2"]),
    )
    inputs = (x,) + weights

    kernel = functools.partial(image_self_attention_kernel, n_heads=n_heads, tile_l=tile_l)

    # Generation-aware VMEM budget (~48 MiB on v7x, ~96 MiB on v5e/v6e).
    weight_bytes = sum(int(a.size) * a.dtype.itemsize for a in weights)
    cap = (_vmem_capacity_bytes() * 3) // 4
    est = (2 * C * L * 4                          # x block (revisited, double-buffered)
           + 2 * 2 * C * tile_l * 4               # out block (double-buffered)
           + 2 * weight_bytes                     # worst case: double-buffered weights
           + n_heads * tile_l * L * 6             # scores f32 + probs bf16
           + 8 * C * L * 4                        # full-L temps (x_ln, kv, casts)
           + 12 * C * tile_l * 4)                 # per-tile temps
    vmem_limit = min(cap, max(32 * _MIB, int(1.5 * est)))

    def run(single_buffer_weights):
        def wspec(shape):
            idx = lambda n, l: (0,) * len(shape)
            if single_buffer_weights:
                # Constant-index weights are never re-fetched: single-buffer them.
                return pl.BlockSpec(shape, idx, pipeline_mode=pl.Buffered(buffer_count=1))
            return pl.BlockSpec(shape, idx)

        in_specs = [pl.BlockSpec((1, C, L), lambda n, l: (n, 0, 0))]
        in_specs += [wspec(w.shape) for w in weights]

        return pl.pallas_call(
            kernel,
            out_shape=jax.ShapeDtypeStruct((N, C, L), jnp.float32),
            grid_spec=pltpu.PrefetchScalarGridSpec(
                num_scalar_prefetch=0,
                grid=(N, n_tiles),
                in_specs=in_specs,
                out_specs=pl.BlockSpec((1, C, tile_l), lambda n, l: (n, 0, l)),
            ),
            compiler_params=pltpu.CompilerParams(
                dimension_semantics=("parallel", "parallel"),
                vmem_limit_bytes=vmem_limit,
            ),
        )(*inputs)

    try:
        out = run(single_buffer_weights=True)
    except Exception:
        # pipeline_mode=pl.Buffered(1) not supported on this jax version -> default buffering.
        out = run(single_buffer_weights=False)

    # (N, C, L) -> NCHW (pure reshape)
    return out.reshape(N, C, H, W)


def _reference(x_nchw, params, n_heads):
    """Pure-JAX f32 reference mirroring the PyTorch forward."""
    N, C, H, W = x_nchw.shape
    L = H * W
    hd = C // n_heads
    x = jnp.transpose(x_nchw.reshape(N, C, L), (0, 2, 1))

    def ln(v, g, b):
        m = jnp.mean(v, -1, keepdims=True)
        var = jnp.mean((v - m) ** 2, -1, keepdims=True)
        return (v - m) / jnp.sqrt(var + 1e-5) * g + b

    x_ln = ln(x, params["ln1_g"], params["ln1_b"])
    qkv = jnp.einsum("nlc,dc->nld", x_ln, params["in_proj_w"]) + params["in_proj_b"]
    q, k, v = qkv[..., :C], qkv[..., C:2 * C], qkv[..., 2 * C:]

    def split(t):
        return t.reshape(N, L, n_heads, hd).transpose(0, 2, 1, 3)

    qh, kh, vh = split(q), split(k), split(v)
    s = jnp.einsum("nhld,nhmd->nhlm", qh, kh) / math.sqrt(hd)
    p = jax.nn.softmax(s, axis=-1)
    o = jnp.einsum("nhlm,nhmd->nhld", p, vh).transpose(0, 2, 1, 3).reshape(N, L, C)
    o = jnp.einsum("nlc,dc->nld", o, params["out_proj_w"]) + params["out_proj_b"]

    y = o + x
    y_ln = ln(y, params["ln2_g"], params["ln2_b"])
    h1 = jnp.einsum("nlc,dc->nld", y_ln, params["ff_w1"]) + params["ff_b1"]
    g = 0.5 * h1 * (1.0 + lax.erf(h1 / jnp.sqrt(2.0)))
    h2 = jnp.einsum("nlc,dc->nld", g, params["ff_w2"]) + params["ff_b2"]
    out = y + h2
    return jnp.transpose(out, (0, 2, 1)).reshape(N, C, H, W)


def make_params(key, C):
    ks = jax.random.split(key, 8)
    s = 0.1
    return {
        "ln1_g": jnp.ones((C,), jnp.float32),
        "ln1_b": jnp.zeros((C,), jnp.float32),
        "in_proj_w": s * jax.random.normal(ks[0], (3 * C, C), jnp.float32),
        "in_proj_b": s * jax.random.normal(ks[1], (3 * C,), jnp.float32),
        "out_proj_w": s * jax.random.normal(ks[2], (C, C), jnp.float32),
        "out_proj_b": s * jax.random.normal(ks[3], (C,), jnp.float32),
        "ln2_g": jnp.ones((C,), jnp.float32),
        "ln2_b": jnp.zeros((C,), jnp.float32),
        "ff_w1": s * jax.random.normal(ks[4], (C, C), jnp.float32),
        "ff_b1": s * jax.random.normal(ks[5], (C,), jnp.float32),
        "ff_w2": s * jax.random.normal(ks[6], (C, C), jnp.float32),
        "ff_b2": s * jax.random.normal(ks[7], (C,), jnp.float32),
    }


if __name__ == "__main__":
    N, C, H, W = 2, 8, 16, 16      # L = H*W = 256, embed dim C = 8
    n_heads = 2

    key = jax.random.PRNGKey(0)
    kx, kp = jax.random.split(key)
    x = jax.random.normal(kx, (N, C, H, W), jnp.float32)
    params = make_params(kp, C)

    # tile_l=128 -> 2 query tiles per image: exercises the (batch, L-tile) grid.
    out = image_self_attention(x, params, n_heads, tile_l=128)
    out = jax.block_until_ready(out)

    ref = jax.block_until_ready(_reference(x, params, n_heads))
    assert out.shape == (N, C, H, W)
    # bf16 MXU operands + approx-reciprocal softmax => slightly looser tolerance vs f32 ref
    assert jnp.allclose(out, ref, rtol=1e-2, atol=1e-2), "mismatch vs pure-JAX reference"

    print("KERNEL_OK")
</pallas_src>

<mosaic_0001>
module attributes {stable_mosaic.version = 11 : i64} {
  func.func @image_self_attention_kernel(%arg0: i32, %arg1: i32, %arg2: memref<1x8x256xf32, #tpu.memory_space<vmem>>, %arg3: memref<8x1xf32, #tpu.memory_space<vmem>>, %arg4: memref<8x1xf32, #tpu.memory_space<vmem>>, %arg5: memref<8x8xbf16, #tpu.memory_space<vmem>>, %arg6: memref<8x1xf32, #tpu.memory_space<vmem>>, %arg7: memref<16x8xbf16, #tpu.memory_space<vmem>>, %arg8: memref<16x1xf32, #tpu.memory_space<vmem>>, %arg9: memref<8x8xbf16, #tpu.memory_space<vmem>>, %arg10: memref<8x1xf32, #tpu.memory_space<vmem>>, %arg11: memref<8x1xf32, #tpu.memory_space<vmem>>, %arg12: memref<8x1xf32, #tpu.memory_space<vmem>>, %arg13: memref<8x8xbf16, #tpu.memory_space<vmem>>, %arg14: memref<8x1xf32, #tpu.memory_space<vmem>>, %arg15: memref<8x8xbf16, #tpu.memory_space<vmem>>, %arg16: memref<8x1xf32, #tpu.memory_space<vmem>>, %arg17: memref<1x8x128xf32, #tpu.memory_space<vmem>>) attributes {dimension_semantics = [#tpu.dimension_semantics<parallel>, #tpu.dimension_semantics<parallel>], iteration_bounds = array<i64: 2, 2>, scalar_prefetch = 0 : i64, scratch_operands = 0 : i64, tpu.core_type = #tpu.core_type<tc>, window_params = [{transform_indices = @transform_0, window_bounds = array<i64: 1, 8, 256>}, {pipeline_mode = #tpu.pipeline_mode<synchronous>, transform_indices = @transform_1, window_bounds = array<i64: 8, 1>}, {pipeline_mode = #tpu.pipeline_mode<synchronous>, transform_indices = @transform_2, window_bounds = array<i64: 8, 1>}, {pipeline_mode = #tpu.pipeline_mode<synchronous>, transform_indices = @transform_3, window_bounds = array<i64: 8, 8>}, {pipeline_mode = #tpu.pipeline_mode<synchronous>, transform_indices = @transform_4, window_bounds = array<i64: 8, 1>}, {pipeline_mode = #tpu.pipeline_mode<synchronous>, transform_indices = @transform_5, window_bounds = array<i64: 16, 8>}, {pipeline_mode = #tpu.pipeline_mode<synchronous>, transform_indices = @transform_6, window_bounds = array<i64: 16, 1>}, {pipeline_mode = #tpu.pipeline_mode<synchronous>, transform_indices = @transform_7, window_bounds = array<i64: 8, 8>}, {pipeline_mode = #tpu.pipeline_mode<synchronous>, transform_indices = @transform_8, window_bounds = array<i64: 8, 1>}, {pipeline_mode = #tpu.pipeline_mode<synchronous>, transform_indices = @transform_9, window_bounds = array<i64: 8, 1>}, {pipeline_mode = #tpu.pipeline_mode<synchronous>, transform_indices = @transform_10, window_bounds = array<i64: 8, 1>}, {pipeline_mode = #tpu.pipeline_mode<synchronous>, transform_indices = @transform_11, window_bounds = array<i64: 8, 8>}, {pipeline_mode = #tpu.pipeline_mode<synchronous>, transform_indices = @transform_12, window_bounds = array<i64: 8, 1>}, {pipeline_mode = #tpu.pipeline_mode<synchronous>, transform_indices = @transform_13, window_bounds = array<i64: 8, 8>}, {pipeline_mode = #tpu.pipeline_mode<synchronous>, transform_indices = @transform_14, window_bounds = array<i64: 8, 1>}, {transform_indices = @transform_15, window_bounds = array<i64: 1, 8, 128>}]} {
    %c128_i32 = arith.constant 128 : i32
    %0 = arith.muli %arg1, %c128_i32 : i32
    %1 = tpu.assume_multiple %0, 128 : i32
    %c0 = arith.constant 0 : index
    %c0_0 = arith.constant 0 : index
    %2 = arith.index_cast %1 : i32 to index
    %3 = vector.load %arg2[%c0, %c0_0, %2] : memref<1x8x256xf32, #tpu.memory_space<vmem>>, vector<1x8x128xf32>
    %4 = vector.shape_cast %3 : vector<1x8x128xf32> to vector<8x128xf32>
    %c0_1 = arith.constant 0 : index
    %c0_2 = arith.constant 0 : index
    %c0_3 = arith.constant 0 : index
    %5 = vector.load %arg2[%c0_1, %c0_2, %c0_3] : memref<1x8x256xf32, #tpu.memory_space<vmem>>, vector<1x8x256xf32>
    %6 = vector.shape_cast %5 : vector<1x8x256xf32> to vector<8x256xf32>
    %c0_4 = arith.constant 0 : index
    %c0_5 = arith.constant 0 : index
    %7 = vector.load %arg3[%c0_4, %c0_5] : memref<8x1xf32, #tpu.memory_space<vmem>>, vector<8x1xf32>
    %c0_6 = arith.constant 0 : index
    %c0_7 = arith.constant 0 : index
    %8 = vector.load %arg4[%c0_6, %c0_7] : memref<8x1xf32, #tpu.memory_space<vmem>>, vector<8x1xf32>
    %cst = arith.constant dense<0.000000e+00> : vector<128xf32>
    %9 = vector.multi_reduction <add>, %4, %cst [0] : vector<8x128xf32> to vector<128xf32>
    %10 = vector.shape_cast %9 : vector<128xf32> to vector<1x128xf32>
    %cst_8 = arith.constant 8.000000e+00 : f32
    %11 = vector.broadcast %cst_8 : f32 to vector<1x128xf32>
    %12 = arith.divf %10, %11 : vector<1x128xf32>
    %13 = vector.broadcast %12 : vector<1x128xf32> to vector<8x128xf32>
    %14 = arith.subf %4, %13 : vector<8x128xf32>
    %15 = arith.mulf %14, %14 : vector<8x128xf32>
    %cst_9 = arith.constant dense<0.000000e+00> : vector<128xf32>
    %16 = vector.multi_reduction <add>, %15, %cst_9 [0] : vector<8x128xf32> to vector<128xf32>
    %17 = vector.shape_cast %16 : vector<128xf32> to vector<1x128xf32>
    %cst_10 = arith.constant 8.000000e+00 : f32
    %18 = vector.broadcast %cst_10 : f32 to vector<1x128xf32>
    %19 = arith.divf %17, %18 : vector<1x128xf32>
    %20 = vector.broadcast %12 : vector<1x128xf32> to vector<8x128xf32>
    %21 = arith.subf %4, %20 : vector<8x128xf32>
    %cst_11 = arith.constant 9.99999974E-6 : f32
    %22 = vector.broadcast %cst_11 : f32 to vector<1x128xf32>
    %23 = arith.addf %19, %22 : vector<1x128xf32>
    %24 = math.rsqrt %23 : vector<1x128xf32>
    %25 = vector.broadcast %24 : vector<1x128xf32> to vector<8x128xf32>
    %26 = arith.mulf %21, %25 : vector<8x128xf32>
    %27 = vector.broadcast %7 : vector<8x1xf32> to vector<8x128xf32>
    %28 = arith.mulf %26, %27 : vector<8x128xf32>
    %29 = vector.broadcast %8 : vector<8x1xf32> to vector<8x128xf32>
    %30 = arith.addf %28, %29 : vector<8x128xf32>
    %cst_12 = arith.constant dense<0.000000e+00> : vector<256xf32>
    %31 = vector.multi_reduction <add>, %6, %cst_12 [0] : vector<8x256xf32> to vector<256xf32>
    %32 = vector.shape_cast %31 : vector<256xf32> to vector<1x256xf32>
    %cst_13 = arith.constant 8.000000e+00 : f32
    %33 = vector.broadcast %cst_13 : f32 to vector<1x256xf32>
    %34 = arith.divf %32, %33 : vector<1x256xf32>
    %35 = vector.broadcast %34 : vector<1x256xf32> to vector<8x256xf32>
    %36 = arith.subf %6, %35 : vector<8x256xf32>
    %37 = arith.mulf %36, %36 : vector<8x256xf32>
    %cst_14 = arith.constant dense<0.000000e+00> : vector<256xf32>
    %38 = vector.multi_reduction <add>, %37, %cst_14 [0] : vector<8x256xf32> to vector<256xf32>
    %39 = vector.shape_cast %38 : vector<256xf32> to vector<1x256xf32>
    %cst_15 = arith.constant 8.000000e+00 : f32
    %40 = vector.broadcast %cst_15 : f32 to vector<1x256xf32>
    %41 = arith.divf %39, %40 : vector<1x256xf32>
    %42 = vector.broadcast %34 : vector<1x256xf32> to vector<8x256xf32>
    %43 = arith.subf %6, %42 : vector<8x256xf32>
    %cst_16 = arith.constant 9.99999974E-6 : f32
    %44 = vector.broadcast %cst_16 : f32 to vector<1x256xf32>
    %45 = arith.addf %41, %44 : vector<1x256xf32>
    %46 = math.rsqrt %45 : vector<1x256xf32>
    %47 = vector.broadcast %46 : vector<1x256xf32> to vector<8x256xf32>
    %48 = arith.mulf %43, %47 : vector<8x256xf32>
    %49 = vector.broadcast %7 : vector<8x1xf32> to vector<8x256xf32>
    %50 = arith.mulf %48, %49 : vector<8x256xf32>
    %51 = vector.broadcast %8 : vector<8x1xf32> to vector<8x256xf32>
    %52 = arith.addf %50, %51 : vector<8x256xf32>
    %c0_17 = arith.constant 0 : index
    %c0_18 = arith.constant 0 : index
    %53 = vector.load %arg5[%c0_17, %c0_18] : memref<8x8xbf16, #tpu.memory_space<vmem>>, vector<8x8xbf16>
    %54 = arith.truncf %30 : vector<8x128xf32> to vector<8x128xbf16>
    %cst_19 = arith.constant dense<0.000000e+00> : vector<8x128xf32>
    %55 = tpu.matmul %53, %54, %cst_19 {dimension_numbers = #tpu.dot_dimension_numbers<[1], [0], [0], [1], [0, 0, 1, 1], [], []>} : vector<8x8xbf16>, vector<8x128xbf16>, vector<8x128xf32> -> vector<8x128xf32>
    %c0_20 = arith.constant 0 : index
    %c0_21 = arith.constant 0 : index
    %56 = vector.load %arg6[%c0_20, %c0_21] : memref<8x1xf32, #tpu.memory_space<vmem>>, vector<8x1xf32>
    %57 = vector.broadcast %56 : vector<8x1xf32> to vector<8x128xf32>
    %58 = arith.addf %55, %57 : vector<8x128xf32>
    %c0_22 = arith.constant 0 : index
    %c0_23 = arith.constant 0 : index
    %59 = vector.load %arg7[%c0_22, %c0_23] : memref<16x8xbf16, #tpu.memory_space<vmem>>, vector<16x8xbf16>
    %60 = arith.truncf %52 : vector<8x256xf32> to vector<8x256xbf16>
    %cst_24 = arith.constant dense<0.000000e+00> : vector<16x256xf32>
    %61 = tpu.matmul %59, %60, %cst_24 {dimension_numbers = #tpu.dot_dimension_numbers<[1], [0], [0], [1], [0, 0, 1, 1], [], []>} : vector<16x8xbf16>, vector<8x256xbf16>, vector<16x256xf32> -> vector<16x256xf32>
    %c0_25 = arith.constant 0 : index
    %c0_26 = arith.constant 0 : index
    %62 = vector.load %arg8[%c0_25, %c0_26] : memref<16x1xf32, #tpu.memory_space<vmem>>, vector<16x1xf32>
    %63 = vector.broadcast %62 : vector<16x1xf32> to vector<16x256xf32>
    %64 = arith.addf %61, %63 : vector<16x256xf32>
    %65 = vector.extract_strided_slice %64 {offsets = [0, 0], sizes = [8, 256], strides = [1, 1]} : vector<16x256xf32> to vector<8x256xf32>
    %66 = vector.extract_strided_slice %64 {offsets = [8, 0], sizes = [8, 256], strides = [1, 1]} : vector<16x256xf32> to vector<8x256xf32>
    %67 = vector.extract_strided_slice %58 {offsets = [0, 0], sizes = [4, 128], strides = [1, 1]} : vector<8x128xf32> to vector<4x128xf32>
    %68 = arith.truncf %67 : vector<4x128xf32> to vector<4x128xbf16>
    %69 = vector.extract_strided_slice %65 {offsets = [0, 0], sizes = [4, 256], strides = [1, 1]} : vector<8x256xf32> to vector<4x256xf32>
    %70 = arith.truncf %69 : vector<4x256xf32> to vector<4x256xbf16>
    %71 = vector.extract_strided_slice %66 {offsets = [0, 0], sizes = [4, 256], strides = [1, 1]} : vector<8x256xf32> to vector<4x256xf32>
    %72 = arith.truncf %71 : vector<4x256xf32> to vector<4x256xbf16>
    %cst_27 = arith.constant dense<0.000000e+00> : vector<128x256xf32>
    %73 = tpu.matmul %68, %70, %cst_27 {dimension_numbers = #tpu.dot_dimension_numbers<[0], [0], [1], [1], [0, 1, 1, 1], [], []>} : vector<4x128xbf16>, vector<4x256xbf16>, vector<128x256xf32> -> vector<128x256xf32>
    %cst_28 = arith.constant dense<0xFF800000> : vector<128xf32>
    %74 = vector.multi_reduction <maximumf>, %73, %cst_28 [1] : vector<128x256xf32> to vector<128xf32>
    %75 = vector.shape_cast %74 : vector<128xf32> to vector<128x1xf32>
    %76 = vector.broadcast %75 : vector<128x1xf32> to vector<128x256xf32>
    %77 = arith.subf %73, %76 : vector<128x256xf32>
    %78 = math.exp %77 : vector<128x256xf32>
    %cst_29 = arith.constant dense<0.000000e+00> : vector<128xf32>
    %79 = vector.multi_reduction <add>, %78, %cst_29 [1] : vector<128x256xf32> to vector<128xf32>
    %80 = vector.shape_cast %79 : vector<128xf32> to vector<128x1xf32>
    %81 = tpu.reciprocal %80 {approx = true} : vector<128x1xf32> -> vector<128x1xf32>
    %82 = vector.broadcast %81 : vector<128x1xf32> to vector<128x256xf32>
    %83 = arith.mulf %78, %82 : vector<128x256xf32>
    %84 = arith.truncf %83 : vector<128x256xf32> to vector<128x256xbf16>
    %cst_30 = arith.constant dense<0.000000e+00> : vector<128x4xf32>
    %85 = tpu.matmul %84, %72, %cst_30 {dimension_numbers = #tpu.dot_dimension_numbers<[1], [1], [0], [0], [0, 0, 1, 0], [], []>} : vector<128x256xbf16>, vector<4x256xbf16>, vector<128x4xf32> -> vector<128x4xf32>
    %86 = tpu.transpose %85, [1, 0] : vector<128x4xf32> -> vector<4x128xf32>
    %87 = vector.extract_strided_slice %58 {offsets = [4, 0], sizes = [4, 128], strides = [1, 1]} : vector<8x128xf32> to vector<4x128xf32>
    %88 = arith.truncf %87 : vector<4x128xf32> to vector<4x128xbf16>
    %89 = vector.extract_strided_slice %65 {offsets = [4, 0], sizes = [4, 256], strides = [1, 1]} : vector<8x256xf32> to vector<4x256xf32>
    %90 = arith.truncf %89 : vector<4x256xf32> to vector<4x256xbf16>
    %91 = vector.extract_strided_slice %66 {offsets = [4, 0], sizes = [4, 256], strides = [1, 1]} : vector<8x256xf32> to vector<4x256xf32>
    %92 = arith.truncf %91 : vector<4x256xf32> to vector<4x256xbf16>
    %cst_31 = arith.constant dense<0.000000e+00> : vector<128x256xf32>
    %93 = tpu.matmul %88, %90, %cst_31 {dimension_numbers = #tpu.dot_dimension_numbers<[0], [0], [1], [1], [0, 1, 1, 1], [], []>} : vector<4x128xbf16>, vector<4x256xbf16>, vector<128x256xf32> -> vector<128x256xf32>
    %cst_32 = arith.constant dense<0xFF800000> : vector<128xf32>
    %94 = vector.multi_reduction <maximumf>, %93, %cst_32 [1] : vector<128x256xf32> to vector<128xf32>
    %95 = vector.shape_cast %94 : vector<128xf32> to vector<128x1xf32>
    %96 = vector.broadcast %95 : vector<128x1xf32> to vector<128x256xf32>
    %97 = arith.subf %93, %96 : vector<128x256xf32>
    %98 = math.exp %97 : vector<128x256xf32>
    %cst_33 = arith.constant dense<0.000000e+00> : vector<128xf32>
    %99 = vector.multi_reduction <add>, %98, %cst_33 [1] : vector<128x256xf32> to vector<128xf32>
    %100 = vector.shape_cast %99 : vector<128xf32> to vector<128x1xf32>
    %101 = tpu.reciprocal %100 {approx = true} : vector<128x1xf32> -> vector<128x1xf32>
    %102 = vector.broadcast %101 : vector<128x1xf32> to vector<128x256xf32>
    %103 = arith.mulf %98, %102 : vector<128x256xf32>
    %104 = arith.truncf %103 : vector<128x256xf32> to vector<128x256xbf16>
    %cst_34 = arith.constant dense<0.000000e+00> : vector<128x4xf32>
    %105 = tpu.matmul %104, %92, %cst_34 {dimension_numbers = #tpu.dot_dimension_numbers<[1], [1], [0], [0], [0, 0, 1, 0], [], []>} : vector<128x256xbf16>, vector<4x256xbf16>, vector<128x4xf32> -> vector<128x4xf32>
    %106 = tpu.transpose %105, [1, 0] : vector<128x4xf32> -> vector<4x128xf32>
    %107 = tpu.concatenate %86, %106 in 0 : vector<4x128xf32>, vector<4x128xf32> -> vector<8x128xf32>
    %c0_35 = arith.constant 0 : index
    %c0_36 = arith.constant 0 : index
    %108 = vector.load %arg9[%c0_35, %c0_36] : memref<8x8xbf16, #tpu.memory_space<vmem>>, vector<8x8xbf16>
    %109 = arith.truncf %107 : vector<8x128xf32> to vector<8x128xbf16>
    %cst_37 = arith.constant dense<0.000000e+00> : vector<8x128xf32>
    %110 = tpu.matmul %108, %109, %cst_37 {dimension_numbers = #tpu.dot_dimension_numbers<[1], [0], [0], [1], [0, 0, 1, 1], [], []>} : vector<8x8xbf16>, vector<8x128xbf16>, vector<8x128xf32> -> vector<8x128xf32>
    %c0_38 = arith.constant 0 : index
    %c0_39 = arith.constant 0 : index
    %111 = vector.load %arg10[%c0_38, %c0_39] : memref<8x1xf32, #tpu.memory_space<vmem>>, vector<8x1xf32>
    %112 = vector.broadcast %111 : vector<8x1xf32> to vector<8x128xf32>
    %113 = arith.addf %110, %112 : vector<8x128xf32>
    %114 = arith.addf %113, %4 : vector<8x128xf32>
    %c0_40 = arith.constant 0 : index
    %c0_41 = arith.constant 0 : index
    %115 = vector.load %arg11[%c0_40, %c0_41] : memref<8x1xf32, #tpu.memory_space<vmem>>, vector<8x1xf32>
    %c0_42 = arith.constant 0 : index
    %c0_43 = arith.constant 0 : index
    %116 = vector.load %arg12[%c0_42, %c0_43] : memref<8x1xf32, #tpu.memory_space<vmem>>, vector<8x1xf32>
    %cst_44 = arith.constant dense<0.000000e+00> : vector<128xf32>
    %117 = vector.multi_reduction <add>, %114, %cst_44 [0] : vector<8x128xf32> to vector<128xf32>
    %118 = vector.shape_cast %117 : vector<128xf32> to vector<1x128xf32>
    %cst_45 = arith.constant 8.000000e+00 : f32
    %119 = vector.broadcast %cst_45 : f32 to vector<1x128xf32>
    %120 = arith.divf %118, %119 : vector<1x128xf32>
    %121 = vector.broadcast %120 : vector<1x128xf32> to vector<8x128xf32>
    %122 = arith.subf %114, %121 : vector<8x128xf32>
    %123 = arith.mulf %122, %122 : vector<8x128xf32>
    %cst_46 = arith.constant dense<0.000000e+00> : vector<128xf32>
    %124 = vector.multi_reduction <add>, %123, %cst_46 [0] : vector<8x128xf32> to vector<128xf32>
    %125 = vector.shape_cast %124 : vector<128xf32> to vector<1x128xf32>
    %cst_47 = arith.constant 8.000000e+00 : f32
    %126 = vector.broadcast %cst_47 : f32 to vector<1x128xf32>
    %127 = arith.divf %125, %126 : vector<1x128xf32>
    %128 = vector.broadcast %120 : vector<1x128xf32> to vector<8x128xf32>
    %129 = arith.subf %114, %128 : vector<8x128xf32>
    %cst_48 = arith.constant 9.99999974E-6 : f32
    %130 = vector.broadcast %cst_48 : f32 to vector<1x128xf32>
    %131 = arith.addf %127, %130 : vector<1x128xf32>
    %132 = math.rsqrt %131 : vector<1x128xf32>
    %133 = vector.broadcast %132 : vector<1x128xf32> to vector<8x128xf32>
    %134 = arith.mulf %129, %133 : vector<8x128xf32>
    %135 = vector.broadcast %115 : vector<8x1xf32> to vector<8x128xf32>
    %136 = arith.mulf %134, %135 : vector<8x128xf32>
    %137 = vector.broadcast %116 : vector<8x1xf32> to vector<8x128xf32>
    %138 = arith.addf %136, %137 : vector<8x128xf32>
    %c0_49 = arith.constant 0 : index
    %c0_50 = arith.constant 0 : index
    %139 = vector.load %arg13[%c0_49, %c0_50] : memref<8x8xbf16, #tpu.memory_space<vmem>>, vector<8x8xbf16>
    %140 = arith.truncf %138 : vector<8x128xf32> to vector<8x128xbf16>
    %cst_51 = arith.constant dense<0.000000e+00> : vector<8x128xf32>
    %141 = tpu.matmul %139, %140, %cst_51 {dimension_numbers = #tpu.dot_dimension_numbers<[1], [0], [0], [1], [0, 0, 1, 1], [], []>} : vector<8x8xbf16>, vector<8x128xbf16>, vector<8x128xf32> -> vector<8x128xf32>
    %c0_52 = arith.constant 0 : index
    %c0_53 = arith.constant 0 : index
    %142 = vector.load %arg14[%c0_52, %c0_53] : memref<8x1xf32, #tpu.memory_space<vmem>>, vector<8x1xf32>
    %143 = vector.broadcast %142 : vector<8x1xf32> to vector<8x128xf32>
    %144 = arith.addf %141, %143 : vector<8x128xf32>
    %cst_54 = arith.constant 5.000000e-01 : f32
    %145 = vector.broadcast %cst_54 : f32 to vector<8x128xf32>
    %146 = arith.mulf %145, %144 : vector<8x128xf32>
    %cst_55 = arith.constant 0.707106769 : f32
    %147 = vector.broadcast %cst_55 : f32 to vector<8x128xf32>
    %148 = arith.mulf %144, %147 : vector<8x128xf32>
    %149 = math.absf %148 : vector<8x128xf32>
    %cst_56 = arith.constant 0.327591091 : f32
    %150 = vector.broadcast %cst_56 : f32 to vector<8x128xf32>
    %151 = arith.mulf %150, %149 : vector<8x128xf32>
    %cst_57 = arith.constant 1.000000e+00 : f32
    %152 = vector.broadcast %cst_57 : f32 to vector<8x128xf32>
    %153 = arith.addf %152, %151 : vector<8x128xf32>
    %cst_58 = arith.constant 1.000000e+00 : f32
    %154 = vector.broadcast %cst_58 : f32 to vector<8x128xf32>
    %155 = arith.divf %154, %153 : vector<8x128xf32>
    %cst_59 = arith.constant 1.06140542 : f32
    %156 = vector.broadcast %cst_59 : f32 to vector<8x128xf32>
    %157 = arith.mulf %155, %156 : vector<8x128xf32>
    %cst_60 = arith.constant -1.45315206 : f32
    %158 = vector.broadcast %cst_60 : f32 to vector<8x128xf32>
    %159 = arith.addf %158, %157 : vector<8x128xf32>
    %160 = arith.mulf %155, %159 : vector<8x128xf32>
    %cst_61 = arith.constant 1.42141378 : f32
    %161 = vector.broadcast %cst_61 : f32 to vector<8x128xf32>
    %162 = arith.addf %161, %160 : vector<8x128xf32>
    %163 = arith.mulf %155, %162 : vector<8x128xf32>
    %cst_62 = arith.constant -0.284496725 : f32
    %164 = vector.broadcast %cst_62 : f32 to vector<8x128xf32>
    %165 = arith.addf %164, %163 : vector<8x128xf32>
    %166 = arith.mulf %155, %165 : vector<8x128xf32>
    %cst_63 = arith.constant 0.254829586 : f32
    %167 = vector.broadcast %cst_63 : f32 to vector<8x128xf32>
    %168 = arith.addf %167, %166 : vector<8x128xf32>
    %169 = arith.mulf %155, %168 : vector<8x128xf32>
    %170 = arith.mulf %149, %149 : vector<8x128xf32>
    %cst_64 = arith.constant 0.000000e+00 : f32
    %171 = vector.broadcast %cst_64 : f32 to vector<8x128xf32>
    %172 = arith.subf %171, %170 : vector<8x128xf32>
    %173 = math.exp %172 : vector<8x128xf32>
    %174 = arith.mulf %169, %173 : vector<8x128xf32>
    %cst_65 = arith.constant 1.000000e+00 : f32
    %175 = vector.broadcast %cst_65 : f32 to vector<8x128xf32>
    %176 = arith.subf %175, %174 : vector<8x128xf32>
    %cst_66 = arith.constant 0.000000e+00 : f32
    %177 = vector.broadcast %cst_66 : f32 to vector<8x128xf32>
    %178 = arith.cmpf oge, %148, %177 : vector<8x128xf32>
    %cst_67 = arith.constant 0.000000e+00 : f32
    %179 = vector.broadcast %cst_67 : f32 to vector<8x128xf32>
    %180 = arith.subf %179, %176 : vector<8x128xf32>
    %181 = arith.select %178, %176, %180 : vector<8x128xi1>, vector<8x128xf32>
    %cst_68 = arith.constant 1.000000e+00 : f32
    %182 = vector.broadcast %cst_68 : f32 to vector<8x128xf32>
    %183 = arith.addf %182, %181 : vector<8x128xf32>
    %184 = arith.mulf %146, %183 : vector<8x128xf32>
    %c0_69 = arith.constant 0 : index
    %c0_70 = arith.constant 0 : index
    %185 = vector.load %arg15[%c0_69, %c0_70] : memref<8x8xbf16, #tpu.memory_space<vmem>>, vector<8x8xbf16>
    %186 = arith.truncf %184 : vector<8x128xf32> to vector<8x128xbf16>
    %cst_71 = arith.constant dense<0.000000e+00> : vector<8x128xf32>
    %187 = tpu.matmul %185, %186, %cst_71 {dimension_numbers = #tpu.dot_dimension_numbers<[1], [0], [0], [1], [0, 0, 1, 1], [], []>} : vector<8x8xbf16>, vector<8x128xbf16>, vector<8x128xf32> -> vector<8x128xf32>
    %c0_72 = arith.constant 0 : index
    %c0_73 = arith.constant 0 : index
    %188 = vector.load %arg16[%c0_72, %c0_73] : memref<8x1xf32, #tpu.memory_space<vmem>>, vector<8x1xf32>
    %189 = vector.broadcast %188 : vector<8x1xf32> to vector<8x128xf32>
    %190 = arith.addf %187, %189 : vector<8x128xf32>
    %191 = arith.addf %114, %190 : vector<8x128xf32>
    %c0_74 = arith.constant 0 : index
    %c0_75 = arith.constant 0 : index
    %c0_76 = arith.constant 0 : index
    %192 = vector.load %arg17[%c0_74, %c0_75, %c0_76] : memref<1x8x128xf32, #tpu.memory_space<vmem>>, vector<1x8x128xf32>
    %193 = vector.shape_cast %192 : vector<1x8x128xf32> to vector<8x128xf32>
    %194 = vector.shape_cast %191 : vector<8x128xf32> to vector<1x8x128xf32>
    tpu.vector_store %arg17[%c0_74, %c0_75, %c0_76], %194 {strides = array<i32>} : memref<1x8x128xf32, #tpu.memory_space<vmem>>, vector<1x8x128xf32>,
    return
  }
  func.func @transform_0(%arg0: i32, %arg1: i32) -> (i32, i32, i32) {
    %c0_i32 = arith.constant 0 : i32
    %c0_i32_0 = arith.constant 0 : i32
    %c0_i32_1 = arith.constant 0 : i32
    return %arg0, %c0_i32, %c0_i32_0 : i32, i32, i32
  }
  func.func @transform_1(%arg0: i32, %arg1: i32) -> (i32, i32) {
    %c0_i32 = arith.constant 0 : i32
    %c0_i32_0 = arith.constant 0 : i32
    %c0_i32_1 = arith.constant 0 : i32
    return %c0_i32, %c0_i32_0 : i32, i32
  }
  func.func @transform_2(%arg0: i32, %arg1: i32) -> (i32, i32) {
    %c0_i32 = arith.constant 0 : i32
    %c0_i32_0 = arith.constant 0 : i32
    %c0_i32_1 = arith.constant 0 : i32
    return %c0_i32, %c0_i32_0 : i32, i32
  }
  func.func @transform_3(%arg0: i32, %arg1: i32) -> (i32, i32) {
    %c0_i32 = arith.constant 0 : i32
    %c0_i32_0 = arith.constant 0 : i32
    %c0_i32_1 = arith.constant 0 : i32
    return %c0_i32, %c0_i32_0 : i32, i32
  }
  func.func @transform_4(%arg0: i32, %arg1: i32) -> (i32, i32) {
    %c0_i32 = arith.constant 0 : i32
    %c0_i32_0 = arith.constant 0 : i32
    %c0_i32_1 = arith.constant 0 : i32
    return %c0_i32, %c0_i32_0 : i32, i32
  }
  func.func @transform_5(%arg0: i32, %arg1: i32) -> (i32, i32) {
    %c0_i32 = arith.constant 0 : i32
    %c0_i32_0 = arith.constant 0 : i32
    %c0_i32_1 = arith.constant 0 : i32
    return %c0_i32, %c0_i32_0 : i32, i32
  }
  func.func @transform_6(%arg0: i32, %arg1: i32) -> (i32, i32) {
    %c0_i32 = arith.constant 0 : i32
    %c0_i32_0 = arith.constant 0 : i32
    %c0_i32_1 = arith.constant 0 : i32
    return %c0_i32, %c0_i32_0 : i32, i32
  }
  func.func @transform_7(%arg0: i32, %arg1: i32) -> (i32, i32) {
    %c0_i32 = arith.constant 0 : i32
    %c0_i32_0 = arith.constant 0 : i32
    %c0_i32_1 = arith.constant 0 : i32
    return %c0_i32, %c0_i32_0 : i32, i32
  }
  func.func @transform_8(%arg0: i32, %arg1: i32) -> (i32, i32) {
    %c0_i32 = arith.constant 0 : i32
    %c0_i32_0 = arith.constant 0 : i32
    %c0_i32_1 = arith.constant 0 : i32
    return %c0_i32, %c0_i32_0 : i32, i32
  }
  func.func @transform_9(%arg0: i32, %arg1: i32) -> (i32, i32) {
    %c0_i32 = arith.constant 0 : i32
    %c0_i32_0 = arith.constant 0 : i32
    %c0_i32_1 = arith.constant 0 : i32
    return %c0_i32, %c0_i32_0 : i32, i32
  }
  func.func @transform_10(%arg0: i32, %arg1: i32) -> (i32, i32) {
    %c0_i32 = arith.constant 0 : i32
    %c0_i32_0 = arith.constant 0 : i32
    %c0_i32_1 = arith.constant 0 : i32
    return %c0_i32, %c0_i32_0 : i32, i32
  }
  func.func @transform_11(%arg0: i32, %arg1: i32) -> (i32, i32) {
    %c0_i32 = arith.constant 0 : i32
    %c0_i32_0 = arith.constant 0 : i32
    %c0_i32_1 = arith.constant 0 : i32
    return %c0_i32, %c0_i32_0 : i32, i32
  }
  func.func @transform_12(%arg0: i32, %arg1: i32) -> (i32, i32) {
    %c0_i32 = arith.constant 0 : i32
    %c0_i32_0 = arith.constant 0 : i32
    %c0_i32_1 = arith.constant 0 : i32
    return %c0_i32, %c0_i32_0 : i32, i32
  }
  func.func @transform_13(%arg0: i32, %arg1: i32) -> (i32, i32) {
    %c0_i32 = arith.constant 0 : i32
    %c0_i32_0 = arith.constant 0 : i32
    %c0_i32_1 = arith.constant 0 : i32
    return %c0_i32, %c0_i32_0 : i32, i32
  }
  func.func @transform_14(%arg0: i32, %arg1: i32) -> (i32, i32) {
    %c0_i32 = arith.constant 0 : i32
    %c0_i32_0 = arith.constant 0 : i32
    %c0_i32_1 = arith.constant 0 : i32
    return %c0_i32, %c0_i32_0 : i32, i32
  }
  func.func @transform_15(%arg0: i32, %arg1: i32) -> (i32, i32, i32) {
    %c0_i32 = arith.constant 0 : i32
    %c0_i32_0 = arith.constant 0 : i32
    return %arg0, %c0_i32, %arg1 : i32, i32, i32
  }
}

module attributes {stable_mosaic.version = 11 : i64} {
  func.func @image_self_attention_kernel(%arg0: i32, %arg1: i32, %arg2: memref<1x8x256xf32, #tpu.memory_space<vmem>>, %arg3: memref<8x1xf32, #tpu.memory_space<vmem>>, %arg4: memref<8x1xf32, #tpu.memory_space<vmem>>, %arg5: memref<8x8xbf16, #tpu.memory_space<vmem>>, %arg6: memref<8x1xf32, #tpu.memory_space<vmem>>, %arg7: memref<16x8xbf16, #tpu.memory_space<vmem>>, %arg8: memref<16x1xf32, #tpu.memory_space<vmem>>, %arg9: memref<8x8xbf16, #tpu.memory_space<vmem>>, %arg10: memref<8x1xf32, #tpu.memory_space<vmem>>, %arg11: memref<8x1xf32, #tpu.memory_space<vmem>>, %arg12: memref<8x1xf32, #tpu.memory_space<vmem>>, %arg13: memref<8x8xbf16, #tpu.memory_space<vmem>>, %arg14: memref<8x1xf32, #tpu.memory_space<vmem>>, %arg15: memref<8x8xbf16, #tpu.memory_space<vmem>>, %arg16: memref<8x1xf32, #tpu.memory_space<vmem>>, %arg17: memref<1x8x128xf32, #tpu.memory_space<vmem>>) attributes {dimension_semantics = [#tpu.dimension_semantics<parallel>, #tpu.dimension_semantics<parallel>], iteration_bounds = array<i64: 2, 2>, scalar_prefetch = 0 : i64, scratch_operands = 0 : i64, tpu.core_type = #tpu.core_type<tc>, window_params = [{transform_indices = @transform_0, window_bounds = array<i64: 1, 8, 256>}, {pipeline_mode = #tpu.pipeline_mode<synchronous>, transform_indices = @transform_1, window_bounds = array<i64: 8, 1>}, {pipeline_mode = #tpu.pipeline_mode<synchronous>, transform_indices = @transform_2, window_bounds = array<i64: 8, 1>}, {pipeline_mode = #tpu.pipeline_mode<synchronous>, transform_indices = @transform_3, window_bounds = array<i64: 8, 8>}, {pipeline_mode = #tpu.pipeline_mode<synchronous>, transform_indices = @transform_4, window_bounds = array<i64: 8, 1>}, {pipeline_mode = #tpu.pipeline_mode<synchronous>, transform_indices = @transform_5, window_bounds = array<i64: 16, 8>}, {pipeline_mode = #tpu.pipeline_mode<synchronous>, transform_indices = @transform_6, window_bounds = array<i64: 16, 1>}, {pipeline_mode = #tpu.pipeline_mode<synchronous>, transform_indices = @transform_7, window_bounds = array<i64: 8, 8>}, {pipeline_mode = #tpu.pipeline_mode<synchronous>, transform_indices = @transform_8, window_bounds = array<i64: 8, 1>}, {pipeline_mode = #tpu.pipeline_mode<synchronous>, transform_indices = @transform_9, window_bounds = array<i64: 8, 1>}, {pipeline_mode = #tpu.pipeline_mode<synchronous>, transform_indices = @transform_10, window_bounds = array<i64: 8, 1>}, {pipeline_mode = #tpu.pipeline_mode<synchronous>, transform_indices = @transform_11, window_bounds = array<i64: 8, 8>}, {pipeline_mode = #tpu.pipeline_mode<synchronous>, transform_indices = @transform_12, window_bounds = array<i64: 8, 1>}, {pipeline_mode = #tpu.pipeline_mode<synchronous>, transform_indices = @transform_13, window_bounds = array<i64: 8, 8>}, {pipeline_mode = #tpu.pipeline_mode<synchronous>, transform_indices = @transform_14, window_bounds = array<i64: 8, 1>}, {transform_indices = @transform_15, window_bounds = array<i64: 1, 8, 128>}]} {
    %c128_i32 = arith.constant 128 : i32
    %0 = arith.muli %arg1, %c128_i32 : i32
    %1 = tpu.assume_multiple %0, 128 : i32
    %c0 = arith.constant 0 : index
    %c0_0 = arith.constant 0 : index
    %2 = arith.index_cast %1 : i32 to index
    %3 = vector.load %arg2[%c0, %c0_0, %2] : memref<1x8x256xf32, #tpu.memory_space<vmem>>, vector<1x8x128xf32>
    %4 = vector.shape_cast %3 : vector<1x8x128xf32> to vector<8x128xf32>
    %c0_1 = arith.constant 0 : index
    %c0_2 = arith.constant 0 : index
    %c0_3 = arith.constant 0 : index
    %5 = vector.load %arg2[%c0_1, %c0_2, %c0_3] : memref<1x8x256xf32, #tpu.memory_space<vmem>>, vector<1x8x256xf32>
    %6 = vector.shape_cast %5 : vector<1x8x256xf32> to vector<8x256xf32>
    %c0_4 = arith.constant 0 : index
    %c0_5 = arith.constant 0 : index
    %7 = vector.load %arg3[%c0_4, %c0_5] : memref<8x1xf32, #tpu.memory_space<vmem>>, vector<8x1xf32>
    %c0_6 = arith.constant 0 : index
    %c0_7 = arith.constant 0 : index
    %8 = vector.load %arg4[%c0_6, %c0_7] : memref<8x1xf32, #tpu.memory_space<vmem>>, vector<8x1xf32>
    %cst = arith.constant dense<0.000000e+00> : vector<128xf32>
    %9 = vector.multi_reduction <add>, %4, %cst [0] : vector<8x128xf32> to vector<128xf32>
    %10 = vector.shape_cast %9 : vector<128xf32> to vector<1x128xf32>
    %cst_8 = arith.constant 8.000000e+00 : f32
    %11 = vector.broadcast %cst_8 : f32 to vector<1x128xf32>
    %12 = arith.divf %10, %11 : vector<1x128xf32>
    %13 = vector.broadcast %12 : vector<1x128xf32> to vector<8x128xf32>
    %14 = arith.subf %4, %13 : vector<8x128xf32>
    %15 = arith.mulf %14, %14 : vector<8x128xf32>
    %cst_9 = arith.constant dense<0.000000e+00> : vector<128xf32>
    %16 = vector.multi_reduction <add>, %15, %cst_9 [0] : vector<8x128xf32> to vector<128xf32>
    %17 = vector.shape_cast %16 : vector<128xf32> to vector<1x128xf32>
    %cst_10 = arith.constant 8.000000e+00 : f32
    %18 = vector.broadcast %cst_10 : f32 to vector<1x128xf32>
    %19 = arith.divf %17, %18 : vector<1x128xf32>
    %20 = vector.broadcast %12 : vector<1x128xf32> to vector<8x128xf32>
    %21 = arith.subf %4, %20 : vector<8x128xf32>
    %cst_11 = arith.constant 9.99999974E-6 : f32
    %22 = vector.broadcast %cst_11 : f32 to vector<1x128xf32>
    %23 = arith.addf %19, %22 : vector<1x128xf32>
    %24 = math.rsqrt %23 : vector<1x128xf32>
    %25 = vector.broadcast %24 : vector<1x128xf32> to vector<8x128xf32>
    %26 = arith.mulf %21, %25 : vector<8x128xf32>
    %27 = vector.broadcast %7 : vector<8x1xf32> to vector<8x128xf32>
    %28 = arith.mulf %26, %27 : vector<8x128xf32>
    %29 = vector.broadcast %8 : vector<8x1xf32> to vector<8x128xf32>
    %30 = arith.addf %28, %29 : vector<8x128xf32>
    %cst_12 = arith.constant dense<0.000000e+00> : vector<256xf32>
    %31 = vector.multi_reduction <add>, %6, %cst_12 [0] : vector<8x256xf32> to vector<256xf32>
    %32 = vector.shape_cast %31 : vector<256xf32> to vector<1x256xf32>
    %cst_13 = arith.constant 8.000000e+00 : f32
    %33 = vector.broadcast %cst_13 : f32 to vector<1x256xf32>
    %34 = arith.divf %32, %33 : vector<1x256xf32>
    %35 = vector.broadcast %34 : vector<1x256xf32> to vector<8x256xf32>
    %36 = arith.subf %6, %35 : vector<8x256xf32>
    %37 = arith.mulf %36, %36 : vector<8x256xf32>
    %cst_14 = arith.constant dense<0.000000e+00> : vector<256xf32>
    %38 = vector.multi_reduction <add>, %37, %cst_14 [0] : vector<8x256xf32> to vector<256xf32>
    %39 = vector.shape_cast %38 : vector<256xf32> to vector<1x256xf32>
    %cst_15 = arith.constant 8.000000e+00 : f32
    %40 = vector.broadcast %cst_15 : f32 to vector<1x256xf32>
    %41 = arith.divf %39, %40 : vector<1x256xf32>
    %42 = vector.broadcast %34 : vector<1x256xf32> to vector<8x256xf32>
    %43 = arith.subf %6, %42 : vector<8x256xf32>
    %cst_16 = arith.constant 9.99999974E-6 : f32
    %44 = vector.broadcast %cst_16 : f32 to vector<1x256xf32>
    %45 = arith.addf %41, %44 : vector<1x256xf32>
    %46 = math.rsqrt %45 : vector<1x256xf32>
    %47 = vector.broadcast %46 : vector<1x256xf32> to vector<8x256xf32>
    %48 = arith.mulf %43, %47 : vector<8x256xf32>
    %49 = vector.broadcast %7 : vector<8x1xf32> to vector<8x256xf32>
    %50 = arith.mulf %48, %49 : vector<8x256xf32>
    %51 = vector.broadcast %8 : vector<8x1xf32> to vector<8x256xf32>
    %52 = arith.addf %50, %51 : vector<8x256xf32>
    %c0_17 = arith.constant 0 : index
    %c0_18 = arith.constant 0 : index
    %53 = vector.load %arg5[%c0_17, %c0_18] : memref<8x8xbf16, #tpu.memory_space<vmem>>, vector<8x8xbf16>
    %54 = arith.truncf %30 : vector<8x128xf32> to vector<8x128xbf16>
    %cst_19 = arith.constant dense<0.000000e+00> : vector<8x128xf32>
    %55 = tpu.matmul %53, %54, %cst_19 {dimension_numbers = #tpu.dot_dimension_numbers<[1], [0], [0], [1], [0, 0, 1, 1], [], []>} : vector<8x8xbf16>, vector<8x128xbf16>, vector<8x128xf32> -> vector<8x128xf32>
    %c0_20 = arith.constant 0 : index
    %c0_21 = arith.constant 0 : index
    %56 = vector.load %arg6[%c0_20, %c0_21] : memref<8x1xf32, #tpu.memory_space<vmem>>, vector<8x1xf32>
    %57 = vector.broadcast %56 : vector<8x1xf32> to vector<8x128xf32>
    %58 = arith.addf %55, %57 : vector<8x128xf32>
    %c0_22 = arith.constant 0 : index
    %c0_23 = arith.constant 0 : index
    %59 = vector.load %arg7[%c0_22, %c0_23] : memref<16x8xbf16, #tpu.memory_space<vmem>>, vector<16x8xbf16>
    %60 = arith.truncf %52 : vector<8x256xf32> to vector<8x256xbf16>
    %cst_24 = arith.constant dense<0.000000e+00> : vector<16x256xf32>
    %61 = tpu.matmul %59, %60, %cst_24 {dimension_numbers = #tpu.dot_dimension_numbers<[1], [0], [0], [1], [0, 0, 1, 1], [], []>} : vector<16x8xbf16>, vector<8x256xbf16>, vector<16x256xf32> -> vector<16x256xf32>
    %c0_25 = arith.constant 0 : index
    %c0_26 = arith.constant 0 : index
    %62 = vector.load %arg8[%c0_25, %c0_26] : memref<16x1xf32, #tpu.memory_space<vmem>>, vector<16x1xf32>
    %63 = vector.broadcast %62 : vector<16x1xf32> to vector<16x256xf32>
    %64 = arith.addf %61, %63 : vector<16x256xf32>
    %65 = vector.extract_strided_slice %64 {offsets = [0, 0], sizes = [8, 256], strides = [1, 1]} : vector<16x256xf32> to vector<8x256xf32>
    %66 = vector.extract_strided_slice %64 {offsets = [8, 0], sizes = [8, 256], strides = [1, 1]} : vector<16x256xf32> to vector<8x256xf32>
    %67 = vector.extract_strided_slice %58 {offsets = [0, 0], sizes = [4, 128], strides = [1, 1]} : vector<8x128xf32> to vector<4x128xf32>
    %68 = arith.truncf %67 : vector<4x128xf32> to vector<4x128xbf16>
    %69 = vector.extract_strided_slice %65 {offsets = [0, 0], sizes = [4, 256], strides = [1, 1]} : vector<8x256xf32> to vector<4x256xf32>
    %70 = arith.truncf %69 : vector<4x256xf32> to vector<4x256xbf16>
    %71 = vector.extract_strided_slice %66 {offsets = [0, 0], sizes = [4, 256], strides = [1, 1]} : vector<8x256xf32> to vector<4x256xf32>
    %72 = arith.truncf %71 : vector<4x256xf32> to vector<4x256xbf16>
    %cst_27 = arith.constant dense<0.000000e+00> : vector<128x256xf32>
    %73 = tpu.matmul %68, %70, %cst_27 {dimension_numbers = #tpu.dot_dimension_numbers<[0], [0], [1], [1], [0, 1, 1, 1], [], []>} : vector<4x128xbf16>, vector<4x256xbf16>, vector<128x256xf32> -> vector<128x256xf32>
    %cst_28 = arith.constant dense<0xFF800000> : vector<128xf32>
    %74 = vector.multi_reduction <maximumf>, %73, %cst_28 [1] : vector<128x256xf32> to vector<128xf32>
    %75 = vector.shape_cast %74 : vector<128xf32> to vector<128x1xf32>
    %76 = vector.broadcast %75 : vector<128x1xf32> to vector<128x256xf32>
    %77 = arith.subf %73, %76 : vector<128x256xf32>
    %78 = math.exp %77 : vector<128x256xf32>
    %cst_29 = arith.constant dense<0.000000e+00> : vector<128xf32>
    %79 = vector.multi_reduction <add>, %78, %cst_29 [1] : vector<128x256xf32> to vector<128xf32>
    %80 = vector.shape_cast %79 : vector<128xf32> to vector<128x1xf32>
    %81 = tpu.reciprocal %80 {approx = true} : vector<128x1xf32> -> vector<128x1xf32>
    %82 = vector.broadcast %81 : vector<128x1xf32> to vector<128x256xf32>
    %83 = arith.mulf %78, %82 : vector<128x256xf32>
    %84 = arith.truncf %83 : vector<128x256xf32> to vector<128x256xbf16>
    %cst_30 = arith.constant dense<0.000000e+00> : vector<128x4xf32>
    %85 = tpu.matmul %84, %72, %cst_30 {dimension_numbers = #tpu.dot_dimension_numbers<[1], [1], [0], [0], [0, 0, 1, 0], [], []>} : vector<128x256xbf16>, vector<4x256xbf16>, vector<128x4xf32> -> vector<128x4xf32>
    %86 = tpu.transpose %85, [1, 0] : vector<128x4xf32> -> vector<4x128xf32>
    %87 = vector.extract_strided_slice %58 {offsets = [4, 0], sizes = [4, 128], strides = [1, 1]} : vector<8x128xf32> to vector<4x128xf32>
    %88 = arith.truncf %87 : vector<4x128xf32> to vector<4x128xbf16>
    %89 = vector.extract_strided_slice %65 {offsets = [4, 0], sizes = [4, 256], strides = [1, 1]} : vector<8x256xf32> to vector<4x256xf32>
    %90 = arith.truncf %89 : vector<4x256xf32> to vector<4x256xbf16>
    %91 = vector.extract_strided_slice %66 {offsets = [4, 0], sizes = [4, 256], strides = [1, 1]} : vector<8x256xf32> to vector<4x256xf32>
    %92 = arith.truncf %91 : vector<4x256xf32> to vector<4x256xbf16>
    %cst_31 = arith.constant dense<0.000000e+00> : vector<128x256xf32>
    %93 = tpu.matmul %88, %90, %cst_31 {dimension_numbers = #tpu.dot_dimension_numbers<[0], [0], [1], [1], [0, 1, 1, 1], [], []>} : vector<4x128xbf16>, vector<4x256xbf16>, vector<128x256xf32> -> vector<128x256xf32>
    %cst_32 = arith.constant dense<0xFF800000> : vector<128xf32>
    %94 = vector.multi_reduction <maximumf>, %93, %cst_32 [1] : vector<128x256xf32> to vector<128xf32>
    %95 = vector.shape_cast %94 : vector<128xf32> to vector<128x1xf32>
    %96 = vector.broadcast %95 : vector<128x1xf32> to vector<128x256xf32>
    %97 = arith.subf %93, %96 : vector<128x256xf32>
    %98 = math.exp %97 : vector<128x256xf32>
    %cst_33 = arith.constant dense<0.000000e+00> : vector<128xf32>
    %99 = vector.multi_reduction <add>, %98, %cst_33 [1] : vector<128x256xf32> to vector<128xf32>
    %100 = vector.shape_cast %99 : vector<128xf32> to vector<128x1xf32>
    %101 = tpu.reciprocal %100 {approx = true} : vector<128x1xf32> -> vector<128x1xf32>
    %102 = vector.broadcast %101 : vector<128x1xf32> to vector<128x256xf32>
    %103 = arith.mulf %98, %102 : vector<128x256xf32>
    %104 = arith.truncf %103 : vector<128x256xf32> to vector<128x256xbf16>
    %cst_34 = arith.constant dense<0.000000e+00> : vector<128x4xf32>
    %105 = tpu.matmul %104, %92, %cst_34 {dimension_numbers = #tpu.dot_dimension_numbers<[1], [1], [0], [0], [0, 0, 1, 0], [], []>} : vector<128x256xbf16>, vector<4x256xbf16>, vector<128x4xf32> -> vector<128x4xf32>
    %106 = tpu.transpose %105, [1, 0] : vector<128x4xf32> -> vector<4x128xf32>
    %107 = tpu.concatenate %86, %106 in 0 : vector<4x128xf32>, vector<4x128xf32> -> vector<8x128xf32>
    %c0_35 = arith.constant 0 : index
    %c0_36 = arith.constant 0 : index
    %108 = vector.load %arg9[%c0_35, %c0_36] : memref<8x8xbf16, #tpu.memory_space<vmem>>, vector<8x8xbf16>
    %109 = arith.truncf %107 : vector<8x128xf32> to vector<8x128xbf16>
    %cst_37 = arith.constant dense<0.000000e+00> : vector<8x128xf32>
    %110 = tpu.matmul %108, %109, %cst_37 {dimension_numbers = #tpu.dot_dimension_numbers<[1], [0], [0], [1], [0, 0, 1, 1], [], []>} : vector<8x8xbf16>, vector<8x128xbf16>, vector<8x128xf32> -> vector<8x128xf32>
    %c0_38 = arith.constant 0 : index
    %c0_39 = arith.constant 0 : index
    %111 = vector.load %arg10[%c0_38, %c0_39] : memref<8x1xf32, #tpu.memory_space<vmem>>, vector<8x1xf32>
    %112 = vector.broadcast %111 : vector<8x1xf32> to vector<8x128xf32>
    %113 = arith.addf %110, %112 : vector<8x128xf32>
    %114 = arith.addf %113, %4 : vector<8x128xf32>
    %c0_40 = arith.constant 0 : index
    %c0_41 = arith.constant 0 : index
    %115 = vector.load %arg11[%c0_40, %c0_41] : memref<8x1xf32, #tpu.memory_space<vmem>>, vector<8x1xf32>
    %c0_42 = arith.constant 0 : index
    %c0_43 = arith.constant 0 : index
    %116 = vector.load %arg12[%c0_42, %c0_43] : memref<8x1xf32, #tpu.memory_space<vmem>>, vector<8x1xf32>
    %cst_44 = arith.constant dense<0.000000e+00> : vector<128xf32>
    %117 = vector.multi_reduction <add>, %114, %cst_44 [0] : vector<8x128xf32> to vector<128xf32>
    %118 = vector.shape_cast %117 : vector<128xf32> to vector<1x128xf32>
    %cst_45 = arith.constant 8.000000e+00 : f32
    %119 = vector.broadcast %cst_45 : f32 to vector<1x128xf32>
    %120 = arith.divf %118, %119 : vector<1x128xf32>
    %121 = vector.broadcast %120 : vector<1x128xf32> to vector<8x128xf32>
    %122 = arith.subf %114, %121 : vector<8x128xf32>
    %123 = arith.mulf %122, %122 : vector<8x128xf32>
    %cst_46 = arith.constant dense<0.000000e+00> : vector<128xf32>
    %124 = vector.multi_reduction <add>, %123, %cst_46 [0] : vector<8x128xf32> to vector<128xf32>
    %125 = vector.shape_cast %124 : vector<128xf32> to vector<1x128xf32>
    %cst_47 = arith.constant 8.000000e+00 : f32
    %126 = vector.broadcast %cst_47 : f32 to vector<1x128xf32>
    %127 = arith.divf %125, %126 : vector<1x128xf32>
    %128 = vector.broadcast %120 : vector<1x128xf32> to vector<8x128xf32>
    %129 = arith.subf %114, %128 : vector<8x128xf32>
    %cst_48 = arith.constant 9.99999974E-6 : f32
    %130 = vector.broadcast %cst_48 : f32 to vector<1x128xf32>
    %131 = arith.addf %127, %130 : vector<1x128xf32>
    %132 = math.rsqrt %131 : vector<1x128xf32>
    %133 = vector.broadcast %132 : vector<1x128xf32> to vector<8x128xf32>
    %134 = arith.mulf %129, %133 : vector<8x128xf32>
    %135 = vector.broadcast %115 : vector<8x1xf32> to vector<8x128xf32>
    %136 = arith.mulf %134, %135 : vector<8x128xf32>
    %137 = vector.broadcast %116 : vector<8x1xf32> to vector<8x128xf32>
    %138 = arith.addf %136, %137 : vector<8x128xf32>
    %c0_49 = arith.constant 0 : index
    %c0_50 = arith.constant 0 : index
    %139 = vector.load %arg13[%c0_49, %c0_50] : memref<8x8xbf16, #tpu.memory_space<vmem>>, vector<8x8xbf16>
    %140 = arith.truncf %138 : vector<8x128xf32> to vector<8x128xbf16>
    %cst_51 = arith.constant dense<0.000000e+00> : vector<8x128xf32>
    %141 = tpu.matmul %139, %140, %cst_51 {dimension_numbers = #tpu.dot_dimension_numbers<[1], [0], [0], [1], [0, 0, 1, 1], [], []>} : vector<8x8xbf16>, vector<8x128xbf16>, vector<8x128xf32> -> vector<8x128xf32>
    %c0_52 = arith.constant 0 : index
    %c0_53 = arith.constant 0 : index
    %142 = vector.load %arg14[%c0_52, %c0_53] : memref<8x1xf32, #tpu.memory_space<vmem>>, vector<8x1xf32>
    %143 = vector.broadcast %142 : vector<8x1xf32> to vector<8x128xf32>
    %144 = arith.addf %141, %143 : vector<8x128xf32>
    %cst_54 = arith.constant 5.000000e-01 : f32
    %145 = vector.broadcast %cst_54 : f32 to vector<8x128xf32>
    %146 = arith.mulf %145, %144 : vector<8x128xf32>
    %cst_55 = arith.constant 0.707106769 : f32
    %147 = vector.broadcast %cst_55 : f32 to vector<8x128xf32>
    %148 = arith.mulf %144, %147 : vector<8x128xf32>
    %149 = math.absf %148 : vector<8x128xf32>
    %cst_56 = arith.constant 0.327591091 : f32
    %150 = vector.broadcast %cst_56 : f32 to vector<8x128xf32>
    %151 = arith.mulf %150, %149 : vector<8x128xf32>
    %cst_57 = arith.constant 1.000000e+00 : f32
    %152 = vector.broadcast %cst_57 : f32 to vector<8x128xf32>
    %153 = arith.addf %152, %151 : vector<8x128xf32>
    %cst_58 = arith.constant 1.000000e+00 : f32
    %154 = vector.broadcast %cst_58 : f32 to vector<8x128xf32>
    %155 = arith.divf %154, %153 : vector<8x128xf32>
    %cst_59 = arith.constant 1.06140542 : f32
    %156 = vector.broadcast %cst_59 : f32 to vector<8x128xf32>
    %157 = arith.mulf %155, %156 : vector<8x128xf32>
    %cst_60 = arith.constant -1.45315206 : f32
    %158 = vector.broadcast %cst_60 : f32 to vector<8x128xf32>
    %159 = arith.addf %158, %157 : vector<8x128xf32>
    %160 = arith.mulf %155, %159 : vector<8x128xf32>
    %cst_61 = arith.constant 1.42141378 : f32
    %161 = vector.broadcast %cst_61 : f32 to vector<8x128xf32>
    %162 = arith.addf %161, %160 : vector<8x128xf32>
    %163 = arith.mulf %155, %162 : vector<8x128xf32>
    %cst_62 = arith.constant -0.284496725 : f32
    %164 = vector.broadcast %cst_62 : f32 to vector<8x128xf32>
    %165 = arith.addf %164, %163 : vector<8x128xf32>
    %166 = arith.mulf %155, %165 : vector<8x128xf32>
    %cst_63 = arith.constant 0.254829586 : f32
    %167 = vector.broadcast %cst_63 : f32 to vector<8x128xf32>
    %168 = arith.addf %167, %166 : vector<8x128xf32>
    %169 = arith.mulf %155, %168 : vector<8x128xf32>
    %170 = arith.mulf %149, %149 : vector<8x128xf32>
    %cst_64 = arith.constant 0.000000e+00 : f32
    %171 = vector.broadcast %cst_64 : f32 to vector<8x128xf32>
    %172 = arith.subf %171, %170 : vector<8x128xf32>
    %173 = math.exp %172 : vector<8x128xf32>
    %174 = arith.mulf %169, %173 : vector<8x128xf32>
    %cst_65 = arith.constant 1.000000e+00 : f32
    %175 = vector.broadcast %cst_65 : f32 to vector<8x128xf32>
    %176 = arith.subf %175, %174 : vector<8x128xf32>
    %cst_66 = arith.constant 0.000000e+00 : f32
    %177 = vector.broadcast %cst_66 : f32 to vector<8x128xf32>
    %178 = arith.cmpf oge, %148, %177 : vector<8x128xf32>
    %cst_67 = arith.constant 0.000000e+00 : f32
    %179 = vector.broadcast %cst_67 : f32 to vector<8x128xf32>
    %180 = arith.subf %179, %176 : vector<8x128xf32>
    %181 = arith.select %178, %176, %180 : vector<8x128xi1>, vector<8x128xf32>
    %cst_68 = arith.constant 1.000000e+00 : f32
    %182 = vector.broadcast %cst_68 : f32 to vector<8x128xf32>
    %183 = arith.addf %182, %181 : vector<8x128xf32>
    %184 = arith.mulf %146, %183 : vector<8x128xf32>
    %c0_69 = arith.constant 0 : index
    %c0_70 = arith.constant 0 : index
    %185 = vector.load %arg15[%c0_69, %c0_70] : memref<8x8xbf16, #tpu.memory_space<vmem>>, vector<8x8xbf16>
    %186 = arith.truncf %184 : vector<8x128xf32> to vector<8x128xbf16>
    %cst_71 = arith.constant dense<0.000000e+00> : vector<8x128xf32>
    %187 = tpu.matmul %185, %186, %cst_71 {dimension_numbers = #tpu.dot_dimension_numbers<[1], [0], [0], [1], [0, 0, 1, 1], [], []>} : vector<8x8xbf16>, vector<8x128xbf16>, vector<8x128xf32> -> vector<8x128xf32>
    %c0_72 = arith.constant 0 : index
    %c0_73 = arith.constant 0 : index
    %188 = vector.load %arg16[%c0_72, %c0_73] : memref<8x1xf32, #tpu.memory_space<vmem>>, vector<8x1xf32>
    %189 = vector.broadcast %188 : vector<8x1xf32> to vector<8x128xf32>
    %190 = arith.addf %187, %189 : vector<8x128xf32>
    %191 = arith.addf %114, %190 : vector<8x128xf32>
    %c0_74 = arith.constant 0 : index
    %c0_75 = arith.constant 0 : index
    %c0_76 = arith.constant 0 : index
    %192 = vector.load %arg17[%c0_74, %c0_75, %c0_76] : memref<1x8x128xf32, #tpu.memory_space<vmem>>, vector<1x8x128xf32>
    %193 = vector.shape_cast %192 : vector<1x8x128xf32> to vector<8x128xf32>
    %194 = vector.shape_cast %191 : vector<8x128xf32> to vector<1x8x128xf32>
    tpu.vector_store %arg17[%c0_74, %c0_75, %c0_76], %194 {strides = array<i32>} : memref<1x8x128xf32, #tpu.memory_space<vmem>>, vector<1x8x128xf32>,
    return
  }
  func.func @transform_0(%arg0: i32, %arg1: i32) -> (i32, i32, i32) {
    %c0_i32 = arith.constant 0 : i32
    %c0_i32_0 = arith.constant 0 : i32
    %c0_i32_1 = arith.constant 0 : i32
    return %arg0, %c0_i32, %c0_i32_0 : i32, i32, i32
  }
  func.func @transform_1(%arg0: i32, %arg1: i32) -> (i32, i32) {
    %c0_i32 = arith.constant 0 : i32
    %c0_i32_0 = arith.constant 0 : i32
    %c0_i32_1 = arith.constant 0 : i32
    return %c0_i32, %c0_i32_0 : i32, i32
  }
  func.func @transform_2(%arg0: i32, %arg1: i32) -> (i32, i32) {
    %c0_i32 = arith.constant 0 : i32
    %c0_i32_0 = arith.constant 0 : i32
    %c0_i32_1 = arith.constant 0 : i32
    return %c0_i32, %c0_i32_0 : i32, i32
  }
  func.func @transform_3(%arg0: i32, %arg1: i32) -> (i32, i32) {
    %c0_i32 = arith.constant 0 : i32
    %c0_i32_0 = arith.constant 0 : i32
    %c0_i32_1 = arith.constant 0 : i32
    return %c0_i32, %c0_i32_0 : i32, i32
  }
  func.func @transform_4(%arg0: i32, %arg1: i32) -> (i32, i32) {
    %c0_i32 = arith.constant 0 : i32
    %c0_i32_0 = arith.constant 0 : i32
    %c0_i32_1 = arith.constant 0 : i32
    return %c0_i32, %c0_i32_0 : i32, i32
  }
  func.func @transform_5(%arg0: i32, %arg1: i32) -> (i32, i32) {
    %c0_i32 = arith.constant 0 : i32
    %c0_i32_0 = arith.constant 0 : i32
    %c0_i32_1 = arith.constant 0 : i32
    return %c0_i32, %c0_i32_0 : i32, i32
  }
  func.func @transform_6(%arg0: i32, %arg1: i32) -> (i32, i32) {
    %c0_i32 = arith.constant 0 : i32
    %c0_i32_0 = arith.constant 0 : i32
    %c0_i32_1 = arith.constant 0 : i32
    return %c0_i32, %c0_i32_0 : i32, i32
  }
  func.func @transform_7(%arg0: i32, %arg1: i32) -> (i32, i32) {
    %c0_i32 = arith.constant 0 : i32
    %c0_i32_0 = arith.constant 0 : i32
    %c0_i32_1 = arith.constant 0 : i32
    return %c0_i32, %c0_i32_0 : i32, i32
  }
  func.func @transform_8(%arg0: i32, %arg1: i32) -> (i32, i32) {
    %c0_i32 = arith.constant 0 : i32
    %c0_i32_0 = arith.constant 0 : i32
    %c0_i32_1 = arith.constant 0 : i32
    return %c0_i32, %c0_i32_0 : i32, i32
  }
  func.func @transform_9(%arg0: i32, %arg1: i32) -> (i32, i32) {
    %c0_i32 = arith.constant 0 : i32
    %c0_i32_0 = arith.constant 0 : i32
    %c0_i32_1 = arith.constant 0 : i32
    return %c0_i32, %c0_i32_0 : i32, i32
  }
  func.func @transform_10(%arg0: i32, %arg1: i32) -> (i32, i32) {
    %c0_i32 = arith.constant 0 : i32
    %c0_i32_0 = arith.constant 0 : i32
    %c0_i32_1 = arith.constant 0 : i32
    return %c0_i32, %c0_i32_0 : i32, i32
  }
  func.func @transform_11(%arg0: i32, %arg1: i32) -> (i32, i32) {
    %c0_i32 = arith.constant 0 : i32
    %c0_i32_0 = arith.constant 0 : i32
    %c0_i32_1 = arith.constant 0 : i32
    return %c0_i32, %c0_i32_0 : i32, i32
  }
  func.func @transform_12(%arg0: i32, %arg1: i32) -> (i32, i32) {
    %c0_i32 = arith.constant 0 : i32
    %c0_i32_0 = arith.constant 0 : i32
    %c0_i32_1 = arith.constant 0 : i32
    return %c0_i32, %c0_i32_0 : i32, i32
  }
  func.func @transform_13(%arg0: i32, %arg1: i32) -> (i32, i32) {
    %c0_i32 = arith.constant 0 : i32
    %c0_i32_0 = arith.constant 0 : i32
    %c0_i32_1 = arith.constant 0 : i32
    return %c0_i32, %c0_i32_0 : i32, i32
  }
  func.func @transform_14(%arg0: i32, %arg1: i32) -> (i32, i32) {
    %c0_i32 = arith.constant 0 : i32
    %c0_i32_0 = arith.constant 0 : i32
    %c0_i32_1 = arith.constant 0 : i32
    return %c0_i32, %c0_i32_0 : i32, i32
  }
  func.func @transform_15(%arg0: i32, %arg1: i32) -> (i32, i32, i32) {
    %c0_i32 = arith.constant 0 : i32
    %c0_i32_0 = arith.constant 0 : i32
    return %arg0, %c0_i32, %arg1 : i32, i32, i32
  }
}

</mosaic_0001>

<bundles_post_ra>
// kernel: tpu_custom_call.1
= control target key start
LH: loop header
LB: loop body
LE: loop exit
PB: predicated region body
PF: predicated region fallthrough
CT: control target
= control target key end

     0   :  { %s3596_s0 = inlined_call_operand.hbm [shape: f32[2,8,256], index: 0, kind: input, shape index: {}]   ;;  %s3597_s1 = inlined_call_operand.vmem [shape: f32[8,1], index: 1, kind: input, shape index: {}]   ;;  %s3598_s2 = inlined_call_operand.vmem [shape: f32[8,1], index: 2, kind: input, shape index: {}]   ;;  %s3599_s3 = inlined_call_operand.vmem [shape: bf16[8,8], index: 3, kind: input, shape index: {}]   ;;  %s3600_s4 = inlined_call_operand.vmem [shape: f32[8,1], index: 4, kind: input, shape index: {}]   ;;  %s3601_s5 = inlined_call_operand.vmem [shape: bf16[16,8], index: 5, kind: input, shape index: {}]   ;;  %s3602_s6 = inlined_call_operand.vmem [shape: f32[16,1], index: 6, kind: input, shape index: {}]   ;;  %s3603_s7 = inlined_call_operand.vmem [shape: bf16[8,8], index: 7, kind: input, shape index: {}]   ;;  %s3604_s8 = inlined_call_operand.vmem [shape: f32[8,1], index: 8, kind: input, shape index: {}]   ;;  %s3605_s9 = inlined_call_operand.vmem [shape: f32[8,1], index: 9, kind: input, shape index: {}]   ;;  %s3606_s10 = inlined_call_operand.vmem [shape: f32[8,1], index: 10, kind: input, shape index: {}]   ;;  %s3607_s11 = inlined_call_operand.vmem [shape: bf16[8,8], index: 11, kind: input, shape index: {}]   ;;  %s3608_s12 = inlined_call_operand.vmem [shape: f32[8,1], index: 12, kind: input, shape index: {}]   ;;  %s3609_s13 = inlined_call_operand.vmem [shape: bf16[8,8], index: 13, kind: input, shape index: {}]   ;;  %s3610_s14 = inlined_call_operand.vmem [shape: f32[8,1], index: 14, kind: input, shape index: {}]   ;;  %s3611_s15 = inlined_call_operand.hbm [shape: f32[2,8,256], index: 15, kind: output, shape index: {}]  }
   0x1   :  { %3620 = sst [smem:[#allocation16_spill]] %s3596_s0 }
   0x2   :  { %3621 = sst [smem:[#allocation17_spill]] %s3597_s1 }
   0x3   :  { %3622 = sst [smem:[#allocation18_spill]] %s3598_s2 }
   0x4   :  { %3623 = sst [smem:[#allocation19_spill]] %s3603_s7 }
   0x5   :  { %3624 = sst [smem:[#allocation20_spill]] %s3605_s9 }
   0x6   :  { %3625 = sst [smem:[#allocation21_spill]] %s3606_s10 }
   0x7   :  { %3626 = sst [smem:[#allocation22_spill]] %s3607_s11 }
   0x8   :  { %3627 = sst [smem:[#allocation23_spill]] %s3608_s12 }
   0x9   :  { %3628 = sst [smem:[#allocation24_spill]] %s3609_s13 }
   0xa   :  { %3629 = sst [smem:[#allocation25_spill]] %s3610_s14 }
   0xb   :  { %3630 = sst [smem:[#allocation26_spill]] %s3611_s15 }
   0xc   :  { %20 = vsyncpa [#allocation3], 0 }
   0xd   :  { %22 = vsyncpa [#allocation3 + $0x1], 0 }
   0xe   :  { %23 = vsyncpa [#allocation4], 0 }
   0xf   :  { %25 = vsyncpa [#allocation4 + $0x1], 0  ;;  %s2733_s18 = smov 0   ;;  %s2735_s19 = smov 0  }
  0x10   :  { %s2737_s20 = smov 0   ;;  %s2739_s21 = smov 0  }
  0x11   :  { %s2741_s22 = smov 0   ;;  %s2743_s23 = smov 0  }
  0x12   :  { %s2745_s24 = smov 0   ;;  %s2747_s25 = smov 0  }
  0x13   :  { %s2749_s26 = smov 0   ;;  %s2751_s27 = smov 0  }
  0x14   :  { %s2753_s28 = smov 0  }
  0x15 LB: > { %3631 = sst [smem:[#allocation8_spill]] %s2629_s23  ;;  %s2085_s29 = sadd.s32 4294967295, %s2649_s28   ;;  %s2649_s28 = sphi %s2753_s28, %s31_s28   ;;  %s2645_s27 = sphi %s2751_s27, %s3662_s27   ;;  %s2641_s26 = sphi %s2749_s26, %s3668_s26   ;;  %s2637_s25 = sphi %s2747_s25, %s3660_s25   ;;  %s2633_s24 = sphi %s2745_s24, %s3659_s24   ;;  %s2629_s23 = sphi %s2743_s23, %s3658_s23   ;;  %s2625_s22 = sphi %s2741_s22, %s3667_s22   ;;  %s2621_s21 = sphi %s2739_s21, %s3666_s21   ;;  %s2617_s20 = sphi %s2737_s20, %s3665_s20   ;;  %s2613_s19 = sphi %s2735_s19, %s3664_s19   ;;  %s2609_s18 = sphi %s2733_s18, %s3663_s18  }
  0x16   : > { %3632 = sst [smem:[#allocation9_spill]] %s2637_s25  ;;  %s2086_s30 = sadd.s32 4294967294, %s2649_s28  }
  0x17   : > { %3633 = sst [smem:[#allocation10_spill]] %s2641_s26  ;;  %s40_s16 = sadd.s32 1, %s2641_s26 }
  0x18   : > { %3634 = sst [smem:[#allocation11_spill]] %s2645_s27  ;;  %s43_s17 = sadd.s32 1, %s2645_s27 }
  0x19   : > { %p41_p0 = scmp.ge.s32.totalorder %s40_s16, 2  ;;  %s50_s15 = sadd.s32 1, %s2629_s23 }
  0x1a   : > { %p57_p1 = scmp.ne.s32.totalorder %s2629_s23, %s2625_s22  ;;  %p58_p2 = scmp.eq.s32.totalorder %s2649_s28, 0 }
  0x1b   : > { %s3670_s16 = smov (%p41_p0, %s40_s16), 0  ;;  %s3672_s17 = smov (!%p41_p0, %s43_s17), %s2645_s27 }
  0x1c   : > { %3635 = sst [smem:[#allocation12_spill]] %s3670_s16  ;;  %p2797_p3 = por %p58_p2, %p57_p1 }
  0x1d   : > { %p63_p4 = scmp.ne.s32.totalorder %s2625_s22, %s2621_s21  ;;  %p45_p5 = scmp.ge.s32.totalorder %s3672_s17, 2 }
  0x1e   : > { %p64_p6 = scmp.eq.s32.totalorder %s2085_s29, 0  ;;  %s368_s25 = ssub.s32 %s2641_s26, %s3670_s16 }
  0x1f   : > { %s372_s11 = sadd.s32 1, %s2617_s20  ;;  %s3674_s17 = smov (%p45_p5, %s3672_s17), 0 }
  0x20   : > { %3637 = sst [smem:[#allocation13_spill]] %s3674_s17  ;;  %p2807_p7 = por %p64_p6, %p63_p4 }
  0x21   : > { %p382_p8 = scmp.ne.s32.totalorder %s2617_s20, %s2613_s19  ;;  %s47_s10 = ssub.s32 %s2645_s27, %s3674_s17 }
  0x22   : > { %p383_p9 = scmp.eq.s32.totalorder %s2085_s29, 3  ;;  %p48_p10 = scmp.eq.s32.totalorder %s47_s10, 0 }
  0x23   : > { %s369_s21 = sor.u32 %s368_s25, %s47_s10  ;;  %p388_p13 = scmp.ne.s32.totalorder %s2613_s19, %s2609_s18 }
  0x24   : > { %p370_p11 = scmp.eq.s32.totalorder %s369_s21, 0  ;;  %p2815_p12 = por %p383_p9, %p382_p8 }
  0x25   : > { %s2820_s16 = scalar_select %p48_p10, %s2629_s23, %s50_s15  }
  0x26   : > { %s3639_s14 = scalar_select %p2815_p12, 1, 0 }
  0x27   : > { %3641 = sst [smem:[#allocation15_spill]] %s2820_s16  ;;  %p389_p0 = scmp.eq.s32.totalorder %s2086_s30, 3 }
  0x28   : > { %3640 = sst [smem:[#allocation14_spill]] %s3639_s14  ;;  %p2158_p1 = scmp.lt.s32.totalorder %s2649_s28, 4 }
  0x29   : > { %s2823_s26 = scalar_select %p370_p11, %s2617_s20, %s372_s11  }
  0x2a   : > { %p2828_p2 = por %p389_p0, %p388_p13  ;;  %s451_s10 = sand.u32 1, %s2629_s23  }
  0x2b   : > { %s2089_s25 = sshll.u32 %s451_s10, 4  ;;  %s2144_s29 = sshll.u32 %s2645_s27, 4 }
  0x2c   : > { %s3643_s0 = sld [smem:[#allocation16_spill]]  ;;  %s455_s15 = scalar_lea.vmem [#allocation2], %s2089_s25 }
  0x2d   : > { %s464_s16 = sshll.u32 %s455_s15, 4  ;;  %p2151_p4 = pnand %p2158_p1, %p2797_p3  ;;  %s465_s16 = int_to_ptr.vmem [resolvable:$true] %s464_s16 }
  0x2e   : > { %p2092_p5 = scmp.ge.s32.totalorder %s2649_s28, 1  ;;  %p469_p6 = scmp.lt.s32.totalorder %s2649_s28, 5 }
  0x2f   : > { %s452_s11 = scalar_lea.sflag [#allocation3], %s451_s10 }
  0x30   : > { %p470_p8 = pnand %p2092_p5, %p469_p6 }
  0x31   : > { %s475_s30 = sand.u32 (!%p470_p8), 1, %s2625_s22  }
  0x32   : > { %s460_s14 = scalar_lea.hbm %s3643_s0, %s2144_s29  ;;  %473 = sbr.rel (%p470_p8) target bundleno = 2083 (0x823), region = 80 }
  0x33   : > { %s462_s9 = sshll.u32 %s460_s14, 4  ;;  %s2093_s27 = sshll.u32 (!%p470_p8), %s475_s30, 4  ;;  %s463_s9 = int_to_ptr.hbm [resolvable:$true] %s462_s9 }
  0x34   : > { %2153 = dma.hbm_to_vmem [thread:$0]  (!%p2151_p4), %s463_s9, 256, %s465_s16, %s452_s11  }
  0x35   : > { %s476_s23 = scalar_lea.sflag (!%p470_p8), [#allocation3], %s475_s30  ;;  %s479_s12 = scalar_lea.vmem (!%p470_p8), [#allocation2], %s2093_s27 }
  0x37   : > { %2600 = dma.done.wait (%p2807_p7), %s476_s23, 256  }
  0x38   : > { %2602 = vsyncadd (%p2807_p7), %s476_s23, 4294967040  ;;  %v2651_v0 = vmov 0   ;;  %s3644_s1 = sld [smem:[#allocation17_spill]]  ;;  %v2652_v3 = vmov 8.0   ;;  %s2095_s7 = sshll.u32 %s2633_s24, 7  ;;  %v534_v8 = vld [vmem:[%s479_s12] sm:$0xff] }
  0x39   : > { %2250 = vset.pattern.permute.xlu0 %v2651_v0  ;;  %2251 = vset.pattern.permute.xlu1 %v2651_v0  ;;  %s3645_s2 = sld [smem:[#allocation18_spill]]  ;;  %2290 = vrcp.f32 %v2652_v3  ;;  %s529_s23 = sshra.s32 %s2095_s7, 7  ;;  %v535_v9 = vld [vmem:[%s479_s12 + $0x8] sm:$0xff]  ;;  %v585_v11 = vrot.slane %v534_v8, 4  ;;  %vm657_vm10 = vcmask 1043456   ;;  %vm653_vm11 = vcmask 64512  }
  0x3a   : > { %s2096_s27 = sshll.u32 %s529_s23, 3  ;;  %v591_v12 = vrot.slane %v535_v9, 4  ;;  %vm778_vm12 = vcmask 1041408   ;;  %vm753_vm13 = vcmask 31744   ;;  %s3646_s25 = sld [smem:[#allocation20_spill]] }
  0x3b   : > { %s2855_s10 = scalar_lea.vmem %s479_s12, %s2096_s27 [#allocation2]  ;;  %v586_v15 = vadd.f32 %v585_v11, %v534_v8  ;;  %s3647_s15 = sld [smem:[#allocation23_spill]] }
  0x3c   : > { %v533_v7 = vld [vmem:[%s2855_s10] sm:$0xff]  ;;  %v592_v16 = vadd.f32 %v591_v12, %v535_v9  ;;  %s3648_s12 = sld [smem:[#allocation25_spill]] }
  0x3d   : > { %v538_v10 = vrot.slane %v533_v7, 4  ;;  %v587_v18 = vrot.slane %v586_v15, 2  ;;  %s3649_s14 = sld [smem:[#allocation21_spill]] }
  0x3e   : > { %v536_v1 = vld [vmem:[%s3644_s1] sm:$0xff]  ;;  %v593_v19 = vrot.slane %v592_v16, 2  ;;  %s3650_s23 = sld [smem:[#allocation19_spill]] }
  0x3f   : > { %575 = vperm.xlu0 %2250, %v536_v1   ;;  %v537_v2 = vld [vmem:[%s3645_s2] sm:$0xff]  ;;  %v2291_v4 = vpop.eup %2290  ;;  %v539_v14 = vadd.f32 %v538_v10, %v533_v7  ;;  %v588_v22 = vadd.f32 %v587_v18, %v586_v15  ;;  %s3652_s29 = sld [smem:[#allocation9_spill]] }
  0x40   : > { %v545_v5 = vmul.f32 8.0, %v2291_v4  ;;  %vm549_vm0 = vweird.f32 %v2291_v4  ;;  %v594_v23 = vadd.f32 %v593_v19, %v592_v16  ;;  %v647_v10 = vld [vmem:[%s3600_s4] sm:$0xff]  ;;  %s3653_s11 = sld [smem:[#allocation24_spill]] }
  0x41   : > { %v540_v17 = vrot.slane %v539_v14, 2  ;;  %v589_v25 = vrot.slane %v588_v22, 1  ;;  %650 = vperm.xlu1 %2251, %v647_v10  }
  0x42   : > { %v546_v6 = vsub.f32 1.0, %v545_v5  ;;  %v595_v26 = vrot.slane %v594_v23, 1 }
  0x43   : > { %v541_v21 = vadd.f32 %v540_v17, %v539_v14  ;;  %v590_v29 = vadd.f32 %v589_v25, %v588_v22  ;;  %v678_v17 = vld [vmem:[%s3602_s6] sm:$0xff] }
  0x44   : > { %v547_v13 = vmul.f32 %v2291_v4, %v546_v6  ;;  %v596_v30 = vadd.f32 %v595_v26, %v594_v23 }
  0x45   : > { %v542_v24 = vrot.slane %v541_v21, 1  ;;  %s2140_s30 = sshll.u32 %s3652_s29, 1 }
  0x46   : > { %v548_v20 = vadd.f32 %v2291_v4, %v547_v13  ;;  %s1993_s9 = sadd.s32 %s2633_s24, %s2140_s30 }
  0x47   : > { %581 = vperm.xlu0 %2250, %v537_v2   ;;  %v543_v28 = vadd.f32 %v542_v24, %v541_v21 }
  0x48   : > { %v2858_v27 = vsel %vm549_vm0, %v2291_v4, %v548_v20 }
  0x49   : > { %v551_v31 = vmul.f32 %v2858_v27, %v543_v28  ;;  %v597_v32 = vmul.f32 %v590_v29, %v2858_v27  ;;  %v598_v33 = vmul.f32 %v596_v30, %v2858_v27  ;;  %682 = vperm.xlu1 %2251, %v678_v17  }
  0x4b   : > { %v2863_v34 = vsub.f32 %v533_v7, %v551_v31  ;;  %v2865_v35 = vsub.f32 %v534_v8, %v597_v32  ;;  %v2867_v36 = vsub.f32 %v535_v9, %v598_v33 }
  0x4d   : > { %v553_v37 = vmul.f32 %v2863_v34, %v2863_v34  ;;  %v601_v38 = vmul.f32 %v2865_v35, %v2865_v35  ;;  %v602_v39 = vmul.f32 %v2867_v36, %v2867_v36 }
  0x4f   : > { %v554_v40 = vrot.slane %v553_v37, 4  ;;  %v603_v41 = vrot.slane %v601_v38, 4  ;;  %v609_v42 = vrot.slane %v602_v39, 4 }
  0x51   : > { %v555_v43 = vadd.f32 %v554_v40, %v553_v37  ;;  %v604_v44 = vadd.f32 %v603_v41, %v601_v38  ;;  %v610_v45 = vadd.f32 %v609_v42, %v602_v39 }
  0x53   : > { %v556_v46 = vrot.slane %v555_v43, 2  ;;  %v605_v47 = vrot.slane %v604_v44, 2  ;;  %v611_v48 = vrot.slane %v610_v45, 2 }
  0x55   : > { %v557_v49 = vadd.f32 %v556_v46, %v555_v43  ;;  %v606_v50 = vadd.f32 %v605_v47, %v604_v44  ;;  %v612_v51 = vadd.f32 %v611_v48, %v610_v45 }
  0x57   : > { %v558_v52 = vrot.slane %v557_v49, 1  ;;  %v607_v53 = vrot.slane %v606_v50, 1  ;;  %v613_v54 = vrot.slane %v612_v51, 1 }
  0x59   : > { %v559_v55 = vadd.f32 %v558_v52, %v557_v49  ;;  %v608_v56 = vadd.f32 %v607_v53, %v606_v50  ;;  %v614_v57 = vadd.f32 %v613_v54, %v612_v51 }
  0x5b   : > { %v560_v58 = vmul.f32 %v559_v55, %v2858_v27  ;;  %v615_v59 = vmul.f32 %v608_v56, %v2858_v27  ;;  %v616_v60 = vmul.f32 %v614_v57, %v2858_v27 }
  0x5d   : > { %v561_v61 = vadd.f32 1e-05, %v560_v58  ;;  %v617_v62 = vadd.f32 1e-05, %v615_v59  ;;  %v618_v63 = vadd.f32 1e-05, %v616_v60 }
  0x5f   : > { %2292 = vrsqrt.f32 %v561_v61  ;;  %vm568_vm1 = vweird.f32 %v561_v61  ;;  %vm625_vm3 = vweird.f32 %v617_v62  ;;  %vm635_vm5 = vweird.f32 %v618_v63 }
  0x60   : > { %2294 = vrsqrt.f32 %v617_v62 }
  0x61   : > { %2296 = vrsqrt.f32 %v618_v63 }
  0x65   : > { %v2293_v1 = vpop.eup %2292 }
  0x66   : > { %v2295_v2 = vpop.eup %2294  ;;  %v563_v4 = vmul.f32 %v2293_v1, %v561_v61  ;;  %vm569_vm2 = vweird.f32 %v2293_v1 }
  0x67   : > { %v2297_v3 = vpop.eup %2296  ;;  %v620_v5 = vmul.f32 %v2295_v2, %v617_v62  ;;  %vm626_vm4 = vweird.f32 %v2295_v2  ;;  %vm570_vm7 = vmor %vm568_vm1, %vm569_vm2 }
  0x68   : > { %v630_v6 = vmul.f32 %v2297_v3, %v618_v63  ;;  %v564_v7 = vmul.f32 %v2293_v1, %v563_v4  ;;  %vm636_vm6 = vweird.f32 %v2297_v3  ;;  %vm627_vm8 = vmor %vm625_vm3, %vm626_vm4 }
  0x69   : > { %v621_v8 = vmul.f32 %v2295_v2, %v620_v5  ;;  %vm637_vm9 = vmor %vm635_vm5, %vm636_vm6 }
  0x6a   : > { %v631_v9 = vmul.f32 %v2297_v3, %v630_v6  ;;  %v565_v11 = vmul.f32 0.5, %v564_v7 }
  0x6b   : > { %v622_v12 = vmul.f32 0.5, %v621_v8 }
  0x6c   : > { %v632_v13 = vmul.f32 0.5, %v631_v9  ;;  %v566_v14 = vsub.f32 1.5, %v565_v11 }
  0x6d   : > { %v623_v15 = vsub.f32 1.5, %v622_v12 }
  0x6e   : > { %v633_v16 = vsub.f32 1.5, %v632_v13  ;;  %v567_v18 = vmul.f32 %v2293_v1, %v566_v14 }
  0x6f   : > { %v624_v19 = vmul.f32 %v2295_v2, %v623_v15 }
  0x70   : > { %v634_v20 = vmul.f32 %v2297_v3, %v633_v16  ;;  %v571_v22 = vsel %vm570_vm7, %v2293_v1, %v567_v18 }
  0x71   : > { %v628_v23 = vsel %vm627_vm8, %v2295_v2, %v624_v19  ;;  %v572_v25 = vmul.f32 %v571_v22, %v2863_v34 }
  0x72   : > { %v638_v24 = vsel %vm637_vm9, %v2297_v3, %v634_v20  ;;  %v639_v26 = vmul.f32 %v628_v23, %v2865_v35  ;;  %v2145_v35 = vld [vmem:[%s3601_s5] sm:$0xff] }
  0x73   : > { %v640_v28 = vmul.f32 %v638_v24, %v2867_v36  ;;  %v645_v36 = vld [vmem:[%s3599_s3] sm:$0xf] }
  0xb1   : > { %v576_v21 = vpop.permute.xlu0 %575 }
  0xb2   : > { %v578_v29 = vmul.f32 %v576_v21, %v572_v25  ;;  %v641_v30 = vmul.f32 %v639_v26, %v576_v21  ;;  %v642_v31 = vmul.f32 %v640_v28, %v576_v21 }
  0xb3   : > { %v651_v44 = vpop.permute.xlu1 %650 }
  0xb9   : > { %v582_v32 = vpop.permute.xlu0 %581 }
  0xba   : > { %v584_v33 = vadd.f32 %v582_v32, %v578_v29  ;;  %v643_v37 = vadd.f32 %v641_v30, %v582_v32  ;;  %v644_v38 = vadd.f32 %v642_v31, %v582_v32 }
  0xbb   : > { %v683_v45 = vpop.permute.xlu1 %682 }
  0xbc   : > { %v646_v39 = vpack.c.bf16 %v584_v33, %v584_v33  ;;  %v676_v40 = vpack.c.bf16 %v643_v37, %v643_v37  ;;  %v677_v41 = vpack.c.bf16 %v644_v38, %v644_v38 }
  0xbe   : > { %v659_v42 = vsel %vm657_vm10, %v646_v39, 0  ;;  %v699_v43 = vsel %vm657_vm10, %v676_v40, 0  ;;  %v702_v34 = vsel %vm657_vm10, %v677_v41, 0 }
  0xbf   : > { %668 = vmatpush.bf16.msra.mxu0 %v659_v42  ;;  %711 = vmatpush.bf16.msra.mxu1 %v699_v43 }
  0xc0   : > { %725 = vmatpush.bf16.msra.mxu2 %v702_v34 }
  0xc2   : > { %2097 = vmatmul.msk.bf16.vlgmr.msra.gmra.mxu0 %vm653_vm11, %v645_v36  ;;  %2102 = vmatmul.msk.bf16.vlgmr.msra.gmra.mxu1 %vm653_vm11, %v2145_v35 }
  0xc3   : > { %2103 = vmatmul.msk.bf16.vlgmr.msra.gmra.mxu2 %vm653_vm11, %v2145_v35 }
 0x13f   : > { %v670_v46 = vpop.f32.mrf.mxu0  ;;  %v713_v47 = vpop.f32.mrf.mxu1 }
 0x140   : > { %v671_v48 = vadd.f32 %v670_v46, %v651_v44  ;;  %v714_v49 = vadd.f32 %v713_v47, %v683_v45 }
 0x142   : > { %v732_v50 = vpack.c.bf16 %v671_v48, %v671_v48  ;;  %v733_v51 = vpack.c.bf16 %v714_v49, %v714_v49 }
 0x144   : > { %737 = vxpose.xlu2.c.b16.start.end [1/1] (short) %v732_v50, 128  ;;  %v780_v52 = vsel %vm778_vm12, %v733_v51, 0  ;;  %v1290_v53 = vrot.slane %v733_v51, 2  ;;  %v1270_v62 = vrot.slane %v732_v50, 2 }
 0x145   : > { %792 = vmatpush.bf16.msra.mxu3 %v780_v52 }
 0x146   : > { %v727_v54 = vpop.f32.mrf.mxu2  ;;  %v1317_v55 = vsel %vm778_vm12, %v1290_v53, 0 }
 0x147   : > { %v728_v56 = vadd.f32 %v727_v54, %v683_v45  ;;  %v672_v57 = vpop.f32.mrf.mxu0 }
 0x149   : > { %1329 = vmatpush.bf16.msrb.mxu3 %v1317_v55  ;;  %v734_v58 = vpack.c.bf16 %v728_v56, %v728_v56 }
 0x14b   : > { %v1291_v59 = vrot.slane %v734_v58, 2  ;;  %v783_v60 = vsel %vm778_vm12, %v734_v58, 0 }
 0x14c   : > { %841 = vmatpush.bf16.msrb.mxu0 %v783_v60 }
 0x14d   : > { %v1320_v61 = vsel %vm778_vm12, %v1291_v59, 0 }
 0x150   : > { %1378 = vmatpush.bf16.msra.mxu0 %v1320_v61 }
 0x1c4   : > { %1272 = vxpose.xlu2.c.b16.start.end [1/1] (short) %v1270_v62, 128 }
 0x1e5   : > { %v745_v63 = vpop.trf.xlu2 }
 0x1e6   : > { %2104 = vmatmul.msk.bf16.vlgmr.msra.gmra.mxu3 %vm753_vm13, %v745_v63  ;;  %2112 = vmatmul.msk.bf16.vlgmr.msrb.gmra.mxu0 %vm753_vm13, %v745_v63 }
 0x1f5   : > { %v746_v1 = vpop.trf.xlu2 }
 0x1f6   : > { %2105 = vmatmul.msk.bf16.gmra.mxu3 %vm753_vm13, %v746_v1  ;;  %2113 = vmatmul.msk.bf16.gmra.mxu0 %vm753_vm13, %v746_v1 }
 0x205   : > { %v747_v2 = vpop.trf.xlu2 }
 0x206   : > { %2106 = vmatmul.msk.bf16.gmra.mxu3 %vm753_vm13, %v747_v2  ;;  %2114 = vmatmul.msk.bf16.gmra.mxu0 %vm753_vm13, %v747_v2 }
 0x215   : > { %v748_v3 = vpop.trf.xlu2 }
 0x216   : > { %2107 = vmatmul.msk.bf16.gmra.mxu3 %vm753_vm13, %v748_v3  ;;  %2115 = vmatmul.msk.bf16.gmra.mxu0 %vm753_vm13, %v748_v3 }
 0x225   : > { %v749_v4 = vpop.trf.xlu2 }
 0x226   : > { %2108 = vmatmul.msk.bf16.gmra.mxu3 %vm753_vm13, %v749_v4  ;;  %2116 = vmatmul.msk.bf16.gmra.mxu0 %vm753_vm13, %v749_v4 }
 0x227   : > { %2289 = vset.pattern.permute.xlu2 %v2651_v0 }
 0x235   : > { %v750_v5 = vpop.trf.xlu2 }
 0x236   : > { %2109 = vmatmul.msk.bf16.gmra.mxu3 %vm753_vm13, %v750_v5  ;;  %2117 = vmatmul.msk.bf16.gmra.mxu0 %vm753_vm13, %v750_v5 }
 0x245   : > { %v751_v10 = vpop.trf.xlu2 }
 0x246   : > { %2110 = vmatmul.msk.bf16.gmra.mxu3 %vm753_vm13, %v751_v10  ;;  %2118 = vmatmul.msk.bf16.gmra.mxu0 %vm753_vm13, %v751_v10 }
 0x255   : > { %v752_v16 = vpop.trf.xlu2 }
 0x256   : > { %2111 = vmatmul.msk.bf16.gmra.mxu3 %vm753_vm13, %v752_v16  ;;  %2119 = vmatmul.msk.bf16.gmra.mxu0 %vm753_vm13, %v752_v16 }
 0x263   : > { %v843_v6 = vpop.f32.mrf.mxu0 }
 0x265   : > { %v1280_v26 = vpop.trf.xlu2 }
 0x266   : > { %2120 = vmatmul.msk.bf16.vlgmr.msrb.gmra.mxu3 %vm753_vm13, %v1280_v26  ;;  %2128 = vmatmul.msk.bf16.vlgmr.msra.gmra.mxu0 %vm753_vm13, %v1280_v26 }
 0x269   : > { %v794_v7 = vpop.f32.mrf.mxu3 }
 0x26a   : > { %v883_v8 = vmax.f32 %v794_v7, %v843_v6 }
 0x26b   : > { %v845_v9 = vpop.f32.mrf.mxu0 }
 0x26c   : > { %884 = vmax.xlane.f32.xlu0 %v883_v8 }
 0x271   : > { %v796_v11 = vpop.f32.mrf.mxu3 }
 0x272   : > { %v886_v12 = vmax.f32 %v796_v11, %v845_v9 }
 0x273   : > { %v2918_v13 = vpop.f32.mrf.mxu0 }
 0x274   : > { %887 = vmax.xlane.f32.xlu1 %v886_v12 }
 0x275   : > { %v1281_v47 = vpop.trf.xlu2 }
 0x276   : > { %2121 = vmatmul.msk.bf16.gmra.mxu3 %vm753_vm13, %v1281_v47  ;;  %2129 = vmatmul.msk.bf16.gmra.mxu0 %vm753_vm13, %v1281_v47 }
 0x279   : > { %v799_v0 = vpop.f32.mrf.mxu3 }
 0x27a   : > { %v889_v14 = vmax.f32 %v799_v0, %v2918_v13 }
 0x27b   : > { %v2921_v15 = vpop.f32.mrf.mxu0 }
 0x27c   : > { %890 = vmax.xlane.f32.xlu0 %v889_v14 }
 0x281   : > { %v2925_v17 = vpop.f32.mrf.mxu3 }
 0x282   : > { %v892_v18 = vmax.f32 %v2925_v17, %v2921_v15 }
 0x283   : > { %v2929_v19 = vpop.f32.mrf.mxu0 }
 0x284   : > { %893 = vmax.xlane.f32.xlu1 %v892_v18 }
 0x285   : > { %v1282_v61 = vpop.trf.xlu2 }
 0x286   : > { %2122 = vmatmul.msk.bf16.gmra.mxu3 %vm753_vm13, %v1282_v61  ;;  %2130 = vmatmul.msk.bf16.gmra.mxu0 %vm753_vm13, %v1282_v61 }
 0x289   : > { %v2931_v20 = vpop.f32.mrf.mxu3 }
 0x28a   : > { %v895_v21 = vmax.f32 %v2931_v20, %v2929_v19 }
 0x28b   : > { %v2935_v22 = vpop.f32.mrf.mxu0 }
 0x28c   : > { %896 = vmax.xlane.f32.xlu0 %v895_v21 }
 0x291   : > { %v2937_v23 = vpop.f32.mrf.mxu3 }
 0x292   : > { %v898_v24 = vmax.f32 %v2937_v23, %v2935_v22 }
 0x293   : > { %v2941_v25 = vpop.f32.mrf.mxu0 }
 0x294   : > { %899 = vmax.xlane.f32.xlu1 %v898_v24 }
 0x295   : > { %v1283_v18 = vpop.trf.xlu2 }
 0x296   : > { %2123 = vmatmul.msk.bf16.gmra.mxu3 %vm753_vm13, %v1283_v18  ;;  %2131 = vmatmul.msk.bf16.gmra.mxu0 %vm753_vm13, %v1283_v18 }
 0x299   : > { %v2945_v28 = vpop.f32.mrf.mxu3 }
 0x29a   : > { %v901_v29 = vmax.f32 %v2945_v28, %v2941_v25 }
 0x29b   : > { %v2949_v30 = vpop.f32.mrf.mxu0 }
 0x29c   : > { %902 = vmax.xlane.f32.xlu0 %v901_v29 }
 0x2a1   : > { %v2951_v31 = vpop.f32.mrf.mxu3 }
 0x2a2   : > { %v904_v32 = vmax.f32 %v2951_v31, %v2949_v30 }
 0x2a3   : > { %v2955_v33 = vpop.f32.mrf.mxu0 }
 0x2a4   : > { %905 = vmax.xlane.f32.xlu1 %v904_v32 }
 0x2a9   : > { %v2957_v37 = vpop.f32.mrf.mxu3 }
 0x2aa   : > { %v907_v38 = vmax.f32 %v2957_v37, %v2955_v33 }
 0x2ab   : > { %v2961_v39 = vpop.f32.mrf.mxu0 }
 0x2ac   : > { %908 = vmax.xlane.f32.xlu1 %v907_v38 }
 0x2b1   : > { %v2963_v40 = vpop.f32.mrf.mxu3 }
 0x2b2   : > { %v910_v41 = vmax.f32 %v2963_v40, %v2961_v39 }
 0x2b3   : > { %v2992_v3 = vpop.f32.mrf.mxu0 }
 0x2b4   : > { %911 = vmax.xlane.f32.xlu1 %v910_v41 }
 0x2b9   : > { %v2988_v1 = vpop.f32.mrf.mxu3 }
 0x2ba   : > { %v913_v8 = vmax.f32 %v2988_v1, %v2992_v3 }
 0x2df   : > { %v885_v42 = vpop.xlane.xlu0 %884 }
 0x2e0   : > { %v931_v43 = vsub.f32 %v794_v7, %v885_v42  ;;  %v932_v34 = vsub.f32 %v843_v6, %v885_v42  ;;  %v679_v6 = vld [vmem:[%s3602_s6 + $0x8] sm:$0xff] }
 0x2e2   : > { %v963_v35 = vmul.f32 1.442695, %v931_v43  ;;  %v965_v36 = vmul.f32 1.442695, %v932_v34 }
 0x2e4   : > { %2298 = vpow2.f32 %v963_v35 }
 0x2e5   : > { %2300 = vpow2.f32 %v965_v36 }
 0x2e7   : > { %v888_v44 = vpop.xlane.xlu1 %887 }
 0x2e8   : > { %v933_v45 = vsub.f32 %v796_v11, %v888_v44  ;;  %v934_v46 = vsub.f32 %v845_v9, %v888_v44  ;;  %v3001_v11 = vpop.f32.mrf.mxu3 }
 0x2ea   : > { %v2969_v48 = vpop.eup %2298  ;;  %v967_v49 = vmul.f32 1.442695, %v933_v45  ;;  %v969_v50 = vmul.f32 1.442695, %v934_v46 }
 0x2eb   : > { %v2971_v51 = vpop.eup %2300 }
 0x2ec   : > { %2302 = vpow2.f32 %v967_v49  ;;  %v1027_v52 = vadd.f32 %v2971_v51, %v2969_v48 }
 0x2ed   : > { %2304 = vpow2.f32 %v969_v50 }
 0x2ee   : > { %1028 = vadd.xlane.f32.xlu0 %v1027_v52 }
 0x2ef   : > { %v891_v53 = vpop.xlane.xlu0 %890 }
 0x2f0   : > { %v935_v54 = vsub.f32 %v799_v0, %v891_v53  ;;  %v936_v55 = vsub.f32 %v2918_v13, %v891_v53  ;;  %v3003_v13 = vpop.f32.mrf.mxu0  ;;  %v3011_v24 = vpop.f32.mrf.mxu3 }
 0x2f1   : > { %v916_v21 = vmax.f32 %v3001_v11, %v3003_v13  ;;  %v1284_v53 = vpop.trf.xlu2 }
 0x2f2   : > { %v2976_v56 = vpop.eup %2302  ;;  %v971_v57 = vmul.f32 1.442695, %v935_v54  ;;  %v973_v58 = vmul.f32 1.442695, %v936_v55  ;;  %2124 = vmatmul.msk.bf16.gmra.mxu3 %vm753_vm13, %v1284_v53  ;;  %2132 = vmatmul.msk.bf16.gmra.mxu0 %vm753_vm13, %v1284_v53 }
 0x2f3   : > { %v2978_v59 = vpop.eup %2304 }
 0x2f4   : > { %2306 = vpow2.f32 %v971_v57  ;;  %v1030_v60 = vadd.f32 %v2978_v59, %v2976_v56 }
 0x2f5   : > { %2308 = vpow2.f32 %v973_v58 }
 0x2f6   : > { %1031 = vadd.xlane.f32.xlu1 %v1030_v60 }
 0x2f7   : > { %v894_v4 = vpop.xlane.xlu1 %893 }
 0x2f8   : > { %v937_v43 = vsub.f32 %v2925_v17, %v894_v4  ;;  %v938_v34 = vsub.f32 %v2921_v15, %v894_v4  ;;  %v3029_v35 = vpop.f32.mrf.mxu3 }
 0x2fa   : > { %v2984_v62 = vpop.eup %2306  ;;  %v975_v47 = vmul.f32 1.442695, %v937_v43  ;;  %v977_v49 = vmul.f32 1.442695, %v938_v34 }
 0x2fb   : > { %v2986_v63 = vpop.eup %2308 }
 0x2fc   : > { %v1033_v2 = vadd.f32 %v2986_v63, %v2984_v62 }
 0x2fe   : > { %1034 = vadd.xlane.f32.xlu1 %v1033_v2 }
 0x2ff   : > { %v897_v5 = vpop.xlane.xlu0 %896 }
 0x300   : > { %v939_v7 = vsub.f32 %v2931_v20, %v897_v5  ;;  %v940_v9 = vsub.f32 %v2929_v19, %v897_v5 }
 0x302   : > { %687 = vperm.xlu0 %2250, %v679_v6   ;;  %v979_v10 = vmul.f32 1.442695, %v939_v7  ;;  %v981_v12 = vmul.f32 1.442695, %v940_v9 }
 0x304   : > { %2310 = vpow2.f32 %v979_v10 }
 0x305   : > { %2312 = vpow2.f32 %v981_v12 }
 0x306   : > { %914 = vmax.xlane.f32.xlu1 %v913_v8 }
 0x307   : > { %v900_v0 = vpop.xlane.xlu1 %899 }
 0x308   : > { %v941_v14 = vsub.f32 %v2937_v23, %v900_v0  ;;  %v942_v16 = vsub.f32 %v2935_v22, %v900_v0  ;;  %v3013_v23 = vpop.f32.mrf.mxu0 }
 0x309   : > { %v919_v45 = vmax.f32 %v3011_v24, %v3013_v23 }
 0x30a   : > { %v983_v20 = vmul.f32 1.442695, %v941_v14  ;;  %v985_v19 = vmul.f32 1.442695, %v942_v16  ;;  %v3015_v22 = vpop.eup %2310 }
 0x30b   : > { %v3017_v26 = vpop.eup %2312 }
 0x30c   : > { %2314 = vpow2.f32 %v983_v20  ;;  %v1039_v38 = vadd.f32 %v3017_v26, %v3015_v22 }
 0x30d   : > { %2316 = vpow2.f32 %v985_v19 }
 0x30e   : > { %917 = vmax.xlane.f32.xlu1 %v916_v21  ;;  %2318 = vpow2.f32 %v975_v47 }
 0x30f   : > { %v903_v50 = vpop.xlane.xlu0 %902  ;;  %2320 = vpow2.f32 %v977_v49 }
 0x310   : > { %v3031_v36 = vpop.f32.mrf.mxu0  ;;  %v943_v15 = vsub.f32 %v2945_v28, %v903_v50 }
 0x311   : > { %v922_v58 = vmax.f32 %v3029_v35, %v3031_v36 }
 0x312   : > { %v3019_v29 = vpop.eup %2314  ;;  %v987_v57 = vmul.f32 1.442695, %v943_v15 }
 0x313   : > { %v3021_v32 = vpop.eup %2316 }
 0x314   : > { %v1042_v41 = vadd.f32 %v3021_v32, %v3019_v29  ;;  %v3047_v61 = vpop.eup %2318 }
 0x315   : > { %v3049_v2 = vpop.eup %2320 }
 0x316   : > { %1040 = vadd.xlane.f32.xlu1 %v1039_v38  ;;  %1043 = vadd.xlane.f32.xlu2 %v1042_v41  ;;  %v1036_v6 = vadd.f32 %v3049_v2, %v3047_v61 }
 0x317   : > { %v906_v42 = vpop.xlane.xlu1 %905 }
 0x318   : > { %v945_v44 = vsub.f32 %v2951_v31, %v906_v42  ;;  %v946_v46 = vsub.f32 %v2949_v30, %v906_v42  ;;  %v944_v31 = vsub.f32 %v2941_v25, %v903_v50  ;;  %v3041_v30 = vpop.f32.mrf.mxu3  ;;  %v3043_v55 = vpop.f32.mrf.mxu0 }
 0x31a   : > { %v991_v52 = vmul.f32 1.442695, %v945_v44  ;;  %v993_v17 = vmul.f32 1.442695, %v946_v46  ;;  %v989_v60 = vmul.f32 1.442695, %v944_v31 }
 0x31c   : > { %2322 = vpow2.f32 %v991_v52  ;;  %v1285_v52 = vpop.trf.xlu2 }
 0x31d   : > { %2324 = vpow2.f32 %v993_v17  ;;  %2125 = vmatmul.msk.bf16.gmra.mxu3 %vm753_vm13, %v1285_v52  ;;  %2133 = vmatmul.msk.bf16.gmra.mxu0 %vm753_vm13, %v1285_v52 }
 0x31e   : > { %920 = vmax.xlane.f32.xlu1 %v919_v45  ;;  %2326 = vpow2.f32 %v987_v57  ;;  %v715_v57 = vpop.f32.mrf.mxu1 }
 0x31f   : > { %v909_v54 = vpop.xlane.xlu1 %908  ;;  %2328 = vpow2.f32 %v989_v60 }
 0x320   : > { %v3061_v9 = vpop.f32.mrf.mxu3  ;;  %v3063_v10 = vpop.f32.mrf.mxu0  ;;  %v947_v16 = vsub.f32 %v2957_v37, %v909_v54  ;;  %v948_v18 = vsub.f32 %v2955_v33, %v909_v54  ;;  %v925_v37 = vmax.f32 %v3041_v30, %v3043_v55 }
 0x321   : > { %v928_v19 = vmax.f32 %v3061_v9, %v3063_v10 }
 0x322   : > { %v3051_v4 = vpop.eup %2322  ;;  %v995_v20 = vmul.f32 1.442695, %v947_v16  ;;  %v997_v21 = vmul.f32 1.442695, %v948_v18 }
 0x323   : > { %v3053_v25 = vpop.eup %2324 }
 0x324   : > { %v1048_v8 = vadd.f32 %v3053_v25, %v3051_v4  ;;  %v3065_v12 = vpop.eup %2326  ;;  %v1286_v53 = vpop.trf.xlu2 }
 0x325   : > { %v3067_v14 = vpop.eup %2328 }
 0x326   : > { %923 = vmax.xlane.f32.xlu1 %v922_v58  ;;  %v729_v58 = vpop.f32.mrf.mxu2 }
 0x327   : > { %v912_v28 = vpop.xlane.xlu1 %911 }
 0x328   : > { %v949_v5 = vsub.f32 %v2963_v40, %v912_v28  ;;  %v950_v7 = vsub.f32 %v2961_v39, %v912_v28  ;;  %v1045_v39 = vadd.f32 %v3067_v14, %v3065_v12  ;;  %v3075_v38 = vpop.f32.mrf.mxu3  ;;  %v3077_v41 = vpop.f32.mrf.mxu0 }
 0x329   : > { %v1420_v50 = vmax.f32 %v3075_v38, %v3077_v41 }
 0x32a   : > { %v999_v0 = vmul.f32 1.442695, %v949_v5  ;;  %v1001_v40 = vmul.f32 1.442695, %v950_v7 }
 0x32c   : > { %1037 = vadd.xlane.f32.xlu0 %v1036_v6  ;;  %2330 = vpow2.f32 %v999_v0  ;;  %v1287_v31 = vpop.trf.xlu2 }
 0x32d   : > { %2332 = vpow2.f32 %v1001_v40  ;;  %2126 = vmatmul.msk.bf16.gmra.mxu3 %vm753_vm13, %v1286_v53  ;;  %2134 = vmatmul.msk.bf16.gmra.mxu0 %vm753_vm13, %v1286_v53 }
 0x32e   : > { %1049 = vadd.xlane.f32.xlu1 %v1048_v8  ;;  %2334 = vpow2.f32 %v995_v20 }
 0x32f   : > { %2336 = vpow2.f32 %v997_v21 }
 0x330   : > { %v3091_v45 = vpop.f32.mrf.mxu3  ;;  %v3093_v46 = vpop.f32.mrf.mxu0 }
 0x331   : > { %v1423_v49 = vmax.f32 %v3091_v45, %v3093_v46 }
 0x332   : > { %v3079_v42 = vpop.eup %2330 }
 0x333   : > { %v3081_v33 = vpop.eup %2332 }
 0x334   : > { %1046 = vadd.xlane.f32.xlu0 %v1045_v39  ;;  %v1054_v43 = vadd.f32 %v3081_v33, %v3079_v42  ;;  %v3087_v34 = vpop.eup %2334 }
 0x335   : > { %v3089_v44 = vpop.eup %2336 }
 0x336   : > { %929 = vmax.xlane.f32.xlu1 %v928_v19  ;;  %v1051_v47 = vadd.f32 %v3089_v44, %v3087_v34 }
 0x33c   : > { %926 = vmax.xlane.f32.xlu0 %v925_v37 }
 0x33d   : > { %2127 = vmatmul.msk.bf16.gmra.mxu3 %vm753_vm13, %v1287_v31  ;;  %2135 = vmatmul.msk.bf16.gmra.mxu0 %vm753_vm13, %v1287_v31 }
 0x33e   : > { %1055 = vadd.xlane.f32.xlu1 %v1054_v43 }
 0x344   : > { %1052 = vadd.xlane.f32.xlu0 %v1051_v47 }
 0x346   : > { %1424 = vmax.xlane.f32.xlu1 %v1423_v49 }
 0x34c   : > { %1421 = vmax.xlane.f32.xlu0 %v1420_v50 }
 0x361   : > { %v1029_v54 = vpop.xlane.xlu0 %1028 }
 0x369   : > { %v1032_v17 = vpop.xlane.xlu1 %1031 }
 0x36a   : > { %2338 = vrcp.f32 %v1032_v17 }
 0x36b   : > { %2340 = vrcp.f32 %v1029_v54  ;;  %v3119_v54 = vpop.f32.mrf.mxu3 }
 0x370   : > { %v2339_v6 = vpop.eup %2338 }
 0x371   : > { %v3105_v15 = vpop.xlane.xlu1 %1034  ;;  %v2341_v0 = vpop.eup %2340  ;;  %v1093_v19 = vmul.f32 %v2339_v6, %v2976_v56  ;;  %v1094_v21 = vmul.f32 %v2339_v6, %v2978_v59 }
 0x372   : > { %v1091_v47 = vmul.f32 %v2341_v0, %v2969_v48  ;;  %v1092_v49 = vmul.f32 %v2341_v0, %v2971_v51  ;;  %v3123_v51 = vpop.f32.mrf.mxu0 }
 0x374   : > { %v688_v60 = vpop.permute.xlu0 %687  ;;  %v1123_v50 = vpack.c.bf16 %v1093_v19, %v1091_v47  ;;  %v1124_v52 = vpack.c.bf16 %v1094_v21, %v1092_v49 }
 0x375   : > { %v716_v28 = vadd.f32 %v715_v57, %v688_v60  ;;  %v730_v5 = vadd.f32 %v729_v58, %v688_v60 }
 0x377   : > { %v735_v7 = vpack.c.bf16 %v716_v28, %v716_v28  ;;  %v736_v8 = vpack.c.bf16 %v730_v5, %v730_v5  ;;  %v3135_v28 = vpop.f32.mrf.mxu3 }
 0x379   : > { %1146 = vmatpush.bf16.xpose.msrb.mxu1 %v735_v7  ;;  %v1678_v40 = vrot.slane %v735_v7, 2  ;;  %1195 = vmatpush.bf16.xpose.msrb.mxu2 %v736_v8  ;;  %v1679_v16 = vrot.slane %v736_v8, 2  ;;  %v915_v18 = vpop.xlane.xlu1 %914 }
 0x37a   : > { %v951_v39 = vsub.f32 %v2988_v1, %v915_v18  ;;  %v952_v20 = vsub.f32 %v2992_v3, %v915_v18  ;;  %v3137_v5 = vpop.f32.mrf.mxu0 }
 0x37c   : > { %v1003_v37 = vmul.f32 1.442695, %v951_v39  ;;  %v1005_v43 = vmul.f32 1.442695, %v952_v20 }
 0x37e   : > { %2342 = vpow2.f32 %v1003_v37 }
 0x37f   : > { %2344 = vpow2.f32 %v1005_v43  ;;  %v3143_v18 = vpop.f32.mrf.mxu3 }
 0x380   : > { %1147 = vmatmul.bf16.vlgmr.msrb.gmra.mxu1 %v1123_v50  ;;  %1196 = vmatmul.bf16.vlgmr.msrb.gmra.mxu2 %v1124_v52 }
 0x381   : > { %1689 = vmatpush.bf16.xpose.msra.mxu1 %v1678_v40  ;;  %1738 = vmatpush.bf16.xpose.msra.mxu2 %v1679_v16  ;;  %v918_v1 = vpop.xlane.xlu1 %917  ;;  %v1429_v16 = vmax.f32 %v3135_v28, %v3137_v5 }
 0x382   : > { %v953_v3 = vsub.f32 %v3001_v11, %v918_v1  ;;  %v954_v56 = vsub.f32 %v3003_v13, %v918_v1  ;;  %v1426_v13 = vmax.f32 %v3119_v54, %v3123_v51  ;;  %v3145_v20 = vpop.f32.mrf.mxu0 }
 0x384   : > { %v3117_v59 = vpop.eup %2342  ;;  %v1007_v53 = vmul.f32 1.442695, %v953_v3  ;;  %v1009_v17 = vmul.f32 1.442695, %v954_v56 }
 0x385   : > { %v3121_v48 = vpop.eup %2344 }
 0x386   : > { %2346 = vpow2.f32 %v1007_v53  ;;  %v1057_v31 = vadd.f32 %v3121_v48, %v3117_v59 }
 0x387   : > { %2348 = vpow2.f32 %v1009_v17 }
 0x388   : > { %1058 = vadd.xlane.f32.xlu0 %v1057_v31 }
 0x389   : > { %v1041_v57 = vpop.xlane.xlu1 %1040 }
 0x38a   : > { %v3160_v52 = vpop.f32.mrf.mxu0 }
 0x38c   : > { %v3127_v11 = vpop.eup %2346 }
 0x38d   : > { %v3131_v58 = vpop.eup %2348 }
 0x38e   : > { %v1060_v60 = vadd.f32 %v3131_v58, %v3127_v11 }
 0x390   : > { %1061 = vadd.xlane.f32.xlu1 %v1060_v60  ;;  %1427 = vmax.xlane.f32.xlu0 %v1426_v13 }
 0x391   : > { %v921_v6 = vpop.xlane.xlu1 %920 }
 0x392   : > { %v955_v7 = vsub.f32 %v3011_v24, %v921_v6  ;;  %v956_v8 = vsub.f32 %v3013_v23, %v921_v6 }
 0x394   : > { %v1011_v0 = vmul.f32 1.442695, %v955_v7  ;;  %v1013_v40 = vmul.f32 1.442695, %v956_v8  ;;  %v1044_v7 = vpop.xlane.xlu2 %1043 }
 0x396   : > { %2350 = vpow2.f32 %v1011_v0 }
 0x397   : > { %2352 = vpow2.f32 %v1013_v40 }
 0x398   : > { %1430 = vmax.xlane.f32.xlu1 %v1429_v16  ;;  %2354 = vrcp.f32 %v3105_v15  ;;  %v1432_v15 = vmax.f32 %v3143_v18, %v3145_v20 }
 0x399   : > { %v924_v39 = vpop.xlane.xlu1 %923 }
 0x39a   : > { %v957_v19 = vsub.f32 %v3029_v35, %v924_v39  ;;  %v958_v21 = vsub.f32 %v3031_v36, %v924_v39  ;;  %v3158_v35 = vpop.f32.mrf.mxu3 }
 0x39c   : > { %v3149_v24 = vpop.eup %2350  ;;  %v1015_v23 = vmul.f32 1.442695, %v957_v19  ;;  %v1017_v37 = vmul.f32 1.442695, %v958_v21 }
 0x39d   : > { %v3151_v43 = vpop.eup %2352 }
 0x39e   : > { %2356 = vpow2.f32 %v1015_v23  ;;  %v1063_v47 = vadd.f32 %v3151_v43, %v3149_v24  ;;  %v2355_v36 = vpop.eup %2354 }
 0x39f   : > { %2358 = vpow2.f32 %v1017_v37  ;;  %v1038_v49 = vpop.xlane.xlu0 %1037  ;;  %v1095_v31 = vmul.f32 %v2355_v36, %v2984_v62  ;;  %v1096_v60 = vmul.f32 %v2355_v36, %v2986_v63  ;;  %v3178_v63 = vpop.f32.mrf.mxu0 }
 0x3a0   : > { %2360 = vrcp.f32 %v1038_v49  ;;  %1064 = vadd.xlane.f32.xlu0 %v1063_v47 }
 0x3a1   : > { %v3156_v50 = vpop.xlane.xlu1 %1049  ;;  %2362 = vrcp.f32 %v1041_v57 }
 0x3a2   : > { %2364 = vrcp.f32 %v1044_v7  ;;  %v3176_v19 = vpop.f32.mrf.mxu3 }
 0x3a4   : > { %v3162_v1 = vpop.eup %2356 }
 0x3a5   : > { %v3166_v3 = vpop.eup %2358 }
 0x3a6   : > { %v2361_v56 = vpop.eup %2360  ;;  %v1066_v53 = vadd.f32 %v3166_v3, %v3162_v1 }
 0x3a7   : > { %v1047_v17 = vpop.xlane.xlu0 %1046  ;;  %v1097_v13 = vmul.f32 %v2361_v56, %v3047_v61  ;;  %v1098_v6 = vmul.f32 %v2361_v56, %v3049_v2  ;;  %v1435_v2 = vmax.f32 %v3158_v35, %v3160_v52  ;;  %v2363_v57 = vpop.eup %2362 }
 0x3a8   : > { %1067 = vadd.xlane.f32.xlu1 %v1066_v53  ;;  %1433 = vmax.xlane.f32.xlu0 %v1432_v15  ;;  %v2365_v37 = vpop.eup %2364  ;;  %v1099_v15 = vmul.f32 %v2363_v57, %v3015_v22 }
 0x3a9   : > { %v930_v8 = vpop.xlane.xlu1 %929  ;;  %v1125_v0 = vpack.c.bf16 %v1097_v13, %v1095_v31  ;;  %v1126_v40 = vpack.c.bf16 %v1098_v6, %v1096_v60  ;;  %v1101_v53 = vmul.f32 %v2365_v37, %v3019_v29  ;;  %v3198_v60 = vpop.f32.mrf.mxu0 }
 0x3aa   : > { %v961_v16 = vsub.f32 %v3061_v9, %v930_v8  ;;  %v962_v39 = vsub.f32 %v3063_v10, %v930_v8  ;;  %v3194_v31 = vpop.f32.mrf.mxu3 }
 0x3ab   : > { %1152 = vmatmul.bf16.gmra.mxu1 %v1125_v0  ;;  %1201 = vmatmul.bf16.gmra.mxu2 %v1126_v40  ;;  %v1127_v22 = vpack.c.bf16 %v1101_v53, %v1099_v15 }
 0x3ac   : > { %v1023_v62 = vmul.f32 1.442695, %v961_v16  ;;  %v1025_v61 = vmul.f32 1.442695, %v962_v39 }
 0x3ae   : > { %2366 = vpow2.f32 %v1023_v62  ;;  %v1441_v62 = vmax.f32 %v3194_v31, %v3198_v60 }
 0x3af   : > { %2368 = vpow2.f32 %v1025_v61  ;;  %v927_v21 = vpop.xlane.xlu0 %926 }
 0x3b0   : > { %v959_v9 = vsub.f32 %v3041_v30, %v927_v21  ;;  %v960_v10 = vsub.f32 %v3043_v55, %v927_v21  ;;  %1436 = vmax.xlane.f32.xlu1 %v1435_v2  ;;  %v1100_v30 = vmul.f32 %v2363_v57, %v3017_v26  ;;  %v1102_v55 = vmul.f32 %v2365_v37, %v3021_v32 }
 0x3b1   : > { %v3184_v23 = vpop.xlane.xlu1 %1055  ;;  %v3213_v61 = vpop.f32.mrf.mxu0  ;;  %v1438_v37 = vmax.f32 %v3176_v19, %v3178_v63 }
 0x3b2   : > { %v1019_v47 = vmul.f32 1.442695, %v959_v9  ;;  %v1021_v49 = vmul.f32 1.442695, %v960_v10  ;;  %v1128_v8 = vpack.c.bf16 %v1102_v55, %v1100_v30 }
 0x3b4   : > { %v3186_v36 = vpop.eup %2366  ;;  %2370 = vpow2.f32 %v1019_v47 }
 0x3b5   : > { %v3189_v56 = vpop.eup %2368  ;;  %2372 = vpow2.f32 %v1021_v49 }
 0x3b6   : > { %v1072_v13 = vadd.f32 %v3189_v56, %v3186_v36  ;;  %2374 = vrcp.f32 %v1047_v17 }
 0x3b7   : > { %v1053_v6 = vpop.xlane.xlu0 %1052  ;;  %2376 = vrcp.f32 %v3156_v50 }
 0x3b8   : > { %1073 = vadd.xlane.f32.xlu1 %v1072_v13 }
 0x3b9   : > { %v1425_v7 = vpop.xlane.xlu1 %1424 }
 0x3ba   : > { %v3200_v0 = vpop.eup %2370  ;;  %v1470_v29 = vsub.f32 %v3091_v45, %v1425_v7  ;;  %v1471_v26 = vsub.f32 %v3093_v46, %v1425_v7  ;;  %v3211_v45 = vpop.f32.mrf.mxu3 }
 0x3bb   : > { %v3204_v40 = vpop.eup %2372  ;;  %1157 = vmatmul.bf16.gmra.mxu1 %v1127_v22  ;;  %1206 = vmatmul.bf16.gmra.mxu2 %v1128_v8  ;;  %v3231_v7 = vpop.f32.mrf.mxu0  ;;  %v1444_v8 = vmax.f32 %v3211_v45, %v3213_v61 }
 0x3bc   : > { %v1504_v32 = vmul.f32 1.442695, %v1470_v29  ;;  %v1506_v16 = vmul.f32 1.442695, %v1471_v26  ;;  %v1069_v39 = vadd.f32 %v3204_v40, %v3200_v0  ;;  %v2375_v21 = vpop.eup %2374 }
 0x3bd   : > { %v2377_v50 = vpop.eup %2376  ;;  %v1103_v49 = vmul.f32 %v2375_v21, %v3065_v12 }
 0x3be   : > { %2378 = vpow2.f32 %v1504_v32  ;;  %1070 = vadd.xlane.f32.xlu0 %v1069_v39  ;;  %v1105_v15 = vmul.f32 %v2377_v50, %v3051_v4  ;;  %v1106_v53 = vmul.f32 %v2377_v50, %v3053_v25 }
 0x3bf   : > { %2380 = vpow2.f32 %v1506_v16  ;;  %v1422_v46 = vpop.xlane.xlu0 %1421 }
 0x3c0   : > { %v1468_v17 = vsub.f32 %v3075_v38, %v1422_v46  ;;  %v1469_v2 = vsub.f32 %v3077_v41, %v1422_v46  ;;  %1442 = vmax.xlane.f32.xlu1 %v1441_v62  ;;  %v1104_v38 = vmul.f32 %v2375_v21, %v3067_v14  ;;  %v1129_v30 = vpack.c.bf16 %v1105_v15, %v1103_v49 }
 0x3c2   : > { %v1500_v9 = vmul.f32 1.442695, %v1468_v17  ;;  %v1502_v10 = vmul.f32 1.442695, %v1469_v2  ;;  %v1130_v55 = vpack.c.bf16 %v1106_v53, %v1104_v38  ;;  %v3229_v13 = vpop.f32.mrf.mxu3 }
 0x3c3   : > { %v1447_v4 = vmax.f32 %v3229_v13, %v3231_v7 }
 0x3c4   : > { %v3217_v57 = vpop.eup %2378  ;;  %2382 = vpow2.f32 %v1500_v9 }
 0x3c5   : > { %v3221_v47 = vpop.eup %2380  ;;  %2384 = vpow2.f32 %v1502_v10 }
 0x3c6   : > { %1439 = vmax.xlane.f32.xlu0 %v1438_v37  ;;  %v1567_v41 = vadd.f32 %v3221_v47, %v3217_v57  ;;  %2386 = vrcp.f32 %v1053_v6 }
 0x3c7   : > { %2388 = vrcp.f32 %v3184_v23 }
 0x3c8   : > { %1568 = vadd.xlane.f32.xlu1 %v1567_v41 }
 0x3ca   : > { %v3233_v22 = vpop.eup %2382 }
 0x3cb   : > { %v3235_v12 = vpop.eup %2384  ;;  %1162 = vmatmul.bf16.gmra.mxu1 %v1129_v30  ;;  %1211 = vmatmul.bf16.gmra.mxu2 %v1130_v55 }
 0x3cc   : > { %v1564_v14 = vadd.f32 %v3235_v12, %v3233_v22  ;;  %v2387_v25 = vpop.eup %2386 }
 0x3cd   : > { %v2389_v29 = vpop.eup %2388  ;;  %v1107_v26 = vmul.f32 %v2387_v25, %v3087_v34  ;;  %v1108_v32 = vmul.f32 %v2387_v25, %v3089_v44 }
 0x3ce   : > { %1565 = vadd.xlane.f32.xlu0 %v1564_v14  ;;  %v1109_v6 = vmul.f32 %v2389_v29, %v3079_v42  ;;  %v1110_v16 = vmul.f32 %v2389_v29, %v3081_v33 }
 0x3d0   : > { %1448 = vmax.xlane.f32.xlu1 %v1447_v4  ;;  %v1131_v39 = vpack.c.bf16 %v1109_v6, %v1107_v26  ;;  %v1132_v62 = vpack.c.bf16 %v1110_v16, %v1108_v32 }
 0x3d6   : > { %1445 = vmax.xlane.f32.xlu0 %v1444_v8 }
 0x3db   : > { %1167 = vmatmul.bf16.gmra.mxu1 %v1131_v39  ;;  %1216 = vmatmul.bf16.gmra.mxu2 %v1132_v62 }
 0x3fb   : > { %v1059_v23 = vpop.xlane.xlu0 %1058 }
 0x3fc   : > { %2390 = vrcp.f32 %v1059_v23 }
 0x3fd   : > { %v1148_v2 = vpop.f32.mrf.mxu1 }
 0x402   : > { %v2391_v33 = vpop.eup %2390 }
 0x403   : > { %v1062_v46 = vpop.xlane.xlu1 %1061  ;;  %v1428_v17 = vpop.xlane.xlu0 %1427  ;;  %v1111_v49 = vmul.f32 %v2391_v33, %v3117_v59  ;;  %v1112_v41 = vmul.f32 %v2391_v33, %v3121_v48 }
 0x404   : > { %2392 = vrcp.f32 %v1062_v46  ;;  %v1472_v21 = vsub.f32 %v3119_v54, %v1428_v17  ;;  %v1473_v34 = vsub.f32 %v3123_v51, %v1428_v17  ;;  %v1197_v44 = vpop.f32.mrf.mxu2  ;;  %v3264_v48 = vpop.f32.mrf.mxu3 }
 0x405   : > { %v3250_v9 = vadd.f32 %v1197_v44, %v1148_v2 }
 0x406   : > { %v1508_v42 = vmul.f32 1.442695, %v1472_v21  ;;  %v1510_v10 = vmul.f32 1.442695, %v1473_v34  ;;  %v3284_v21 = vpop.f32.mrf.mxu1 }
 0x408   : > { %2394 = vpow2.f32 %v1508_v42 }
 0x409   : > { %2396 = vpow2.f32 %v1510_v10 }
 0x40a   : > { %v2393_v50 = vpop.eup %2392 }
 0x40b   : > { %v1431_v37 = vpop.xlane.xlu1 %1430  ;;  %v1113_v38 = vmul.f32 %v2393_v50, %v3127_v11  ;;  %v1114_v54 = vmul.f32 %v2393_v50, %v3131_v58  ;;  %v3266_v11 = vpop.f32.mrf.mxu0 }
 0x40c   : > { %v1474_v51 = vsub.f32 %v3135_v28, %v1431_v37  ;;  %v1475_v15 = vsub.f32 %v3137_v5, %v1431_v37  ;;  %v1450_v5 = vmax.f32 %v3264_v48, %v3266_v11  ;;  %v3276_v26 = vpop.f32.mrf.mxu3 }
 0x40d   : > { %v1133_v53 = vpack.c.bf16 %v1113_v38, %v1111_v49  ;;  %v1134_v30 = vpack.c.bf16 %v1114_v54, %v1112_v41  ;;  %v3294_v41 = vpop.f32.mrf.mxu2 }
 0x40e   : > { %v3258_v55 = vpop.eup %2394  ;;  %v1512_v14 = vmul.f32 1.442695, %v1474_v51  ;;  %v1514_v4 = vmul.f32 1.442695, %v1475_v15 }
 0x40f   : > { %v3260_v25 = vpop.eup %2396  ;;  %1172 = vmatmul.bf16.gmra.mxu1 %v1133_v53  ;;  %1221 = vmatmul.bf16.gmra.mxu2 %v1134_v30 }
 0x410   : > { %2398 = vpow2.f32 %v1512_v14  ;;  %v1570_v59 = vadd.f32 %v3260_v25, %v3258_v55 }
 0x411   : > { %2400 = vpow2.f32 %v1514_v4 }
 0x412   : > { %1571 = vadd.xlane.f32.xlu0 %v1570_v59 }
 0x413   : > { %v1065_v58 = vpop.xlane.xlu0 %1064  ;;  %v3278_v32 = vpop.f32.mrf.mxu0 }
 0x414   : > { %2402 = vrcp.f32 %v1065_v58  ;;  %v1453_v17 = vmax.f32 %v3276_v26, %v3278_v32  ;;  %v3296_v15 = vpop.f32.mrf.mxu3 }
 0x416   : > { %v3268_v28 = vpop.eup %2398 }
 0x417   : > { %v3272_v8 = vpop.eup %2400 }
 0x418   : > { %v1573_v29 = vadd.f32 %v3272_v8, %v3268_v28 }
 0x41a   : > { %1574 = vadd.xlane.f32.xlu1 %v1573_v29  ;;  %1451 = vmax.xlane.f32.xlu0 %v1450_v5  ;;  %v2403_v2 = vpop.eup %2402 }
 0x41b   : > { %v1068_v6 = vpop.xlane.xlu1 %1067  ;;  %v1434_v16 = vpop.xlane.xlu0 %1433  ;;  %v1115_v42 = vmul.f32 %v2403_v2, %v3149_v24 }
 0x41c   : > { %2404 = vrcp.f32 %v1068_v6  ;;  %v1476_v39 = vsub.f32 %v3143_v18, %v1434_v16  ;;  %v1477_v62 = vsub.f32 %v3145_v20, %v1434_v16  ;;  %v1116_v18 = vmul.f32 %v2403_v2, %v3151_v43  ;;  %v3312_v59 = vpop.f32.mrf.mxu3 }
 0x41e   : > { %v1516_v23 = vmul.f32 1.442695, %v1476_v39  ;;  %v1518_v46 = vmul.f32 1.442695, %v1477_v62 }
 0x420   : > { %2406 = vpow2.f32 %v1516_v23 }
 0x421   : > { %2408 = vpow2.f32 %v1518_v46 }
 0x422   : > { %v2405_v34 = vpop.eup %2404  ;;  %1454 = vmax.xlane.f32.xlu1 %v1453_v17 }
 0x423   : > { %v1437_v44 = vpop.xlane.xlu1 %1436  ;;  %v1117_v10 = vmul.f32 %v2405_v34, %v3162_v1  ;;  %v1118_v20 = vmul.f32 %v2405_v34, %v3166_v3  ;;  %v3300_v1 = vpop.f32.mrf.mxu0 }
 0x424   : > { %v1478_v33 = vsub.f32 %v3158_v35, %v1437_v44  ;;  %v1479_v50 = vsub.f32 %v3160_v52, %v1437_v44  ;;  %v1456_v30 = vmax.f32 %v3296_v15, %v3300_v1 }
 0x425   : > { %v1135_v37 = vpack.c.bf16 %v1117_v10, %v1115_v42  ;;  %v1136_v49 = vpack.c.bf16 %v1118_v20, %v1116_v18 }
 0x426   : > { %v3292_v38 = vpop.eup %2406  ;;  %v1520_v54 = vmul.f32 1.442695, %v1478_v33  ;;  %v1522_v51 = vmul.f32 1.442695, %v1479_v50  ;;  %v3330_v33 = vpop.f32.mrf.mxu3 }
 0x427   : > { %v3298_v24 = vpop.eup %2408  ;;  %1177 = vmatmul.bf16.gmra.mxu1 %v1135_v37  ;;  %1226 = vmatmul.bf16.gmra.mxu2 %v1136_v49 }
 0x428   : > { %2410 = vpow2.f32 %v1520_v54  ;;  %v1153_v43 = vpop.f32.mrf.mxu1  ;;  %v1576_v35 = vadd.f32 %v3298_v24, %v3292_v38 }
 0x429   : > { %2412 = vpow2.f32 %v1522_v51 }
 0x42a   : > { %1577 = vadd.xlane.f32.xlu0 %v1576_v35 }
 0x42b   : > { %v1074_v52 = vpop.xlane.xlu1 %1073  ;;  %v3318_v29 = vpop.f32.mrf.mxu0 }
 0x42c   : > { %2414 = vrcp.f32 %v1074_v52  ;;  %v1459_v44 = vmax.f32 %v3312_v59, %v3318_v29 }
 0x42e   : > { %v3304_v3 = vpop.eup %2410  ;;  %v1202_v53 = vpop.f32.mrf.mxu2 }
 0x42f   : > { %v3308_v14 = vpop.eup %2412  ;;  %v3310_v4 = vadd.f32 %v1202_v53, %v1153_v43 }
 0x430   : > { %v3314_v58 = vpop.f32.mrf.mxu1  ;;  %v1579_v5 = vadd.f32 %v3308_v14, %v3304_v3 }
 0x431   : > { %v1071_v6 = vpop.xlane.xlu0 %1070 }
 0x432   : > { %2416 = vrcp.f32 %v1071_v6  ;;  %1580 = vadd.xlane.f32.xlu1 %v1579_v5  ;;  %1457 = vmax.xlane.f32.xlu0 %v1456_v30  ;;  %v2415_v23 = vpop.eup %2414 }
 0x433   : > { %v1443_v16 = vpop.xlane.xlu1 %1442  ;;  %v1121_v10 = vmul.f32 %v2415_v23, %v3186_v36  ;;  %v3334_v49 = vpop.f32.mrf.mxu0 }
 0x434   : > { %v1482_v39 = vsub.f32 %v3194_v31, %v1443_v16  ;;  %v1483_v62 = vsub.f32 %v3198_v60, %v1443_v16  ;;  %v1122_v60 = vmul.f32 %v2415_v23, %v3189_v56  ;;  %v3352_v23 = vpop.f32.mrf.mxu3 }
 0x436   : > { %v1528_v46 = vmul.f32 1.442695, %v1482_v39  ;;  %v1530_v17 = vmul.f32 1.442695, %v1483_v62  ;;  %v3322_v2 = vpop.f32.mrf.mxu2 }
 0x438   : > { %v2417_v34 = vpop.eup %2416  ;;  %2418 = vpow2.f32 %v1528_v46  ;;  %v1158_v42 = vpop.f32.mrf.mxu1 }
 0x439   : > { %2420 = vpow2.f32 %v1530_v17  ;;  %v1440_v18 = vpop.xlane.xlu0 %1439  ;;  %v1119_v20 = vmul.f32 %v2417_v34, %v3200_v0  ;;  %v1120_v31 = vmul.f32 %v2417_v34, %v3204_v40 }
 0x43a   : > { %v1480_v50 = vsub.f32 %v3176_v19, %v1440_v18  ;;  %v1481_v37 = vsub.f32 %v3178_v63, %v1440_v18  ;;  %1460 = vmax.xlane.f32.xlu1 %v1459_v44 }
 0x43b   : > { %v1569_v54 = vpop.xlane.xlu1 %1568  ;;  %v1137_v51 = vpack.c.bf16 %v1121_v10, %v1119_v20  ;;  %v1138_v36 = vpack.c.bf16 %v1122_v60, %v1120_v31  ;;  %v3354_v46 = vpop.f32.mrf.mxu0 }
 0x43c   : > { %v1524_v43 = vmul.f32 1.442695, %v1480_v50  ;;  %v1526_v35 = vmul.f32 1.442695, %v1481_v37  ;;  %2422 = vrcp.f32 %v1569_v54 }
 0x43d   : > { %1182 = vmatmul.bf16.gmra.mxu1 %v1137_v51  ;;  %1231 = vmatmul.bf16.gmra.mxu2 %v1138_v36 }
 0x43e   : > { %v3336_v0 = vpop.eup %2418  ;;  %2424 = vpow2.f32 %v1524_v43  ;;  %v1207_v56 = vpop.f32.mrf.mxu2 }
 0x43f   : > { %v3338_v40 = vpop.eup %2420  ;;  %2426 = vpow2.f32 %v1526_v35  ;;  %v3340_v19 = vadd.f32 %v1207_v56, %v1158_v42 }
 0x440   : > { %v1585_v63 = vadd.f32 %v3338_v40, %v3336_v0  ;;  %v3344_v52 = vpop.f32.mrf.mxu1 }
 0x441   : > { %v1566_v53 = vpop.xlane.xlu0 %1565 }
 0x442   : > { %2428 = vrcp.f32 %v1566_v53  ;;  %1586 = vadd.xlane.f32.xlu1 %v1585_v63  ;;  %v2423_v30 = vpop.eup %2422 }
 0x443   : > { %v1449_v5 = vpop.xlane.xlu1 %1448  ;;  %v1630_v18 = vmul.f32 %v2423_v30, %v3217_v57 }
 0x444   : > { %v3346_v6 = vpop.eup %2424  ;;  %v1486_v16 = vsub.f32 %v3229_v13, %v1449_v5  ;;  %v1487_v39 = vsub.f32 %v3231_v7, %v1449_v5  ;;  %v1465_v13 = vmax.f32 %v3352_v23, %v3354_v46  ;;  %v1631_v7 = vmul.f32 %v2423_v30, %v3221_v47 }
 0x445   : > { %v3350_v62 = vpop.eup %2426  ;;  %v1462_v47 = vmax.f32 %v3330_v33, %v3334_v49 }
 0x446   : > { %v1536_v17 = vmul.f32 1.442695, %v1486_v16  ;;  %v1538_v34 = vmul.f32 1.442695, %v1487_v39  ;;  %v1582_v44 = vadd.f32 %v3350_v62, %v3346_v6  ;;  %v3358_v42 = vpop.f32.mrf.mxu2 }
 0x448   : > { %v2429_v10 = vpop.eup %2428  ;;  %2430 = vpow2.f32 %v1536_v17  ;;  %1583 = vadd.xlane.f32.xlu0 %v1582_v44  ;;  %v1163_v54 = vpop.f32.mrf.mxu1 }
 0x449   : > { %v1628_v20 = vmul.f32 %v2429_v10, %v3233_v22  ;;  %v1629_v31 = vmul.f32 %v2429_v10, %v3235_v12  ;;  %2432 = vpow2.f32 %v1538_v34  ;;  %v1446_v60 = vpop.xlane.xlu0 %1445 }
 0x44a   : > { %v1484_v50 = vsub.f32 %v3211_v45, %v1446_v60  ;;  %v1485_v37 = vsub.f32 %v3213_v61, %v1446_v60  ;;  %1466 = vmax.xlane.f32.xlu1 %v1465_v13 }
 0x44b   : > { %v1660_v57 = vpack.c.bf16 %v1630_v18, %v1628_v20  ;;  %v1661_v51 = vpack.c.bf16 %v1631_v7, %v1629_v31 }
 0x44c   : > { %v1532_v36 = vmul.f32 1.442695, %v1484_v50  ;;  %v1534_v43 = vmul.f32 1.442695, %v1485_v37 }
 0x44d   : > { %1690 = vmatmul.bf16.vlgmr.msra.gmra.mxu1 %v1660_v57  ;;  %1739 = vmatmul.bf16.vlgmr.msra.gmra.mxu2 %v1661_v51 }
 0x44e   : > { %v3368_v35 = vpop.eup %2430  ;;  %2434 = vpow2.f32 %v1532_v36  ;;  %v1212_v22 = vpop.f32.mrf.mxu2 }
 0x44f   : > { %v3372_v12 = vpop.eup %2432  ;;  %2436 = vpow2.f32 %v1534_v43  ;;  %v3374_v45 = vadd.f32 %v1212_v22, %v1163_v54 }
 0x450   : > { %1463 = vmax.xlane.f32.xlu0 %v1462_v47  ;;  %v1591_v61 = vadd.f32 %v3372_v12, %v3368_v35  ;;  %v3380_v63 = vpop.f32.mrf.mxu1 }
 0x452   : > { %1592 = vadd.xlane.f32.xlu1 %v1591_v61 }
 0x454   : > { %v3378_v56 = vpop.eup %2434 }
 0x455   : > { %v3382_v53 = vpop.eup %2436 }
 0x456   : > { %v1588_v30 = vadd.f32 %v3382_v53, %v3378_v56  ;;  %v3386_v5 = vpop.f32.mrf.mxu2 }
 0x458   : > { %1589 = vadd.xlane.f32.xlu0 %v1588_v30  ;;  %v1168_v16 = vpop.f32.mrf.mxu1 }
 0x45e   : > { %v1217_v39 = vpop.f32.mrf.mxu2 }
 0x45f   : > { %v3388_v17 = vadd.f32 %v1217_v39, %v1168_v16 }
 0x460   : > { %v3390_v44 = vpop.f32.mrf.mxu1 }
 0x466   : > { %v3392_v10 = vpop.f32.mrf.mxu2 }
 0x485   : > { %v1572_v34 = vpop.xlane.xlu0 %1571 }
 0x486   : > { %2438 = vrcp.f32 %v1572_v34 }
 0x48c   : > { %v1173_v50 = vpop.f32.mrf.mxu1  ;;  %v2439_v37 = vpop.eup %2438 }
 0x48d   : > { %v1575_v18 = vpop.xlane.xlu1 %1574  ;;  %v1452_v13 = vpop.xlane.xlu0 %1451  ;;  %v1632_v43 = vmul.f32 %v2439_v37, %v3258_v55  ;;  %v1633_v22 = vmul.f32 %v2439_v37, %v3260_v25 }
 0x48e   : > { %2440 = vrcp.f32 %v1575_v18  ;;  %v1488_v7 = vsub.f32 %v3264_v48, %v1452_v13  ;;  %v1489_v20 = vsub.f32 %v3266_v11, %v1452_v13 }
 0x490   : > { %v1540_v31 = vmul.f32 1.442695, %v1488_v7  ;;  %v1542_v60 = vmul.f32 1.442695, %v1489_v20 }
 0x492   : > { %2442 = vpow2.f32 %v1540_v31  ;;  %v1222_v54 = vpop.f32.mrf.mxu2 }
 0x493   : > { %2444 = vpow2.f32 %v1542_v60  ;;  %v3396_v57 = vadd.f32 %v1222_v54, %v1173_v50 }
 0x494   : > { %v2441_v51 = vpop.eup %2440  ;;  %v1175_v55 = vpop.f32.mrf.mxu1 }
 0x495   : > { %v1455_v36 = vpop.xlane.xlu1 %1454  ;;  %v1634_v47 = vmul.f32 %v2441_v51, %v3268_v28  ;;  %v1635_v48 = vmul.f32 %v2441_v51, %v3272_v8 }
 0x496   : > { %v1490_v11 = vsub.f32 %v3276_v26, %v1455_v36  ;;  %v1491_v61 = vsub.f32 %v3278_v32, %v1455_v36 }
 0x497   : > { %v1662_v30 = vpack.c.bf16 %v1634_v47, %v1632_v43  ;;  %v1663_v16 = vpack.c.bf16 %v1635_v48, %v1633_v22 }
 0x498   : > { %v3404_v39 = vpop.eup %2442  ;;  %v1544_v34 = vmul.f32 1.442695, %v1490_v11  ;;  %v1546_v18 = vmul.f32 1.442695, %v1491_v61 }
 0x499   : > { %v3406_v13 = vpop.eup %2444  ;;  %1695 = vmatmul.bf16.gmra.mxu1 %v1662_v30  ;;  %1744 = vmatmul.bf16.gmra.mxu2 %v1663_v16 }
 0x49a   : > { %2446 = vpow2.f32 %v1544_v34  ;;  %v1594_v25 = vadd.f32 %v3406_v13, %v3404_v39  ;;  %v1224_v28 = vpop.f32.mrf.mxu2 }
 0x49b   : > { %2448 = vpow2.f32 %v1546_v18  ;;  %v3410_v8 = vadd.f32 %v1224_v28, %v1175_v55 }
 0x49c   : > { %1595 = vadd.xlane.f32.xlu0 %v1594_v25 }
 0x49d   : > { %v1578_v26 = vpop.xlane.xlu0 %1577 }
 0x49e   : > { %2450 = vrcp.f32 %v1578_v26 }
 0x4a0   : > { %v3412_v32 = vpop.eup %2446 }
 0x4a1   : > { %v3414_v7 = vpop.eup %2448 }
 0x4a2   : > { %v1597_v20 = vadd.f32 %v3414_v7, %v3412_v32 }
 0x4a4   : > { %1598 = vadd.xlane.f32.xlu1 %v1597_v20  ;;  %v1178_v36 = vpop.f32.mrf.mxu1  ;;  %v2451_v43 = vpop.eup %2450 }
 0x4a5   : > { %v1581_v31 = vpop.xlane.xlu1 %1580  ;;  %v1458_v60 = vpop.xlane.xlu0 %1457  ;;  %v1636_v61 = vmul.f32 %v2451_v43, %v3292_v38  ;;  %v1637_v16 = vmul.f32 %v2451_v43, %v3298_v24 }
 0x4a6   : > { %2452 = vrcp.f32 %v1581_v31  ;;  %v1492_v50 = vsub.f32 %v3296_v15, %v1458_v60  ;;  %v1493_v37 = vsub.f32 %v3300_v1, %v1458_v60 }
 0x4a8   : > { %v1548_v54 = vmul.f32 1.442695, %v1492_v50  ;;  %v1550_v51 = vmul.f32 1.442695, %v1493_v37 }
 0x4aa   : > { %2454 = vpow2.f32 %v1548_v54  ;;  %v1227_v47 = vpop.f32.mrf.mxu2 }
 0x4ab   : > { %2456 = vpow2.f32 %v1550_v51  ;;  %v3420_v22 = vadd.f32 %v1227_v47, %v1178_v36 }
 0x4ac   : > { %v2453_v48 = vpop.eup %2452  ;;  %v1180_v38 = vpop.f32.mrf.mxu1 }
 0x4ad   : > { %v1461_v11 = vpop.xlane.xlu1 %1460  ;;  %v1638_v30 = vmul.f32 %v2453_v48, %v3304_v3  ;;  %v1639_v15 = vmul.f32 %v2453_v48, %v3308_v14 }
 0x4ae   : > { %v1494_v1 = vsub.f32 %v3312_v59, %v1461_v11  ;;  %v1495_v34 = vsub.f32 %v3318_v29, %v1461_v11 }
 0x4af   : > { %v1664_v18 = vpack.c.bf16 %v1638_v30, %v1636_v61  ;;  %v1665_v55 = vpack.c.bf16 %v1639_v15, %v1637_v16 }
 0x4b0   : > { %v3428_v25 = vpop.eup %2454  ;;  %v1552_v28 = vmul.f32 1.442695, %v1494_v1  ;;  %v1554_v26 = vmul.f32 1.442695, %v1495_v34 }
 0x4b1   : > { %v3430_v20 = vpop.eup %2456  ;;  %1700 = vmatmul.bf16.gmra.mxu1 %v1664_v18  ;;  %1749 = vmatmul.bf16.gmra.mxu2 %v1665_v55 }
 0x4b2   : > { %2458 = vpow2.f32 %v1552_v28  ;;  %v1600_v24 = vadd.f32 %v3430_v20, %v3428_v25  ;;  %v1229_v3 = vpop.f32.mrf.mxu2 }
 0x4b3   : > { %2460 = vpow2.f32 %v1554_v26  ;;  %v3434_v14 = vadd.f32 %v1229_v3, %v1180_v38 }
 0x4b4   : > { %1601 = vadd.xlane.f32.xlu0 %v1600_v24 }
 0x4b5   : > { %v1587_v59 = vpop.xlane.xlu1 %1586 }
 0x4b6   : > { %2462 = vrcp.f32 %v1587_v59 }
 0x4b8   : > { %v3436_v29 = vpop.eup %2458 }
 0x4b9   : > { %v3438_v31 = vpop.eup %2460 }
 0x4ba   : > { %v1603_v60 = vadd.f32 %v3438_v31, %v3436_v29  ;;  %v1183_v54 = vpop.f32.mrf.mxu1 }
 0x4bb   : > { %v1584_v50 = vpop.xlane.xlu0 %1583 }
 0x4bc   : > { %2464 = vrcp.f32 %v1584_v50  ;;  %1604 = vadd.xlane.f32.xlu1 %v1603_v60  ;;  %v2463_v43 = vpop.eup %2462 }
 0x4bd   : > { %v1467_v37 = vpop.xlane.xlu1 %1466  ;;  %v1642_v16 = vmul.f32 %v2463_v43, %v3336_v0 }
 0x4be   : > { %v1498_v51 = vsub.f32 %v3352_v23, %v1467_v37  ;;  %v1499_v36 = vsub.f32 %v3354_v46, %v1467_v37  ;;  %v1643_v23 = vmul.f32 %v2463_v43, %v3338_v40 }
 0x4c0   : > { %v1560_v47 = vmul.f32 1.442695, %v1498_v51  ;;  %v1562_v48 = vmul.f32 1.442695, %v1499_v36  ;;  %v1232_v11 = vpop.f32.mrf.mxu2 }
 0x4c1   : > { %v3444_v61 = vadd.f32 %v1232_v11, %v1183_v54 }
 0x4c2   : > { %v2465_v30 = vpop.eup %2464  ;;  %2466 = vpow2.f32 %v1560_v47  ;;  %v1185_v3 = vpop.f32.mrf.mxu1 }
 0x4c3   : > { %2468 = vpow2.f32 %v1562_v48  ;;  %v1464_v15 = vpop.xlane.xlu0 %1463  ;;  %v1640_v1 = vmul.f32 %v2465_v30, %v3346_v6  ;;  %v1641_v34 = vmul.f32 %v2465_v30, %v3350_v62  ;;  %v1818_v30 = vld [vmem:[%s3604_s8] sm:$0xff] }
 0x4c4   : > { %v1496_v46 = vsub.f32 %v3330_v33, %v1464_v15  ;;  %v1497_v18 = vsub.f32 %v3334_v49, %v1464_v15 }
 0x4c5   : > { %v1666_v55 = vpack.c.bf16 %v1642_v16, %v1640_v1  ;;  %v1667_v28 = vpack.c.bf16 %v1643_v23, %v1641_v34  ;;  %v1593_v24 = vpop.xlane.xlu1 %1592  ;;  %v1844_v16 = vld [vmem:[%s3646_s25] sm:$0xff]  ;;  %s3651_s25 = sld [smem:[#allocation22_spill]] }
 0x4c6   : > { %v1556_v26 = vmul.f32 1.442695, %v1496_v46  ;;  %v1558_v38 = vmul.f32 1.442695, %v1497_v18  ;;  %v1955_v34 = vld [vmem:[%s3648_s12] sm:$0xff]  ;;  %v1200_v18 = vadd.f32 %v3294_v41, %v3284_v21  ;;  %s524_s12 = sand.u32 1, %s2613_s19  }
 0x4c7   : > { %1705 = vmatmul.bf16.gmra.mxu1 %v1666_v55  ;;  %1754 = vmatmul.bf16.gmra.mxu2 %v1667_v28  ;;  %s2094_s13 = sshll.u32 %s524_s12, 3  ;;  %s1983_s29 = scalar_lea.sflag [#allocation4], %s524_s12 }
 0x4c8   : > { %v3452_v0 = vpop.eup %2466  ;;  %2470 = vpow2.f32 %v1556_v26  ;;  %v1234_v6 = vpop.f32.mrf.mxu2  ;;  %s526_s0 = scalar_lea.vmem [#allocation5], %s2094_s13 }
 0x4c9   : > { %v3454_v59 = vpop.eup %2468  ;;  %2472 = vpow2.f32 %v1558_v38  ;;  %v3456_v40 = vadd.f32 %v1234_v6, %v1185_v3  ;;  %s1997_s1 = sshll.u32 %s526_s0, 4  ;;  %s1998_s1 = int_to_ptr.vmem [resolvable:$true] %s1997_s1 }
 0x4ca   : > { %2474 = vrcp.f32 %v1593_v24  ;;  %v1609_v33 = vadd.f32 %v3454_v59, %v3452_v0 }
 0x4cb   : > { %v1590_v49 = vpop.xlane.xlu0 %1589 }
 0x4cc   : > { %2476 = vrcp.f32 %v1590_v49  ;;  %1610 = vadd.xlane.f32.xlu1 %v1609_v33 }
 0x4ce   : > { %v3460_v62 = vpop.eup %2470 }
 0x4cf   : > { %v3462_v60 = vpop.eup %2472 }
 0x4d0   : > { %v2475_v50 = vpop.eup %2474  ;;  %v1606_v37 = vadd.f32 %v3462_v60, %v3460_v62 }
 0x4d1   : > { %v1646_v36 = vmul.f32 %v2475_v50, %v3368_v35  ;;  %v1647_v47 = vmul.f32 %v2475_v50, %v3372_v12  ;;  %v1691_v35 = vpop.f32.mrf.mxu1  ;;  %v1888_v12 = vld [vmem:[%s3647_s15] sm:$0xff] }
 0x4d2   : > { %v2477_v54 = vpop.eup %2476  ;;  %1607 = vadd.xlane.f32.xlu0 %v1606_v37 }
 0x4d3   : > { %v1644_v51 = vmul.f32 %v2477_v54, %v3378_v56  ;;  %v1645_v43 = vmul.f32 %v2477_v54, %v3382_v53  ;;  %v1740_v56 = vpop.f32.mrf.mxu2 }
 0x4d4   : > { %v1741_v53 = vadd.f32 %v1740_v56, %v1691_v35 }
 0x4d5   : > { %v1668_v48 = vpack.c.bf16 %v1646_v36, %v1644_v51  ;;  %v1669_v11 = vpack.c.bf16 %v1647_v47, %v1645_v43  ;;  %v1205_v43 = vadd.f32 %v3322_v2, %v3314_v58 }
 0x4d6   : > { %v2252_v15 = vpack.i.bf16 %v3250_v9, %v1741_v53 }
 0x4d7   : > { %1710 = vmatmul.bf16.gmra.mxu1 %v1668_v48  ;;  %1759 = vmatmul.bf16.gmra.mxu2 %v1669_v11 }
 0x4d9   : > { %v1693_v23 = vpop.f32.mrf.mxu1 }
 0x4db   : > { %v1742_v1 = vpop.f32.mrf.mxu2 }
 0x4dc   : > { %v1743_v46 = vadd.f32 %v1742_v1, %v1693_v23 }
 0x4de   : > { %v2254_v55 = vpack.i.bf16 %v1200_v18, %v1743_v46 }
 0x4e5   : > { %1821 = vperm.xlu1 %2251, %v1818_v30  }
 0x4ed   : > { %1876 = vperm.xlu1 %2251, %v1844_v16  }
 0x4f5   : > { %1891 = vperm.xlu1 %2251, %v1888_v12  }
 0x4fb   : > { %2253 = vxpose.xlu0.b32.start [1/16] (narrow) %v2252_v15, 8 }
 0x4fd   : > { %1958 = vperm.xlu1 %2251, %v1955_v34   ;;  %v1210_v34 = vadd.f32 %v3358_v42, %v3344_v52 }
 0x503   : > { %2255 = vxpose.xlu0.b32.cont [2/16] (narrow) %v2254_v55, 8 }
 0x50f   : > { %v1596_v28 = vpop.xlane.xlu0 %1595 }
 0x510   : > { %2478 = vrcp.f32 %v1596_v28 }
 0x516   : > { %v1696_v38 = vpop.f32.mrf.mxu1  ;;  %v2479_v9 = vpop.eup %2478 }
 0x517   : > { %v1599_v26 = vpop.xlane.xlu1 %1598  ;;  %v1648_v33 = vmul.f32 %v2479_v9, %v3404_v39  ;;  %v1649_v37 = vmul.f32 %v2479_v9, %v3406_v13 }
 0x518   : > { %2480 = vrcp.f32 %v1599_v26 }
 0x51c   : > { %v1745_v24 = vpop.f32.mrf.mxu2 }
 0x51d   : > { %v1746_v3 = vadd.f32 %v1745_v24, %v1696_v38 }
 0x51e   : > { %v2481_v6 = vpop.eup %2480  ;;  %v1698_v51 = vpop.f32.mrf.mxu1 }
 0x51f   : > { %v2256_v49 = vpack.i.bf16 %v3310_v4, %v1746_v3  ;;  %v1650_v50 = vmul.f32 %v2481_v6, %v3412_v32  ;;  %v1651_v21 = vmul.f32 %v2481_v6, %v3414_v7 }
 0x521   : > { %2257 = vxpose.xlu0.b32.cont [3/16] (narrow) %v2256_v49, 8  ;;  %v1670_v41 = vpack.c.bf16 %v1650_v50, %v1648_v33  ;;  %v1671_v54 = vpack.c.bf16 %v1651_v21, %v1649_v37  ;;  %v1215_v33 = vadd.f32 %v3386_v5, %v3380_v63  ;;  %v1220_v21 = vadd.f32 %v3392_v10, %v3390_v44 }
 0x523   : > { %1715 = vmatmul.bf16.gmra.mxu1 %v1670_v41  ;;  %1764 = vmatmul.bf16.gmra.mxu2 %v1671_v54 }
 0x524   : > { %v1747_v36 = vpop.f32.mrf.mxu2 }
 0x525   : > { %v1748_v47 = vadd.f32 %v1747_v36, %v1698_v51 }
 0x527   : > { %v2258_v39 = vpack.i.bf16 %v1205_v43, %v1748_v47  ;;  %v1602_v4 = vpop.xlane.xlu0 %1601 }
 0x528   : > { %2482 = vrcp.f32 %v1602_v4 }
 0x529   : > { %2259 = vxpose.xlu0.b32.cont [4/16] (narrow) %v2258_v39, 8 }
 0x52e   : > { %v1701_v13 = vpop.f32.mrf.mxu1  ;;  %v2483_v48 = vpop.eup %2482 }
 0x52f   : > { %v1605_v32 = vpop.xlane.xlu1 %1604  ;;  %v1652_v16 = vmul.f32 %v2483_v48, %v3428_v25  ;;  %v1653_v58 = vmul.f32 %v2483_v48, %v3430_v20 }
 0x530   : > { %2484 = vrcp.f32 %v1605_v32 }
 0x534   : > { %v1750_v7 = vpop.f32.mrf.mxu2 }
 0x535   : > { %v1751_v11 = vadd.f32 %v1750_v7, %v1701_v13 }
 0x536   : > { %v2485_v30 = vpop.eup %2484  ;;  %v1703_v15 = vpop.f32.mrf.mxu1 }
 0x537   : > { %v2260_v56 = vpack.i.bf16 %v3340_v19, %v1751_v11  ;;  %v1654_v35 = vmul.f32 %v2485_v30, %v3436_v29  ;;  %v1655_v2 = vmul.f32 %v2485_v30, %v3438_v31 }
 0x539   : > { %2261 = vxpose.xlu0.b32.cont [5/16] (narrow) %v2260_v56, 8  ;;  %v1672_v12 = vpack.c.bf16 %v1654_v35, %v1652_v16  ;;  %v1673_v53 = vpack.c.bf16 %v1655_v2, %v1653_v58 }
 0x53b   : > { %1720 = vmatmul.bf16.gmra.mxu1 %v1672_v12  ;;  %1769 = vmatmul.bf16.gmra.mxu2 %v1673_v53 }
 0x53c   : > { %v1752_v1 = vpop.f32.mrf.mxu2 }
 0x53d   : > { %v1753_v23 = vadd.f32 %v1752_v1, %v1703_v15 }
 0x53f   : > { %v2262_v25 = vpack.i.bf16 %v1210_v34, %v1753_v23  ;;  %v1611_v46 = vpop.xlane.xlu1 %1610 }
 0x540   : > { %2486 = vrcp.f32 %v1611_v46 }
 0x541   : > { %2263 = vxpose.xlu0.b32.cont [6/16] (narrow) %v2262_v25, 8 }
 0x544   : > { %v1706_v19 = vpop.f32.mrf.mxu1 }
 0x545   : > { %v1608_v29 = vpop.xlane.xlu0 %1607 }
 0x546   : > { %2488 = vrcp.f32 %v1608_v29  ;;  %v2487_v20 = vpop.eup %2486 }
 0x547   : > { %v1658_v28 = vmul.f32 %v2487_v20, %v3452_v0  ;;  %v1659_v42 = vmul.f32 %v2487_v20, %v3454_v59 }
 0x54a   : > { %v1755_v31 = vpop.f32.mrf.mxu2 }
 0x54b   : > { %v1756_v18 = vadd.f32 %v1755_v31, %v1706_v19  ;;  %v2496_v19 = vld [vmem:[%s2855_s10] sm:$0xff] }
 0x54c   : > { %v2489_v55 = vpop.eup %2488  ;;  %v1708_v9 = vpop.f32.mrf.mxu1 }
 0x54d   : > { %v2264_v26 = vpack.i.bf16 %v3374_v45, %v1756_v18  ;;  %v1656_v38 = vmul.f32 %v2489_v55, %v3460_v62  ;;  %v1657_v52 = vmul.f32 %v2489_v55, %v3462_v60 }
 0x54f   : > { %2265 = vxpose.xlu0.b32.cont [7/16] (narrow) %v2264_v26, 8  ;;  %v1674_v24 = vpack.c.bf16 %v1658_v28, %v1656_v38  ;;  %v1675_v3 = vpack.c.bf16 %v1659_v42, %v1657_v52 }
 0x551   : > { %1725 = vmatmul.bf16.gmra.mxu1 %v1674_v24  ;;  %1774 = vmatmul.bf16.gmra.mxu2 %v1675_v3 }
 0x552   : > { %v1757_v6 = vpop.f32.mrf.mxu2 }
 0x553   : > { %v1758_v49 = vadd.f32 %v1757_v6, %v1708_v9 }
 0x554   : > { %v1711_v45 = vpop.f32.mrf.mxu1 }
 0x555   : > { %v2266_v0 = vpack.i.bf16 %v1215_v33, %v1758_v49 }
 0x557   : > { %2267 = vxpose.xlu0.b32.cont [8/16] (narrow) %v2266_v0, 8  ;;  %v1822_v23 = vpop.permute.xlu1 %1821 }
 0x55a   : > { %v1760_v50 = vpop.f32.mrf.mxu2 }
 0x55b   : > { %v1761_v62 = vadd.f32 %v1760_v50, %v1711_v45 }
 0x55c   : > { %v1713_v59 = vpop.f32.mrf.mxu1 }
 0x55d   : > { %v2268_v60 = vpack.i.bf16 %v3388_v17, %v1761_v62 }
 0x55f   : > { %2269 = vxpose.xlu0.b32.cont [9/16] (narrow) %v2268_v60, 8 }
 0x562   : > { %v1762_v37 = vpop.f32.mrf.mxu2 }
 0x563   : > { %v1763_v41 = vadd.f32 %v1762_v37, %v1713_v59 }
 0x565   : > { %v2270_v54 = vpack.i.bf16 %v1220_v21, %v1763_v41 }
 0x567   : > { %2271 = vxpose.xlu0.b32.cont [10/16] (narrow) %v2270_v54, 8 }
 0x5a0   : > { %v1716_v51 = vpop.f32.mrf.mxu1 }
 0x5a6   : > { %v1765_v36 = vpop.f32.mrf.mxu2 }
 0x5a7   : > { %v1766_v63 = vadd.f32 %v1765_v36, %v1716_v51  ;;  %v1877_v36 = vpop.permute.xlu1 %1876 }
 0x5a8   : > { %v1718_v43 = vpop.f32.mrf.mxu1 }
 0x5a9   : > { %v2272_v5 = vpack.i.bf16 %v3396_v57, %v1766_v63 }
 0x5ab   : > { %2273 = vxpose.xlu0.b32.cont [11/16] (narrow) %v2272_v5, 8 }
 0x5ae   : > { %v1767_v47 = vpop.f32.mrf.mxu2 }
 0x5af   : > { %v1768_v39 = vadd.f32 %v1767_v47, %v1718_v43 }
 0x5b1   : > { %v2274_v17 = vpack.i.bf16 %v3410_v8, %v1768_v39  ;;  %v1886_v39 = vld [vmem:[%s3651_s25] sm:$0xf] }
 0x5b3   : > { %2275 = vxpose.xlu0.b32.cont [12/16] (narrow) %v2274_v17, 8  ;;  %v1892_v17 = vpop.permute.xlu1 %1891 }
 0x5b8   : > { %v1721_v4 = vpop.f32.mrf.mxu1 }
 0x5be   : > { %v1770_v32 = vpop.f32.mrf.mxu2 }
 0x5bf   : > { %v1771_v13 = vadd.f32 %v1770_v32, %v1721_v4 }
 0x5c0   : > { %v1723_v10 = vpop.f32.mrf.mxu1 }
 0x5c1   : > { %v2276_v44 = vpack.i.bf16 %v3420_v22, %v1771_v13  ;;  %v1845_v22 = vld [vmem:[%s3649_s14] sm:$0xff]  ;;  %s2141_s14 = sshll.u32 %s1993_s9, 3 }
 0x5c2   : > { %1882 = vperm.xlu2 %2289, %v1845_v22  }
 0x5c3   : > { %2277 = vxpose.xlu0.b32.cont [13/16] (narrow) %v2276_v44, 8 }
 0x5c6   : > { %v1772_v48 = vpop.f32.mrf.mxu2 }
 0x5c7   : > { %v1773_v7 = vadd.f32 %v1772_v48, %v1723_v10 }
 0x5c9   : > { %v2278_v11 = vpack.i.bf16 %v3434_v14, %v1773_v7 }
 0x5cb   : > { %2279 = vxpose.xlu0.b32.cont [14/16] (narrow) %v2278_v11, 8 }
 0x5ce   : > { %v1726_v57 = vpop.f32.mrf.mxu1 }
 0x5d4   : > { %v1775_v30 = vpop.f32.mrf.mxu2 }
 0x5d5   : > { %v1776_v16 = vadd.f32 %v1775_v30, %v1726_v57 }
 0x5d6   : > { %v1728_v8 = vpop.f32.mrf.mxu1 }
 0x5d7   : > { %v2280_v56 = vpack.i.bf16 %v3444_v61, %v1776_v16 }
 0x5d9   : > { %2281 = vxpose.xlu0.b32.cont [15/16] (narrow) %v2280_v56, 8 }
 0x5dc   : > { %v1777_v35 = vpop.f32.mrf.mxu2 }
 0x5dd   : > { %v1778_v58 = vadd.f32 %v1777_v35, %v1728_v8 }
 0x5df   : > { %v2282_v2 = vpack.i.bf16 %v3456_v40, %v1778_v58  ;;  %v1816_v40 = vld [vmem:[%s3650_s23] sm:$0xf]  ;;  %s3654_s23 = sld [smem:[#allocation26_spill]] }
 0x5e1   : > { %2283 = vxpose.xlu0.b32.end [16/16] (narrow) %v2282_v2, 8 }
 0x5e5   : > { %s3655_s10 = smov %s3654_s23  ;;  %s1995_s27 = scalar_lea.hbm %s3654_s23, %s2141_s14 }
 0x5e6   : > { %s1999_s2 = sshll.u32 %s1995_s27, 4  ;;  %s2547_s30 = scalar_lea.hbm %s3655_s10, 32  ;;  %s2000_s2 = int_to_ptr.hbm [resolvable:$true] %s1999_s2 }
 0x5e7   : > { %s2541_s24 = sshra.s32 %s2000_s2, 4  ;;  %s2542_s24 = int_to_ptr.hbm [resolvable:$true] %s2541_s24 }
 0x5e8   : > { %s2543_s21 = scalar_lea.hbm %s2542_s24, 8  ;;  %p2548_p10 = scmp.lt.s32.totalorder %s2542_s24, %s3655_s10 }
 0x5e9   : > { %p2544_p3 = scmp.ne.s32.totalorder %s2542_s24, %s2543_s21  ;;  %p2549_p11 = scmp.lt.s32.totalorder %s2547_s30, %s2543_s21 }
 0x5eb   : > { %p2545_p7 = pnand %p2544_p3, %p2815_p12  ;;  %p2550_p13 = por %p2549_p11, %p2548_p10 }
 0x5ed   : > { %p2546_p9 = pneg %p2545_p7 }
 0x5ef   : > { %p2551_p0 = pnand %p2550_p13, %p2546_p9 }
 0x60d   : > { %v2284_v14 = vpop.trf.xlu0 }
 0x60e   : > { %v2285_v12 = vunpack.i.l.bf16 %v2284_v14  ;;  %v2288_v53 = vunpack.i.h.bf16 %v2284_v14 }
 0x610   : > { %v1813_v15 = vrot.slane %v2285_v12, 4 }
 0x612   : > { %v1815_v1 = vsel %vm657_vm10, %v2288_v53, %v1813_v15 }
 0x613   : > { %v1817_v61 = vpack.c.bf16 %v1815_v1, %v1815_v1 }
 0x615   : > { %v1828_v34 = vsel %vm657_vm10, %v1817_v61, 0 }
 0x616   : > { %1837 = vmatpush.bf16.msra.mxu3 %v1828_v34 }
 0x619   : > { %2136 = vmatmul.msk.bf16.vlgmr.msra.gmra.mxu3 %vm653_vm11, %v1816_v40 }
 0x61c   : > { %v1883_v63 = vpop.permute.xlu2 %1882 }
 0x69c   : > { %v1839_v25 = vpop.f32.mrf.mxu3 }
 0x69d   : > { %v1840_v46 = vadd.f32 %v1839_v25, %v1822_v23 }
 0x69f   : > { %v3525_v29 = vadd.f32 %v2496_v19, %v1840_v46 }
 0x6a1   : > { %v1846_v20 = vrot.slane %v3525_v29, 4 }
 0x6a3   : > { %v1847_v31 = vadd.f32 %v1846_v20, %v3525_v29 }
 0x6a4   : > { %v1841_v18 = vpop.f32.mrf.mxu3 }
 0x6a5   : > { %v1848_v55 = vrot.slane %v1847_v31, 2 }
 0x6a7   : > { %v1849_v28 = vadd.f32 %v1848_v55, %v1847_v31 }
 0x6a9   : > { %v1850_v26 = vrot.slane %v1849_v28, 1 }
 0x6ab   : > { %v1851_v38 = vadd.f32 %v1850_v26, %v1849_v28 }
 0x6ad   : > { %v1852_v52 = vmul.f32 %v1851_v38, %v2858_v27 }
 0x6af   : > { %v1853_v42 = vsub.f32 %v3525_v29, %v1852_v52 }
 0x6b1   : > { %v1854_v9 = vmul.f32 %v1853_v42, %v1853_v42 }
 0x6b3   : > { %v1855_v24 = vrot.slane %v1854_v9, 4 }
 0x6b5   : > { %v1856_v3 = vadd.f32 %v1855_v24, %v1854_v9  ;;  %v1953_v24 = vld [vmem:[%s3653_s11] sm:$0xf] }
 0x6b7   : > { %v1857_v6 = vrot.slane %v1856_v3, 2 }
 0x6b9   : > { %v1858_v33 = vadd.f32 %v1857_v6, %v1856_v3  ;;  %v1959_v3 = vpop.permute.xlu1 %1958 }
 0x6bb   : > { %v1859_v49 = vrot.slane %v1858_v33, 1 }
 0x6bd   : > { %v1860_v0 = vadd.f32 %v1859_v49, %v1858_v33 }
 0x6bf   : > { %v1861_v45 = vmul.f32 %v1860_v0, %v2858_v27 }
 0x6c1   : > { %v1862_v50 = vadd.f32 1e-05, %v1861_v45 }
 0x6c3   : > { %2490 = vrsqrt.f32 %v1862_v50  ;;  %vm1869_vm15 = vweird.f32 %v1862_v50 }
 0x6c9   : > { %v2491_v62 = vpop.eup %2490 }
 0x6ca   : > { %v1864_v60 = vmul.f32 %v2491_v62, %v1862_v50  ;;  %vm1870_vm14 = vweird.f32 %v2491_v62 }
 0x6cb   : > { %vm1871_vm0 = vmor %vm1869_vm15, %vm1870_vm14 }
 0x6cc   : > { %v1865_v59 = vmul.f32 %v2491_v62, %v1864_v60 }
 0x6ce   : > { %v1866_v37 = vmul.f32 0.5, %v1865_v59 }
 0x6d0   : > { %v1867_v21 = vsub.f32 1.5, %v1866_v37 }
 0x6d2   : > { %v1868_v41 = vmul.f32 %v2491_v62, %v1867_v21 }
 0x6d4   : > { %v1872_v54 = vsel %vm1871_vm0, %v2491_v62, %v1868_v41 }
 0x6d5   : > { %v1873_v51 = vmul.f32 %v1872_v54, %v1853_v42 }
 0x6d7   : > { %v1879_v5 = vmul.f32 %v1877_v36, %v1873_v51 }
 0x6d9   : > { %v1885_v43 = vadd.f32 %v1883_v63, %v1879_v5 }
 0x6db   : > { %v1887_v47 = vpack.c.bf16 %v1885_v43, %v1885_v43 }
 0x6dd   : > { %v1898_v27 = vsel %vm657_vm10, %v1887_v47, 0 }
 0x6de   : > { %1907 = vmatpush.bf16.msrb.mxu0 %v1898_v27 }
 0x6e1   : > { %2137 = vmatmul.msk.bf16.vlgmr.msrb.gmra.mxu0 %vm653_vm11, %v1886_v39 }
 0x75e   : > { %v1909_v4 = vpop.f32.mrf.mxu0 }
 0x75f   : > { %v1910_v32 = vadd.f32 %v1909_v4, %v1892_v17 }
 0x761   : > { %v1914_v13 = vmul.f32 0.70710677, %v1910_v32  ;;  %v1913_v26 = vmul.f32 0.5, %v1910_v32 }
 0x763   : > { %v1915_v44 = vand.u32 2147483647, %v1914_v13  ;;  %vm1948_vm5 = vcmp.ge.f32.partialorder %v1914_v13, 0.0 }
 0x765   : > { %v1916_v10 = vmul.f32 0.3275911, %v1915_v44  ;;  %v1942_v14 = vmul.f32 %v1915_v44, %v1915_v44 }
 0x766   : > { %v1911_v48 = vpop.f32.mrf.mxu0 }
 0x767   : > { %v1917_v7 = vadd.f32 1.0, %v1916_v10  ;;  %v1943_v15 = vsub.f32 0.0, %v1942_v14 }
 0x769   : > { %2492 = vrcp.f32 %v1917_v7  ;;  %v1929_v16 = vand.u32 2147483648, %v1917_v7  ;;  %v1927_v8 = vand.u32 2147483647, %v1917_v7  ;;  %vm1923_vm2 = vweird.f32 %v1917_v7 }
 0x76a   : > { %v1944_v34 = vmul.f32 1.442695, %v1943_v15 }
 0x76b   : > { %v1930_v58 = vor.u32 1.1754944e-38, %v1929_v16  ;;  %vm1928_vm4 = vcmp.eq.f32.partialorder %v1927_v8, 8.507059e+37 }
 0x76c   : > { %2494 = vpow2.f32 %v1944_v34 }
 0x76f   : > { %v2493_v11 = vpop.eup %2492 }
 0x770   : > { %v1919_v57 = vmul.f32 %v2493_v11, %v1917_v7  ;;  %vm1924_vm1 = vweird.f32 %v2493_v11 }
 0x771   : > { %vm1925_vm3 = vmor %vm1923_vm2, %vm1924_vm1 }
 0x772   : > { %v1920_v30 = vsub.f32 1.0, %v1919_v57  ;;  %v2495_v20 = vpop.eup %2494 }
 0x774   : > { %v1921_v56 = vmul.f32 %v2493_v11, %v1920_v30 }
 0x776   : > { %v1922_v35 = vadd.f32 %v2493_v11, %v1921_v56 }
 0x778   : > { %v1926_v2 = vsel %vm1925_vm3, %v2493_v11, %v1922_v35 }
 0x779   : > { %v1931_v22 = vsel %vm1928_vm4, %v1930_v58, %v1926_v2 }
 0x77a   : > { %v1933_v12 = vmul.f32 1.0614054, %v1931_v22 }
 0x77c   : > { %v1934_v53 = vadd.f32 -1.4531521, %v1933_v12 }
 0x77e   : > { %v1935_v1 = vmul.f32 %v1934_v53, %v1931_v22 }
 0x780   : > { %v1936_v61 = vadd.f32 1.4214138, %v1935_v1 }
 0x782   : > { %v1937_v40 = vmul.f32 %v1936_v61, %v1931_v22 }
 0x784   : > { %v1938_v23 = vadd.f32 -0.28449672, %v1937_v40 }
 0x786   : > { %v1939_v25 = vmul.f32 %v1938_v23, %v1931_v22 }
 0x788   : > { %v1940_v46 = vadd.f32 0.2548296, %v1939_v25 }
 0x78a   : > { %v1941_v19 = vmul.f32 %v1940_v46, %v1931_v22 }
 0x78c   : > { %v1946_v31 = vmul.f32 %v2495_v20, %v1941_v19 }
 0x78e   : > { %v1947_v18 = vsub.f32 1.0, %v1946_v31 }
 0x790   : > { %v1949_v55 = vsub.f32 0.0, %v1947_v18 }
 0x792   : > { %v1950_v28 = vsel %vm1948_vm5, %v1947_v18, %v1949_v55 }
 0x793   : > { %v1951_v38 = vadd.f32 1.0, %v1950_v28 }
 0x795   : > { %v1952_v52 = vmul.f32 %v1951_v38, %v1913_v26 }
 0x797   : > { %v1954_v42 = vpack.c.bf16 %v1952_v52, %v1952_v52 }
 0x799   : > { %v1965_v9 = vsel %vm657_vm10, %v1954_v42, 0 }
 0x79a   : > { %1974 = vmatpush.bf16.msrb.mxu1 %v1965_v9 }
 0x79d   : > { %2138 = vmatmul.msk.bf16.vlgmr.msrb.gmra.mxu1 %vm653_vm11, %v1953_v24 }
 0x81a   : > { %v1976_v6 = vpop.f32.mrf.mxu1 }
 0x81b   : > { %v1977_v33 = vadd.f32 %v1976_v6, %v1959_v3 }
 0x81d   : > { %v1980_v49 = vadd.f32 %v1977_v33, %v3525_v29 }
 0x81f   : > { %1981 = vst [vmem:[%s526_s0] sm:$0xff] %v1980_v49 }
 0x820   : > { %2554 = shalt.err (!%p2551_p0)
}
 0x821   : > { %2148 = dma.vmem_to_hbm [thread:$0]  (%p2815_p12), %s1998_s1, 128, %s2000_s2, %s1983_s29  }
 0x822   : > { %v1978_v29 = vpop.f32.mrf.mxu1 }
 0x823 PF: > { %p2159_p1 = scmp.ge.s32.totalorder %s2649_s28, 2  ;;  %s2011_s0 = sand.u32 1, %s2609_s18  }
 0x824   : > { %s2012_s12 = scalar_lea.sflag [#allocation4], %s2011_s0 }
 0x825   : > { %p2155_p4 = pnand %p2159_p1, %p2828_p2 }
 0x827   : > { %p2156_p5 = pneg %p2155_p4 }
 0x829   : > { %2604 = dma.done.wait (%p2156_p5), %s2012_s12, 128  }
 0x82a   : > { %2606 = vsyncadd (%p2156_p5), %s2012_s12, 4294967168  ;;  %s31_s28 = sadd.s32 1, %s2649_s28   ;;  %s3657_s1 = sld [smem:[#allocation8_spill]] }
 0x82b   : > { %p28_p6 = scmp.ge.s32.totalorder %s31_s28, 6   ;;  %s3658_s23 = sld [smem:[#allocation15_spill]] }
 0x82c   : > { %s3659_s24 = sld [smem:[#allocation10_spill]]  ;;  %s3663_s18 = smov %s2613_s19 }
 0x82d   : > { %s3660_s25 = sld [smem:[#allocation11_spill]]  ;;  %s3664_s19 = smov %s2617_s20 }
 0x82e   : > { %s3661_s2 = sld [smem:[#allocation12_spill]]  ;;  %s3665_s20 = smov %s2823_s26 }
 0x82f   : > { %s3662_s27 = sld [smem:[#allocation13_spill]]  ;;  %s3666_s21 = smov %s2625_s22 }
 0x830   : > { %s3667_s22 = smov %s3657_s1  ;;  %30 = sbr.rel (!%p28_p6) target bundleno = 21 (0x15), region = 126 }
 0x834   : > { %s3668_s26 = smov %s3661_s2 }
 0x835   :  { %2018 = vsyncpa [#allocation3], 1 }
 0x836   :  { %2020 = vsyncpa [#allocation3 + $0x1], 1 }
 0x837   :  { %2021 = vsyncpa [#allocation4], 1 }
 0x838   :  { %2023 = vsyncpa [#allocation4 + $0x1], 1 }

// kernel: tpu_custom_call.1
= control target key start
LH: loop header
LB: loop body
LE: loop exit
PB: predicated region body
PF: predicated region fallthrough
CT: control target
= control target key end

     0   :  { %s3596_s0 = inlined_call_operand.hbm [shape: f32[2,8,256], index: 0, kind: input, shape index: {}]   ;;  %s3597_s1 = inlined_call_operand.vmem [shape: f32[8,1], index: 1, kind: input, shape index: {}]   ;;  %s3598_s2 = inlined_call_operand.vmem [shape: f32[8,1], index: 2, kind: input, shape index: {}]   ;;  %s3599_s3 = inlined_call_operand.vmem [shape: bf16[8,8], index: 3, kind: input, shape index: {}]   ;;  %s3600_s4 = inlined_call_operand.vmem [shape: f32[8,1], index: 4, kind: input, shape index: {}]   ;;  %s3601_s5 = inlined_call_operand.vmem [shape: bf16[16,8], index: 5, kind: input, shape index: {}]   ;;  %s3602_s6 = inlined_call_operand.vmem [shape: f32[16,1], index: 6, kind: input, shape index: {}]   ;;  %s3603_s7 = inlined_call_operand.vmem [shape: bf16[8,8], index: 7, kind: input, shape index: {}]   ;;  %s3604_s8 = inlined_call_operand.vmem [shape: f32[8,1], index: 8, kind: input, shape index: {}]   ;;  %s3605_s9 = inlined_call_operand.vmem [shape: f32[8,1], index: 9, kind: input, shape index: {}]   ;;  %s3606_s10 = inlined_call_operand.vmem [shape: f32[8,1], index: 10, kind: input, shape index: {}]   ;;  %s3607_s11 = inlined_call_operand.vmem [shape: bf16[8,8], index: 11, kind: input, shape index: {}]   ;;  %s3608_s12 = inlined_call_operand.vmem [shape: f32[8,1], index: 12, kind: input, shape index: {}]   ;;  %s3609_s13 = inlined_call_operand.vmem [shape: bf16[8,8], index: 13, kind: input, shape index: {}]   ;;  %s3610_s14 = inlined_call_operand.vmem [shape: f32[8,1], index: 14, kind: input, shape index: {}]   ;;  %s3611_s15 = inlined_call_operand.hbm [shape: f32[2,8,256], index: 15, kind: output, shape index: {}]  }
   0x1   :  { %3620 = sst [smem:[#allocation16_spill]] %s3596_s0 }
   0x2   :  { %3621 = sst [smem:[#allocation17_spill]] %s3597_s1 }
   0x3   :  { %3622 = sst [smem:[#allocation18_spill]] %s3598_s2 }
   0x4   :  { %3623 = sst [smem:[#allocation19_spill]] %s3603_s7 }
   0x5   :  { %3624 = sst [smem:[#allocation20_spill]] %s3605_s9 }
   0x6   :  { %3625 = sst [smem:[#allocation21_spill]] %s3606_s10 }
   0x7   :  { %3626 = sst [smem:[#allocation22_spill]] %s3607_s11 }
   0x8   :  { %3627 = sst [smem:[#allocation23_spill]] %s3608_s12 }
   0x9   :  { %3628 = sst [smem:[#allocation24_spill]] %s3609_s13 }
   0xa   :  { %3629 = sst [smem:[#allocation25_spill]] %s3610_s14 }
   0xb   :  { %3630 = sst [smem:[#allocation26_spill]] %s3611_s15 }
   0xc   :  { %20 = vsyncpa [#allocation3], 0 }
   0xd   :  { %22 = vsyncpa [#allocation3 + $0x1], 0 }
   0xe   :  { %23 = vsyncpa [#allocation4], 0 }
   0xf   :  { %25 = vsyncpa [#allocation4 + $0x1], 0  ;;  %s2733_s18 = smov 0   ;;  %s2735_s19 = smov 0  }
  0x10   :  { %s2737_s20 = smov 0   ;;  %s2739_s21 = smov 0  }
  0x11   :  { %s2741_s22 = smov 0   ;;  %s2743_s23 = smov 0  }
  0x12   :  { %s2745_s24 = smov 0   ;;  %s2747_s25 = smov 0  }
  0x13   :  { %s2749_s26 = smov 0   ;;  %s2751_s27 = smov 0  }
  0x14   :  { %s2753_s28 = smov 0  }
  0x15 LB: > { %3631 = sst [smem:[#allocation8_spill]] %s2629_s23  ;;  %s2085_s29 = sadd.s32 4294967295, %s2649_s28   ;;  %s2649_s28 = sphi %s2753_s28, %s31_s28   ;;  %s2645_s27 = sphi %s2751_s27, %s3662_s27   ;;  %s2641_s26 = sphi %s2749_s26, %s3668_s26   ;;  %s2637_s25 = sphi %s2747_s25, %s3660_s25   ;;  %s2633_s24 = sphi %s2745_s24, %s3659_s24   ;;  %s2629_s23 = sphi %s2743_s23, %s3658_s23   ;;  %s2625_s22 = sphi %s2741_s22, %s3667_s22   ;;  %s2621_s21 = sphi %s2739_s21, %s3666_s21   ;;  %s2617_s20 = sphi %s2737_s20, %s3665_s20   ;;  %s2613_s19 = sphi %s2735_s19, %s3664_s19   ;;  %s2609_s18 = sphi %s2733_s18, %s3663_s18  }
  0x16   : > { %3632 = sst [smem:[#allocation9_spill]] %s2637_s25  ;;  %s2086_s30 = sadd.s32 4294967294, %s2649_s28  }
  0x17   : > { %3633 = sst [smem:[#allocation10_spill]] %s2641_s26  ;;  %s40_s16 = sadd.s32 1, %s2641_s26 }
  0x18   : > { %3634 = sst [smem:[#allocation11_spill]] %s2645_s27  ;;  %s43_s17 = sadd.s32 1, %s2645_s27 }
  0x19   : > { %p41_p0 = scmp.ge.s32.totalorder %s40_s16, 2  ;;  %s50_s15 = sadd.s32 1, %s2629_s23 }
  0x1a   : > { %p57_p1 = scmp.ne.s32.totalorder %s2629_s23, %s2625_s22  ;;  %p58_p2 = scmp.eq.s32.totalorder %s2649_s28, 0 }
  0x1b   : > { %s3670_s16 = smov (%p41_p0, %s40_s16), 0  ;;  %s3672_s17 = smov (!%p41_p0, %s43_s17), %s2645_s27 }
  0x1c   : > { %3635 = sst [smem:[#allocation12_spill]] %s3670_s16  ;;  %p2797_p3 = por %p58_p2, %p57_p1 }
  0x1d   : > { %p63_p4 = scmp.ne.s32.totalorder %s2625_s22, %s2621_s21  ;;  %p45_p5 = scmp.ge.s32.totalorder %s3672_s17, 2 }
  0x1e   : > { %p64_p6 = scmp.eq.s32.totalorder %s2085_s29, 0  ;;  %s368_s25 = ssub.s32 %s2641_s26, %s3670_s16 }
  0x1f   : > { %s372_s11 = sadd.s32 1, %s2617_s20  ;;  %s3674_s17 = smov (%p45_p5, %s3672_s17), 0 }
  0x20   : > { %3637 = sst [smem:[#allocation13_spill]] %s3674_s17  ;;  %p2807_p7 = por %p64_p6, %p63_p4 }
  0x21   : > { %p382_p8 = scmp.ne.s32.totalorder %s2617_s20, %s2613_s19  ;;  %s47_s10 = ssub.s32 %s2645_s27, %s3674_s17 }
  0x22   : > { %p383_p9 = scmp.eq.s32.totalorder %s2085_s29, 3  ;;  %p48_p10 = scmp.eq.s32.totalorder %s47_s10, 0 }
  0x23   : > { %s369_s21 = sor.u32 %s368_s25, %s47_s10  ;;  %p388_p13 = scmp.ne.s32.totalorder %s2613_s19, %s2609_s18 }
  0x24   : > { %p370_p11 = scmp.eq.s32.totalorder %s369_s21, 0  ;;  %p2815_p12 = por %p383_p9, %p382_p8 }
  0x25   : > { %s2820_s16 = scalar_select %p48_p10, %s2629_s23, %s50_s15  }
  0x26   : > { %s3639_s14 = scalar_select %p2815_p12, 1, 0 }
  0x27   : > { %3641 = sst [smem:[#allocation15_spill]] %s2820_s16  ;;  %p389_p0 = scmp.eq.s32.totalorder %s2086_s30, 3 }
  0x28   : > { %3640 = sst [smem:[#allocation14_spill]] %s3639_s14  ;;  %p2158_p1 = scmp.lt.s32.totalorder %s2649_s28, 4 }
  0x29   : > { %s2823_s26 = scalar_select %p370_p11, %s2617_s20, %s372_s11  }
  0x2a   : > { %p2828_p2 = por %p389_p0, %p388_p13  ;;  %s451_s10 = sand.u32 1, %s2629_s23  }
  0x2b   : > { %s2089_s25 = sshll.u32 %s451_s10, 4  ;;  %s2144_s29 = sshll.u32 %s2645_s27, 4 }
  0x2c   : > { %s3643_s0 = sld [smem:[#allocation16_spill]]  ;;  %s455_s15 = scalar_lea.vmem [#allocation2], %s2089_s25 }
  0x2d   : > { %s464_s16 = sshll.u32 %s455_s15, 4  ;;  %p2151_p4 = pnand %p2158_p1, %p2797_p3  ;;  %s465_s16 = int_to_ptr.vmem [resolvable:$true] %s464_s16 }
  0x2e   : > { %p2092_p5 = scmp.ge.s32.totalorder %s2649_s28, 1  ;;  %p469_p6 = scmp.lt.s32.totalorder %s2649_s28, 5 }
  0x2f   : > { %s452_s11 = scalar_lea.sflag [#allocation3], %s451_s10 }
  0x30   : > { %p470_p8 = pnand %p2092_p5, %p469_p6 }
  0x31   : > { %s475_s30 = sand.u32 (!%p470_p8), 1, %s2625_s22  }
  0x32   : > { %s460_s14 = scalar_lea.hbm %s3643_s0, %s2144_s29  ;;  %473 = sbr.rel (%p470_p8) target bundleno = 2083 (0x823), region = 80 }
  0x33   : > { %s462_s9 = sshll.u32 %s460_s14, 4  ;;  %s2093_s27 = sshll.u32 (!%p470_p8), %s475_s30, 4  ;;  %s463_s9 = int_to_ptr.hbm [resolvable:$true] %s462_s9 }
  0x34   : > { %2153 = dma.hbm_to_vmem [thread:$0]  (!%p2151_p4), %s463_s9, 256, %s465_s16, %s452_s11  }
  0x35   : > { %s476_s23 = scalar_lea.sflag (!%p470_p8), [#allocation3], %s475_s30  ;;  %s479_s12 = scalar_lea.vmem (!%p470_p8), [#allocation2], %s2093_s27 }
  0x37   : > { %2600 = dma.done.wait (%p2807_p7), %s476_s23, 256  }
  0x38   : > { %2602 = vsyncadd (%p2807_p7), %s476_s23, 4294967040  ;;  %v2651_v0 = vmov 0   ;;  %s3644_s1 = sld [smem:[#allocation17_spill]]  ;;  %v2652_v3 = vmov 8.0   ;;  %s2095_s7 = sshll.u32 %s2633_s24, 7  ;;  %v534_v8 = vld [vmem:[%s479_s12] sm:$0xff] }
  0x39   : > { %2250 = vset.pattern.permute.xlu0 %v2651_v0  ;;  %2251 = vset.pattern.permute.xlu1 %v2651_v0  ;;  %s3645_s2 = sld [smem:[#allocation18_spill]]  ;;  %2290 = vrcp.f32 %v2652_v3  ;;  %s529_s23 = sshra.s32 %s2095_s7, 7  ;;  %v535_v9 = vld [vmem:[%s479_s12 + $0x8] sm:$0xff]  ;;  %v585_v11 = vrot.slane %v534_v8, 4  ;;  %vm657_vm10 = vcmask 1043456   ;;  %vm653_vm11 = vcmask 64512  }
  0x3a   : > { %s2096_s27 = sshll.u32 %s529_s23, 3  ;;  %v591_v12 = vrot.slane %v535_v9, 4  ;;  %vm778_vm12 = vcmask 1041408   ;;  %vm753_vm13 = vcmask 31744   ;;  %s3646_s25 = sld [smem:[#allocation20_spill]] }
  0x3b   : > { %s2855_s10 = scalar_lea.vmem %s479_s12, %s2096_s27 [#allocation2]  ;;  %v586_v15 = vadd.f32 %v585_v11, %v534_v8  ;;  %s3647_s15 = sld [smem:[#allocation23_spill]] }
  0x3c   : > { %v533_v7 = vld [vmem:[%s2855_s10] sm:$0xff]  ;;  %v592_v16 = vadd.f32 %v591_v12, %v535_v9  ;;  %s3648_s12 = sld [smem:[#allocation25_spill]] }
  0x3d   : > { %v538_v10 = vrot.slane %v533_v7, 4  ;;  %v587_v18 = vrot.slane %v586_v15, 2  ;;  %s3649_s14 = sld [smem:[#allocation21_spill]] }
  0x3e   : > { %v536_v1 = vld [vmem:[%s3644_s1] sm:$0xff]  ;;  %v593_v19 = vrot.slane %v592_v16, 2  ;;  %s3650_s23 = sld [smem:[#allocation19_spill]] }
  0x3f   : > { %575 = vperm.xlu0 %2250, %v536_v1   ;;  %v537_v2 = vld [vmem:[%s3645_s2] sm:$0xff]  ;;  %v2291_v4 = vpop.eup %2290  ;;  %v539_v14 = vadd.f32 %v538_v10, %v533_v7  ;;  %v588_v22 = vadd.f32 %v587_v18, %v586_v15  ;;  %s3652_s29 = sld [smem:[#allocation9_spill]] }
  0x40   : > { %v545_v5 = vmul.f32 8.0, %v2291_v4  ;;  %vm549_vm0 = vweird.f32 %v2291_v4  ;;  %v594_v23 = vadd.f32 %v593_v19, %v592_v16  ;;  %v647_v10 = vld [vmem:[%s3600_s4] sm:$0xff]  ;;  %s3653_s11 = sld [smem:[#allocation24_spill]] }
  0x41   : > { %v540_v17 = vrot.slane %v539_v14, 2  ;;  %v589_v25 = vrot.slane %v588_v22, 1  ;;  %650 = vperm.xlu1 %2251, %v647_v10  }
  0x42   : > { %v546_v6 = vsub.f32 1.0, %v545_v5  ;;  %v595_v26 = vrot.slane %v594_v23, 1 }
  0x43   : > { %v541_v21 = vadd.f32 %v540_v17, %v539_v14  ;;  %v590_v29 = vadd.f32 %v589_v25, %v588_v22  ;;  %v678_v17 = vld [vmem:[%s3602_s6] sm:$0xff] }
  0x44   : > { %v547_v13 = vmul.f32 %v2291_v4, %v546_v6  ;;  %v596_v30 = vadd.f32 %v595_v26, %v594_v23 }
  0x45   : > { %v542_v24 = vrot.slane %v541_v21, 1  ;;  %s2140_s30 = sshll.u32 %s3652_s29, 1 }
  0x46   : > { %v548_v20 = vadd.f32 %v2291_v4, %v547_v13  ;;  %s1993_s9 = sadd.s32 %s2633_s24, %s2140_s30 }
  0x47   : > { %581 = vperm.xlu0 %2250, %v537_v2   ;;  %v543_v28 = vadd.f32 %v542_v24, %v541_v21 }
  0x48   : > { %v2858_v27 = vsel %vm549_vm0, %v2291_v4, %v548_v20 }
  0x49   : > { %v551_v31 = vmul.f32 %v2858_v27, %v543_v28  ;;  %v597_v32 = vmul.f32 %v590_v29, %v2858_v27  ;;  %v598_v33 = vmul.f32 %v596_v30, %v2858_v27  ;;  %682 = vperm.xlu1 %2251, %v678_v17  }
  0x4b   : > { %v2863_v34 = vsub.f32 %v533_v7, %v551_v31  ;;  %v2865_v35 = vsub.f32 %v534_v8, %v597_v32  ;;  %v2867_v36 = vsub.f32 %v535_v9, %v598_v33 }
  0x4d   : > { %v553_v37 = vmul.f32 %v2863_v34, %v2863_v34  ;;  %v601_v38 = vmul.f32 %v2865_v35, %v2865_v35  ;;  %v602_v39 = vmul.f32 %v2867_v36, %v2867_v36 }
  0x4f   : > { %v554_v40 = vrot.slane %v553_v37, 4  ;;  %v603_v41 = vrot.slane %v601_v38, 4  ;;  %v609_v42 = vrot.slane %v602_v39, 4 }
  0x51   : > { %v555_v43 = vadd.f32 %v554_v40, %v553_v37  ;;  %v604_v44 = vadd.f32 %v603_v41, %v601_v38  ;;  %v610_v45 = vadd.f32 %v609_v42, %v602_v39 }
  0x53   : > { %v556_v46 = vrot.slane %v555_v43, 2  ;;  %v605_v47 = vrot.slane %v604_v44, 2  ;;  %v611_v48 = vrot.slane %v610_v45, 2 }
  0x55   : > { %v557_v49 = vadd.f32 %v556_v46, %v555_v43  ;;  %v606_v50 = vadd.f32 %v605_v47, %v604_v44  ;;  %v612_v51 = vadd.f32 %v611_v48, %v610_v45 }
  0x57   : > { %v558_v52 = vrot.slane %v557_v49, 1  ;;  %v607_v53 = vrot.slane %v606_v50, 1  ;;  %v613_v54 = vrot.slane %v612_v51, 1 }
  0x59   : > { %v559_v55 = vadd.f32 %v558_v52, %v557_v49  ;;  %v608_v56 = vadd.f32 %v607_v53, %v606_v50  ;;  %v614_v57 = vadd.f32 %v613_v54, %v612_v51 }
  0x5b   : > { %v560_v58 = vmul.f32 %v559_v55, %v2858_v27  ;;  %v615_v59 = vmul.f32 %v608_v56, %v2858_v27  ;;  %v616_v60 = vmul.f32 %v614_v57, %v2858_v27 }
  0x5d   : > { %v561_v61 = vadd.f32 1e-05, %v560_v58  ;;  %v617_v62 = vadd.f32 1e-05, %v615_v59  ;;  %v618_v63 = vadd.f32 1e-05, %v616_v60 }
  0x5f   : > { %2292 = vrsqrt.f32 %v561_v61  ;;  %vm568_vm1 = vweird.f32 %v561_v61  ;;  %vm625_vm3 = vweird.f32 %v617_v62  ;;  %vm635_vm5 = vweird.f32 %v618_v63 }
  0x60   : > { %2294 = vrsqrt.f32 %v617_v62 }
  0x61   : > { %2296 = vrsqrt.f32 %v618_v63 }
  0x65   : > { %v2293_v1 = vpop.eup %2292 }
  0x66   : > { %v2295_v2 = vpop.eup %2294  ;;  %v563_v4 = vmul.f32 %v2293_v1, %v561_v61  ;;  %vm569_vm2 = vweird.f32 %v2293_v1 }
  0x67   : > { %v2297_v3 = vpop.eup %2296  ;;  %v620_v5 = vmul.f32 %v2295_v2, %v617_v62  ;;  %vm626_vm4 = vweird.f32 %v2295_v2  ;;  %vm570_vm7 = vmor %vm568_vm1, %vm569_vm2 }
  0x68   : > { %v630_v6 = vmul.f32 %v2297_v3, %v618_v63  ;;  %v564_v7 = vmul.f32 %v2293_v1, %v563_v4  ;;  %vm636_vm6 = vweird.f32 %v2297_v3  ;;  %vm627_vm8 = vmor %vm625_vm3, %vm626_vm4 }
  0x69   : > { %v621_v8 = vmul.f32 %v2295_v2, %v620_v5  ;;  %vm637_vm9 = vmor %vm635_vm5, %vm636_vm6 }
  0x6a   : > { %v631_v9 = vmul.f32 %v2297_v3, %v630_v6  ;;  %v565_v11 = vmul.f32 0.5, %v564_v7 }
  0x6b   : > { %v622_v12 = vmul.f32 0.5, %v621_v8 }
  0x6c   : > { %v632_v13 = vmul.f32 0.5, %v631_v9  ;;  %v566_v14 = vsub.f32 1.5, %v565_v11 }
  0x6d   : > { %v623_v15 = vsub.f32 1.5, %v622_v12 }
  0x6e   : > { %v633_v16 = vsub.f32 1.5, %v632_v13  ;;  %v567_v18 = vmul.f32 %v2293_v1, %v566_v14 }
  0x6f   : > { %v624_v19 = vmul.f32 %v2295_v2, %v623_v15 }
  0x70   : > { %v634_v20 = vmul.f32 %v2297_v3, %v633_v16  ;;  %v571_v22 = vsel %vm570_vm7, %v2293_v1, %v567_v18 }
  0x71   : > { %v628_v23 = vsel %vm627_vm8, %v2295_v2, %v624_v19  ;;  %v572_v25 = vmul.f32 %v571_v22, %v2863_v34 }
  0x72   : > { %v638_v24 = vsel %vm637_vm9, %v2297_v3, %v634_v20  ;;  %v639_v26 = vmul.f32 %v628_v23, %v2865_v35  ;;  %v2145_v35 = vld [vmem:[%s3601_s5] sm:$0xff] }
  0x73   : > { %v640_v28 = vmul.f32 %v638_v24, %v2867_v36  ;;  %v645_v36 = vld [vmem:[%s3599_s3] sm:$0xf] }
  0xb1   : > { %v576_v21 = vpop.permute.xlu0 %575 }
  0xb2   : > { %v578_v29 = vmul.f32 %v576_v21, %v572_v25  ;;  %v641_v30 = vmul.f32 %v639_v26, %v576_v21  ;;  %v642_v31 = vmul.f32 %v640_v28, %v576_v21 }
  0xb3   : > { %v651_v44 = vpop.permute.xlu1 %650 }
  0xb9   : > { %v582_v32 = vpop.permute.xlu0 %581 }
  0xba   : > { %v584_v33 = vadd.f32 %v582_v32, %v578_v29  ;;  %v643_v37 = vadd.f32 %v641_v30, %v582_v32  ;;  %v644_v38 = vadd.f32 %v642_v31, %v582_v32 }
  0xbb   : > { %v683_v45 = vpop.permute.xlu1 %682 }
  0xbc   : > { %v646_v39 = vpack.c.bf16 %v584_v33, %v584_v33  ;;  %v676_v40 = vpack.c.bf16 %v643_v37, %v643_v37  ;;  %v677_v41 = vpack.c.bf16 %v644_v38, %v644_v38 }
  0xbe   : > { %v659_v42 = vsel %vm657_vm10, %v646_v39, 0  ;;  %v699_v43 = vsel %vm657_vm10, %v676_v40, 0  ;;  %v702_v34 = vsel %vm657_vm10, %v677_v41, 0 }
  0xbf   : > { %668 = vmatpush.bf16.msra.mxu0 %v659_v42  ;;  %711 = vmatpush.bf16.msra.mxu1 %v699_v43 }
  0xc0   : > { %725 = vmatpush.bf16.msra.mxu2 %v702_v34 }
  0xc2   : > { %2097 = vmatmul.msk.bf16.vlgmr.msra.gmra.mxu0 %vm653_vm11, %v645_v36  ;;  %2102 = vmatmul.msk.bf16.vlgmr.msra.gmra.mxu1 %vm653_vm11, %v2145_v35 }
  0xc3   : > { %2103 = vmatmul.msk.bf16.vlgmr.msra.gmra.mxu2 %vm653_vm11, %v2145_v35 }
 0x13f   : > { %v670_v46 = vpop.f32.mrf.mxu0  ;;  %v713_v47 = vpop.f32.mrf.mxu1 }
 0x140   : > { %v671_v48 = vadd.f32 %v670_v46, %v651_v44  ;;  %v714_v49 = vadd.f32 %v713_v47, %v683_v45 }
 0x142   : > { %v732_v50 = vpack.c.bf16 %v671_v48, %v671_v48  ;;  %v733_v51 = vpack.c.bf16 %v714_v49, %v714_v49 }
 0x144   : > { %737 = vxpose.xlu2.c.b16.start.end [1/1] (short) %v732_v50, 128  ;;  %v780_v52 = vsel %vm778_vm12, %v733_v51, 0  ;;  %v1290_v53 = vrot.slane %v733_v51, 2  ;;  %v1270_v62 = vrot.slane %v732_v50, 2 }
 0x145   : > { %792 = vmatpush.bf16.msra.mxu3 %v780_v52 }
 0x146   : > { %v727_v54 = vpop.f32.mrf.mxu2  ;;  %v1317_v55 = vsel %vm778_vm12, %v1290_v53, 0 }
 0x147   : > { %v728_v56 = vadd.f32 %v727_v54, %v683_v45  ;;  %v672_v57 = vpop.f32.mrf.mxu0 }
 0x149   : > { %1329 = vmatpush.bf16.msrb.mxu3 %v1317_v55  ;;  %v734_v58 = vpack.c.bf16 %v728_v56, %v728_v56 }
 0x14b   : > { %v1291_v59 = vrot.slane %v734_v58, 2  ;;  %v783_v60 = vsel %vm778_vm12, %v734_v58, 0 }
 0x14c   : > { %841 = vmatpush.bf16.msrb.mxu0 %v783_v60 }
 0x14d   : > { %v1320_v61 = vsel %vm778_vm12, %v1291_v59, 0 }
 0x150   : > { %1378 = vmatpush.bf16.msra.mxu0 %v1320_v61 }
 0x1c4   : > { %1272 = vxpose.xlu2.c.b16.start.end [1/1] (short) %v1270_v62, 128 }
 0x1e5   : > { %v745_v63 = vpop.trf.xlu2 }
 0x1e6   : > { %2104 = vmatmul.msk.bf16.vlgmr.msra.gmra.mxu3 %vm753_vm13, %v745_v63  ;;  %2112 = vmatmul.msk.bf16.vlgmr.msrb.gmra.mxu0 %vm753_vm13, %v745_v63 }
 0x1f5   : > { %v746_v1 = vpop.trf.xlu2 }
 0x1f6   : > { %2105 = vmatmul.msk.bf16.gmra.mxu3 %vm753_vm13, %v746_v1  ;;  %2113 = vmatmul.msk.bf16.gmra.mxu0 %vm753_vm13, %v746_v1 }
 0x205   : > { %v747_v2 = vpop.trf.xlu2 }
 0x206   : > { %2106 = vmatmul.msk.bf16.gmra.mxu3 %vm753_vm13, %v747_v2  ;;  %2114 = vmatmul.msk.bf16.gmra.mxu0 %vm753_vm13, %v747_v2 }
 0x215   : > { %v748_v3 = vpop.trf.xlu2 }
 0x216   : > { %2107 = vmatmul.msk.bf16.gmra.mxu3 %vm753_vm13, %v748_v3  ;;  %2115 = vmatmul.msk.bf16.gmra.mxu0 %vm753_vm13, %v748_v3 }
 0x225   : > { %v749_v4 = vpop.trf.xlu2 }
 0x226   : > { %2108 = vmatmul.msk.bf16.gmra.mxu3 %vm753_vm13, %v749_v4  ;;  %2116 = vmatmul.msk.bf16.gmra.mxu0 %vm753_vm13, %v749_v4 }
 0x227   : > { %2289 = vset.pattern.permute.xlu2 %v2651_v0 }
 0x235   : > { %v750_v5 = vpop.trf.xlu2 }
 0x236   : > { %2109 = vmatmul.msk.bf16.gmra.mxu3 %vm753_vm13, %v750_v5  ;;  %2117 = vmatmul.msk.bf16.gmra.mxu0 %vm753_vm13, %v750_v5 }
 0x245   : > { %v751_v10 = vpop.trf.xlu2 }
 0x246   : > { %2110 = vmatmul.msk.bf16.gmra.mxu3 %vm753_vm13, %v751_v10  ;;  %2118 = vmatmul.msk.bf16.gmra.mxu0 %vm753_vm13, %v751_v10 }
 0x255   : > { %v752_v16 = vpop.trf.xlu2 }
 0x256   : > { %2111 = vmatmul.msk.bf16.gmra.mxu3 %vm753_vm13, %v752_v16  ;;  %2119 = vmatmul.msk.bf16.gmra.mxu0 %vm753_vm13, %v752_v16 }
 0x263   : > { %v843_v6 = vpop.f32.mrf.mxu0 }
 0x265   : > { %v1280_v26 = vpop.trf.xlu2 }
 0x266   : > { %2120 = vmatmul.msk.bf16.vlgmr.msrb.gmra.mxu3 %vm753_vm13, %v1280_v26  ;;  %2128 = vmatmul.msk.bf16.vlgmr.msra.gmra.mxu0 %vm753_vm13, %v1280_v26 }
 0x269   : > { %v794_v7 = vpop.f32.mrf.mxu3 }
 0x26a   : > { %v883_v8 = vmax.f32 %v794_v7, %v843_v6 }
 0x26b   : > { %v845_v9 = vpop.f32.mrf.mxu0 }
 0x26c   : > { %884 = vmax.xlane.f32.xlu0 %v883_v8 }
 0x271   : > { %v796_v11 = vpop.f32.mrf.mxu3 }
 0x272   : > { %v886_v12 = vmax.f32 %v796_v11, %v845_v9 }
 0x273   : > { %v2918_v13 = vpop.f32.mrf.mxu0 }
 0x274   : > { %887 = vmax.xlane.f32.xlu1 %v886_v12 }
 0x275   : > { %v1281_v47 = vpop.trf.xlu2 }
 0x276   : > { %2121 = vmatmul.msk.bf16.gmra.mxu3 %vm753_vm13, %v1281_v47  ;;  %2129 = vmatmul.msk.bf16.gmra.mxu0 %vm753_vm13, %v1281_v47 }
 0x279   : > { %v799_v0 = vpop.f32.mrf.mxu3 }
 0x27a   : > { %v889_v14 = vmax.f32 %v799_v0, %v2918_v13 }
 0x27b   : > { %v2921_v15 = vpop.f32.mrf.mxu0 }
 0x27c   : > { %890 = vmax.xlane.f32.xlu0 %v889_v14 }
 0x281   : > { %v2925_v17 = vpop.f32.mrf.mxu3 }
 0x282   : > { %v892_v18 = vmax.f32 %v2925_v17, %v2921_v15 }
 0x283   : > { %v2929_v19 = vpop.f32.mrf.mxu0 }
 0x284   : > { %893 = vmax.xlane.f32.xlu1 %v892_v18 }
 0x285   : > { %v1282_v61 = vpop.trf.xlu2 }
 0x286   : > { %2122 = vmatmul.msk.bf16.gmra.mxu3 %vm753_vm13, %v1282_v61  ;;  %2130 = vmatmul.msk.bf16.gmra.mxu0 %vm753_vm13, %v1282_v61 }
 0x289   : > { %v2931_v20 = vpop.f32.mrf.mxu3 }
 0x28a   : > { %v895_v21 = vmax.f32 %v2931_v20, %v2929_v19 }
 0x28b   : > { %v2935_v22 = vpop.f32.mrf.mxu0 }
 0x28c   : > { %896 = vmax.xlane.f32.xlu0 %v895_v21 }
 0x291   : > { %v2937_v23 = vpop.f32.mrf.mxu3 }
 0x292   : > { %v898_v24 = vmax.f32 %v2937_v23, %v2935_v22 }
 0x293   : > { %v2941_v25 = vpop.f32.mrf.mxu0 }
 0x294   : > { %899 = vmax.xlane.f32.xlu1 %v898_v24 }
 0x295   : > { %v1283_v18 = vpop.trf.xlu2 }
 0x296   : > { %2123 = vmatmul.msk.bf16.gmra.mxu3 %vm753_vm13, %v1283_v18  ;;  %2131 = vmatmul.msk.bf16.gmra.mxu0 %vm753_vm13, %v1283_v18 }
 0x299   : > { %v2945_v28 = vpop.f32.mrf.mxu3 }
 0x29a   : > { %v901_v29 = vmax.f32 %v2945_v28, %v2941_v25 }
 0x29b   : > { %v2949_v30 = vpop.f32.mrf.mxu0 }
 0x29c   : > { %902 = vmax.xlane.f32.xlu0 %v901_v29 }
 0x2a1   : > { %v2951_v31 = vpop.f32.mrf.mxu3 }
 0x2a2   : > { %v904_v32 = vmax.f32 %v2951_v31, %v2949_v30 }
 0x2a3   : > { %v2955_v33 = vpop.f32.mrf.mxu0 }
 0x2a4   : > { %905 = vmax.xlane.f32.xlu1 %v904_v32 }
 0x2a9   : > { %v2957_v37 = vpop.f32.mrf.mxu3 }
 0x2aa   : > { %v907_v38 = vmax.f32 %v2957_v37, %v2955_v33 }
 0x2ab   : > { %v2961_v39 = vpop.f32.mrf.mxu0 }
 0x2ac   : > { %908 = vmax.xlane.f32.xlu1 %v907_v38 }
 0x2b1   : > { %v2963_v40 = vpop.f32.mrf.mxu3 }
 0x2b2   : > { %v910_v41 = vmax.f32 %v2963_v40, %v2961_v39 }
 0x2b3   : > { %v2992_v3 = vpop.f32.mrf.mxu0 }
 0x2b4   : > { %911 = vmax.xlane.f32.xlu1 %v910_v41 }
 0x2b9   : > { %v2988_v1 = vpop.f32.mrf.mxu3 }
 0x2ba   : > { %v913_v8 = vmax.f32 %v2988_v1, %v2992_v3 }
 0x2df   : > { %v885_v42 = vpop.xlane.xlu0 %884 }
 0x2e0   : > { %v931_v43 = vsub.f32 %v794_v7, %v885_v42  ;;  %v932_v34 = vsub.f32 %v843_v6, %v885_v42  ;;  %v679_v6 = vld [vmem:[%s3602_s6 + $0x8] sm:$0xff] }
 0x2e2   : > { %v963_v35 = vmul.f32 1.442695, %v931_v43  ;;  %v965_v36 = vmul.f32 1.442695, %v932_v34 }
 0x2e4   : > { %2298 = vpow2.f32 %v963_v35 }
 0x2e5   : > { %2300 = vpow2.f32 %v965_v36 }
 0x2e7   : > { %v888_v44 = vpop.xlane.xlu1 %887 }
 0x2e8   : > { %v933_v45 = vsub.f32 %v796_v11, %v888_v44  ;;  %v934_v46 = vsub.f32 %v845_v9, %v888_v44  ;;  %v3001_v11 = vpop.f32.mrf.mxu3 }
 0x2ea   : > { %v2969_v48 = vpop.eup %2298  ;;  %v967_v49 = vmul.f32 1.442695, %v933_v45  ;;  %v969_v50 = vmul.f32 1.442695, %v934_v46 }
 0x2eb   : > { %v2971_v51 = vpop.eup %2300 }
 0x2ec   : > { %2302 = vpow2.f32 %v967_v49  ;;  %v1027_v52 = vadd.f32 %v2971_v51, %v2969_v48 }
 0x2ed   : > { %2304 = vpow2.f32 %v969_v50 }
 0x2ee   : > { %1028 = vadd.xlane.f32.xlu0 %v1027_v52 }
 0x2ef   : > { %v891_v53 = vpop.xlane.xlu0 %890 }
 0x2f0   : > { %v935_v54 = vsub.f32 %v799_v0, %v891_v53  ;;  %v936_v55 = vsub.f32 %v2918_v13, %v891_v53  ;;  %v3003_v13 = vpop.f32.mrf.mxu0  ;;  %v3011_v24 = vpop.f32.mrf.mxu3 }
 0x2f1   : > { %v916_v21 = vmax.f32 %v3001_v11, %v3003_v13  ;;  %v1284_v53 = vpop.trf.xlu2 }
 0x2f2   : > { %v2976_v56 = vpop.eup %2302  ;;  %v971_v57 = vmul.f32 1.442695, %v935_v54  ;;  %v973_v58 = vmul.f32 1.442695, %v936_v55  ;;  %2124 = vmatmul.msk.bf16.gmra.mxu3 %vm753_vm13, %v1284_v53  ;;  %2132 = vmatmul.msk.bf16.gmra.mxu0 %vm753_vm13, %v1284_v53 }
 0x2f3   : > { %v2978_v59 = vpop.eup %2304 }
 0x2f4   : > { %2306 = vpow2.f32 %v971_v57  ;;  %v1030_v60 = vadd.f32 %v2978_v59, %v2976_v56 }
 0x2f5   : > { %2308 = vpow2.f32 %v973_v58 }
 0x2f6   : > { %1031 = vadd.xlane.f32.xlu1 %v1030_v60 }
 0x2f7   : > { %v894_v4 = vpop.xlane.xlu1 %893 }
 0x2f8   : > { %v937_v43 = vsub.f32 %v2925_v17, %v894_v4  ;;  %v938_v34 = vsub.f32 %v2921_v15, %v894_v4  ;;  %v3029_v35 = vpop.f32.mrf.mxu3 }
 0x2fa   : > { %v2984_v62 = vpop.eup %2306  ;;  %v975_v47 = vmul.f32 1.442695, %v937_v43  ;;  %v977_v49 = vmul.f32 1.442695, %v938_v34 }
 0x2fb   : > { %v2986_v63 = vpop.eup %2308 }
 0x2fc   : > { %v1033_v2 = vadd.f32 %v2986_v63, %v2984_v62 }
 0x2fe   : > { %1034 = vadd.xlane.f32.xlu1 %v1033_v2 }
 0x2ff   : > { %v897_v5 = vpop.xlane.xlu0 %896 }
 0x300   : > { %v939_v7 = vsub.f32 %v2931_v20, %v897_v5  ;;  %v940_v9 = vsub.f32 %v2929_v19, %v897_v5 }
 0x302   : > { %687 = vperm.xlu0 %2250, %v679_v6   ;;  %v979_v10 = vmul.f32 1.442695, %v939_v7  ;;  %v981_v12 = vmul.f32 1.442695, %v940_v9 }
 0x304   : > { %2310 = vpow2.f32 %v979_v10 }
 0x305   : > { %2312 = vpow2.f32 %v981_v12 }
 0x306   : > { %914 = vmax.xlane.f32.xlu1 %v913_v8 }
 0x307   : > { %v900_v0 = vpop.xlane.xlu1 %899 }
 0x308   : > { %v941_v14 = vsub.f32 %v2937_v23, %v900_v0  ;;  %v942_v16 = vsub.f32 %v2935_v22, %v900_v0  ;;  %v3013_v23 = vpop.f32.mrf.mxu0 }
 0x309   : > { %v919_v45 = vmax.f32 %v3011_v24, %v3013_v23 }
 0x30a   : > { %v983_v20 = vmul.f32 1.442695, %v941_v14  ;;  %v985_v19 = vmul.f32 1.442695, %v942_v16  ;;  %v3015_v22 = vpop.eup %2310 }
 0x30b   : > { %v3017_v26 = vpop.eup %2312 }
 0x30c   : > { %2314 = vpow2.f32 %v983_v20  ;;  %v1039_v38 = vadd.f32 %v3017_v26, %v3015_v22 }
 0x30d   : > { %2316 = vpow2.f32 %v985_v19 }
 0x30e   : > { %917 = vmax.xlane.f32.xlu1 %v916_v21  ;;  %2318 = vpow2.f32 %v975_v47 }
 0x30f   : > { %v903_v50 = vpop.xlane.xlu0 %902  ;;  %2320 = vpow2.f32 %v977_v49 }
 0x310   : > { %v3031_v36 = vpop.f32.mrf.mxu0  ;;  %v943_v15 = vsub.f32 %v2945_v28, %v903_v50 }
 0x311   : > { %v922_v58 = vmax.f32 %v3029_v35, %v3031_v36 }
 0x312   : > { %v3019_v29 = vpop.eup %2314  ;;  %v987_v57 = vmul.f32 1.442695, %v943_v15 }
 0x313   : > { %v3021_v32 = vpop.eup %2316 }
 0x314   : > { %v1042_v41 = vadd.f32 %v3021_v32, %v3019_v29  ;;  %v3047_v61 = vpop.eup %2318 }
 0x315   : > { %v3049_v2 = vpop.eup %2320 }
 0x316   : > { %1040 = vadd.xlane.f32.xlu1 %v1039_v38  ;;  %1043 = vadd.xlane.f32.xlu2 %v1042_v41  ;;  %v1036_v6 = vadd.f32 %v3049_v2, %v3047_v61 }
 0x317   : > { %v906_v42 = vpop.xlane.xlu1 %905 }
 0x318   : > { %v945_v44 = vsub.f32 %v2951_v31, %v906_v42  ;;  %v946_v46 = vsub.f32 %v2949_v30, %v906_v42  ;;  %v944_v31 = vsub.f32 %v2941_v25, %v903_v50  ;;  %v3041_v30 = vpop.f32.mrf.mxu3  ;;  %v3043_v55 = vpop.f32.mrf.mxu0 }
 0x31a   : > { %v991_v52 = vmul.f32 1.442695, %v945_v44  ;;  %v993_v17 = vmul.f32 1.442695, %v946_v46  ;;  %v989_v60 = vmul.f32 1.442695, %v944_v31 }
 0x31c   : > { %2322 = vpow2.f32 %v991_v52  ;;  %v1285_v52 = vpop.trf.xlu2 }
 0x31d   : > { %2324 = vpow2.f32 %v993_v17  ;;  %2125 = vmatmul.msk.bf16.gmra.mxu3 %vm753_vm13, %v1285_v52  ;;  %2133 = vmatmul.msk.bf16.gmra.mxu0 %vm753_vm13, %v1285_v52 }
 0x31e   : > { %920 = vmax.xlane.f32.xlu1 %v919_v45  ;;  %2326 = vpow2.f32 %v987_v57  ;;  %v715_v57 = vpop.f32.mrf.mxu1 }
 0x31f   : > { %v909_v54 = vpop.xlane.xlu1 %908  ;;  %2328 = vpow2.f32 %v989_v60 }
 0x320   : > { %v3061_v9 = vpop.f32.mrf.mxu3  ;;  %v3063_v10 = vpop.f32.mrf.mxu0  ;;  %v947_v16 = vsub.f32 %v2957_v37, %v909_v54  ;;  %v948_v18 = vsub.f32 %v2955_v33, %v909_v54  ;;  %v925_v37 = vmax.f32 %v3041_v30, %v3043_v55 }
 0x321   : > { %v928_v19 = vmax.f32 %v3061_v9, %v3063_v10 }
 0x322   : > { %v3051_v4 = vpop.eup %2322  ;;  %v995_v20 = vmul.f32 1.442695, %v947_v16  ;;  %v997_v21 = vmul.f32 1.442695, %v948_v18 }
 0x323   : > { %v3053_v25 = vpop.eup %2324 }
 0x324   : > { %v1048_v8 = vadd.f32 %v3053_v25, %v3051_v4  ;;  %v3065_v12 = vpop.eup %2326  ;;  %v1286_v53 = vpop.trf.xlu2 }
 0x325   : > { %v3067_v14 = vpop.eup %2328 }
 0x326   : > { %923 = vmax.xlane.f32.xlu1 %v922_v58  ;;  %v729_v58 = vpop.f32.mrf.mxu2 }
 0x327   : > { %v912_v28 = vpop.xlane.xlu1 %911 }
 0x328   : > { %v949_v5 = vsub.f32 %v2963_v40, %v912_v28  ;;  %v950_v7 = vsub.f32 %v2961_v39, %v912_v28  ;;  %v1045_v39 = vadd.f32 %v3067_v14, %v3065_v12  ;;  %v3075_v38 = vpop.f32.mrf.mxu3  ;;  %v3077_v41 = vpop.f32.mrf.mxu0 }
 0x329   : > { %v1420_v50 = vmax.f32 %v3075_v38, %v3077_v41 }
 0x32a   : > { %v999_v0 = vmul.f32 1.442695, %v949_v5  ;;  %v1001_v40 = vmul.f32 1.442695, %v950_v7 }
 0x32c   : > { %1037 = vadd.xlane.f32.xlu0 %v1036_v6  ;;  %2330 = vpow2.f32 %v999_v0  ;;  %v1287_v31 = vpop.trf.xlu2 }
 0x32d   : > { %2332 = vpow2.f32 %v1001_v40  ;;  %2126 = vmatmul.msk.bf16.gmra.mxu3 %vm753_vm13, %v1286_v53  ;;  %2134 = vmatmul.msk.bf16.gmra.mxu0 %vm753_vm13, %v1286_v53 }
 0x32e   : > { %1049 = vadd.xlane.f32.xlu1 %v1048_v8  ;;  %2334 = vpow2.f32 %v995_v20 }
 0x32f   : > { %2336 = vpow2.f32 %v997_v21 }
 0x330   : > { %v3091_v45 = vpop.f32.mrf.mxu3  ;;  %v3093_v46 = vpop.f32.mrf.mxu0 }
 0x331   : > { %v1423_v49 = vmax.f32 %v3091_v45, %v3093_v46 }
 0x332   : > { %v3079_v42 = vpop.eup %2330 }
 0x333   : > { %v3081_v33 = vpop.eup %2332 }
 0x334   : > { %1046 = vadd.xlane.f32.xlu0 %v1045_v39  ;;  %v1054_v43 = vadd.f32 %v3081_v33, %v3079_v42  ;;  %v3087_v34 = vpop.eup %2334 }
 0x335   : > { %v3089_v44 = vpop.eup %2336 }
 0x336   : > { %929 = vmax.xlane.f32.xlu1 %v928_v19  ;;  %v1051_v47 = vadd.f32 %v3089_v44, %v3087_v34 }
 0x33c   : > { %926 = vmax.xlane.f32.xlu0 %v925_v37 }
 0x33d   : > { %2127 = vmatmul.msk.bf16.gmra.mxu3 %vm753_vm13, %v1287_v31  ;;  %2135 = vmatmul.msk.bf16.gmra.mxu0 %vm753_vm13, %v1287_v31 }
 0x33e   : > { %1055 = vadd.xlane.f32.xlu1 %v1054_v43 }
 0x344   : > { %1052 = vadd.xlane.f32.xlu0 %v1051_v47 }
 0x346   : > { %1424 = vmax.xlane.f32.xlu1 %v1423_v49 }
 0x34c   : > { %1421 = vmax.xlane.f32.xlu0 %v1420_v50 }
 0x361   : > { %v1029_v54 = vpop.xlane.xlu0 %1028 }
 0x369   : > { %v1032_v17 = vpop.xlane.xlu1 %1031 }
 0x36a   : > { %2338 = vrcp.f32 %v1032_v17 }
 0x36b   : > { %2340 = vrcp.f32 %v1029_v54  ;;  %v3119_v54 = vpop.f32.mrf.mxu3 }
 0x370   : > { %v2339_v6 = vpop.eup %2338 }
 0x371   : > { %v3105_v15 = vpop.xlane.xlu1 %1034  ;;  %v2341_v0 = vpop.eup %2340  ;;  %v1093_v19 = vmul.f32 %v2339_v6, %v2976_v56  ;;  %v1094_v21 = vmul.f32 %v2339_v6, %v2978_v59 }
 0x372   : > { %v1091_v47 = vmul.f32 %v2341_v0, %v2969_v48  ;;  %v1092_v49 = vmul.f32 %v2341_v0, %v2971_v51  ;;  %v3123_v51 = vpop.f32.mrf.mxu0 }
 0x374   : > { %v688_v60 = vpop.permute.xlu0 %687  ;;  %v1123_v50 = vpack.c.bf16 %v1093_v19, %v1091_v47  ;;  %v1124_v52 = vpack.c.bf16 %v1094_v21, %v1092_v49 }
 0x375   : > { %v716_v28 = vadd.f32 %v715_v57, %v688_v60  ;;  %v730_v5 = vadd.f32 %v729_v58, %v688_v60 }
 0x377   : > { %v735_v7 = vpack.c.bf16 %v716_v28, %v716_v28  ;;  %v736_v8 = vpack.c.bf16 %v730_v5, %v730_v5  ;;  %v3135_v28 = vpop.f32.mrf.mxu3 }
 0x379   : > { %1146 = vmatpush.bf16.xpose.msrb.mxu1 %v735_v7  ;;  %v1678_v40 = vrot.slane %v735_v7, 2  ;;  %1195 = vmatpush.bf16.xpose.msrb.mxu2 %v736_v8  ;;  %v1679_v16 = vrot.slane %v736_v8, 2  ;;  %v915_v18 = vpop.xlane.xlu1 %914 }
 0x37a   : > { %v951_v39 = vsub.f32 %v2988_v1, %v915_v18  ;;  %v952_v20 = vsub.f32 %v2992_v3, %v915_v18  ;;  %v3137_v5 = vpop.f32.mrf.mxu0 }
 0x37c   : > { %v1003_v37 = vmul.f32 1.442695, %v951_v39  ;;  %v1005_v43 = vmul.f32 1.442695, %v952_v20 }
 0x37e   : > { %2342 = vpow2.f32 %v1003_v37 }
 0x37f   : > { %2344 = vpow2.f32 %v1005_v43  ;;  %v3143_v18 = vpop.f32.mrf.mxu3 }
 0x380   : > { %1147 = vmatmul.bf16.vlgmr.msrb.gmra.mxu1 %v1123_v50  ;;  %1196 = vmatmul.bf16.vlgmr.msrb.gmra.mxu2 %v1124_v52 }
 0x381   : > { %1689 = vmatpush.bf16.xpose.msra.mxu1 %v1678_v40  ;;  %1738 = vmatpush.bf16.xpose.msra.mxu2 %v1679_v16  ;;  %v918_v1 = vpop.xlane.xlu1 %917  ;;  %v1429_v16 = vmax.f32 %v3135_v28, %v3137_v5 }
 0x382   : > { %v953_v3 = vsub.f32 %v3001_v11, %v918_v1  ;;  %v954_v56 = vsub.f32 %v3003_v13, %v918_v1  ;;  %v1426_v13 = vmax.f32 %v3119_v54, %v3123_v51  ;;  %v3145_v20 = vpop.f32.mrf.mxu0 }
 0x384   : > { %v3117_v59 = vpop.eup %2342  ;;  %v1007_v53 = vmul.f32 1.442695, %v953_v3  ;;  %v1009_v17 = vmul.f32 1.442695, %v954_v56 }
 0x385   : > { %v3121_v48 = vpop.eup %2344 }
 0x386   : > { %2346 = vpow2.f32 %v1007_v53  ;;  %v1057_v31 = vadd.f32 %v3121_v48, %v3117_v59 }
 0x387   : > { %2348 = vpow2.f32 %v1009_v17 }
 0x388   : > { %1058 = vadd.xlane.f32.xlu0 %v1057_v31 }
 0x389   : > { %v1041_v57 = vpop.xlane.xlu1 %1040 }
 0x38a   : > { %v3160_v52 = vpop.f32.mrf.mxu0 }
 0x38c   : > { %v3127_v11 = vpop.eup %2346 }
 0x38d   : > { %v3131_v58 = vpop.eup %2348 }
 0x38e   : > { %v1060_v60 = vadd.f32 %v3131_v58, %v3127_v11 }
 0x390   : > { %1061 = vadd.xlane.f32.xlu1 %v1060_v60  ;;  %1427 = vmax.xlane.f32.xlu0 %v1426_v13 }
 0x391   : > { %v921_v6 = vpop.xlane.xlu1 %920 }
 0x392   : > { %v955_v7 = vsub.f32 %v3011_v24, %v921_v6  ;;  %v956_v8 = vsub.f32 %v3013_v23, %v921_v6 }
 0x394   : > { %v1011_v0 = vmul.f32 1.442695, %v955_v7  ;;  %v1013_v40 = vmul.f32 1.442695, %v956_v8  ;;  %v1044_v7 = vpop.xlane.xlu2 %1043 }
 0x396   : > { %2350 = vpow2.f32 %v1011_v0 }
 0x397   : > { %2352 = vpow2.f32 %v1013_v40 }
 0x398   : > { %1430 = vmax.xlane.f32.xlu1 %v1429_v16  ;;  %2354 = vrcp.f32 %v3105_v15  ;;  %v1432_v15 = vmax.f32 %v3143_v18, %v3145_v20 }
 0x399   : > { %v924_v39 = vpop.xlane.xlu1 %923 }
 0x39a   : > { %v957_v19 = vsub.f32 %v3029_v35, %v924_v39  ;;  %v958_v21 = vsub.f32 %v3031_v36, %v924_v39  ;;  %v3158_v35 = vpop.f32.mrf.mxu3 }
 0x39c   : > { %v3149_v24 = vpop.eup %2350  ;;  %v1015_v23 = vmul.f32 1.442695, %v957_v19  ;;  %v1017_v37 = vmul.f32 1.442695, %v958_v21 }
 0x39d   : > { %v3151_v43 = vpop.eup %2352 }
 0x39e   : > { %2356 = vpow2.f32 %v1015_v23  ;;  %v1063_v47 = vadd.f32 %v3151_v43, %v3149_v24  ;;  %v2355_v36 = vpop.eup %2354 }
 0x39f   : > { %2358 = vpow2.f32 %v1017_v37  ;;  %v1038_v49 = vpop.xlane.xlu0 %1037  ;;  %v1095_v31 = vmul.f32 %v2355_v36, %v2984_v62  ;;  %v1096_v60 = vmul.f32 %v2355_v36, %v2986_v63  ;;  %v3178_v63 = vpop.f32.mrf.mxu0 }
 0x3a0   : > { %2360 = vrcp.f32 %v1038_v49  ;;  %1064 = vadd.xlane.f32.xlu0 %v1063_v47 }
 0x3a1   : > { %v3156_v50 = vpop.xlane.xlu1 %1049  ;;  %2362 = vrcp.f32 %v1041_v57 }
 0x3a2   : > { %2364 = vrcp.f32 %v1044_v7  ;;  %v3176_v19 = vpop.f32.mrf.mxu3 }
 0x3a4   : > { %v3162_v1 = vpop.eup %2356 }
 0x3a5   : > { %v3166_v3 = vpop.eup %2358 }
 0x3a6   : > { %v2361_v56 = vpop.eup %2360  ;;  %v1066_v53 = vadd.f32 %v3166_v3, %v3162_v1 }
 0x3a7   : > { %v1047_v17 = vpop.xlane.xlu0 %1046  ;;  %v1097_v13 = vmul.f32 %v2361_v56, %v3047_v61  ;;  %v1098_v6 = vmul.f32 %v2361_v56, %v3049_v2  ;;  %v1435_v2 = vmax.f32 %v3158_v35, %v3160_v52  ;;  %v2363_v57 = vpop.eup %2362 }
 0x3a8   : > { %1067 = vadd.xlane.f32.xlu1 %v1066_v53  ;;  %1433 = vmax.xlane.f32.xlu0 %v1432_v15  ;;  %v2365_v37 = vpop.eup %2364  ;;  %v1099_v15 = vmul.f32 %v2363_v57, %v3015_v22 }
 0x3a9   : > { %v930_v8 = vpop.xlane.xlu1 %929  ;;  %v1125_v0 = vpack.c.bf16 %v1097_v13, %v1095_v31  ;;  %v1126_v40 = vpack.c.bf16 %v1098_v6, %v1096_v60  ;;  %v1101_v53 = vmul.f32 %v2365_v37, %v3019_v29  ;;  %v3198_v60 = vpop.f32.mrf.mxu0 }
 0x3aa   : > { %v961_v16 = vsub.f32 %v3061_v9, %v930_v8  ;;  %v962_v39 = vsub.f32 %v3063_v10, %v930_v8  ;;  %v3194_v31 = vpop.f32.mrf.mxu3 }
 0x3ab   : > { %1152 = vmatmul.bf16.gmra.mxu1 %v1125_v0  ;;  %1201 = vmatmul.bf16.gmra.mxu2 %v1126_v40  ;;  %v1127_v22 = vpack.c.bf16 %v1101_v53, %v1099_v15 }
 0x3ac   : > { %v1023_v62 = vmul.f32 1.442695, %v961_v16  ;;  %v1025_v61 = vmul.f32 1.442695, %v962_v39 }
 0x3ae   : > { %2366 = vpow2.f32 %v1023_v62  ;;  %v1441_v62 = vmax.f32 %v3194_v31, %v3198_v60 }
 0x3af   : > { %2368 = vpow2.f32 %v1025_v61  ;;  %v927_v21 = vpop.xlane.xlu0 %926 }
 0x3b0   : > { %v959_v9 = vsub.f32 %v3041_v30, %v927_v21  ;;  %v960_v10 = vsub.f32 %v3043_v55, %v927_v21  ;;  %1436 = vmax.xlane.f32.xlu1 %v1435_v2  ;;  %v1100_v30 = vmul.f32 %v2363_v57, %v3017_v26  ;;  %v1102_v55 = vmul.f32 %v2365_v37, %v3021_v32 }
 0x3b1   : > { %v3184_v23 = vpop.xlane.xlu1 %1055  ;;  %v3213_v61 = vpop.f32.mrf.mxu0  ;;  %v1438_v37 = vmax.f32 %v3176_v19, %v3178_v63 }
 0x3b2   : > { %v1019_v47 = vmul.f32 1.442695, %v959_v9  ;;  %v1021_v49 = vmul.f32 1.442695, %v960_v10  ;;  %v1128_v8 = vpack.c.bf16 %v1102_v55, %v1100_v30 }
 0x3b4   : > { %v3186_v36 = vpop.eup %2366  ;;  %2370 = vpow2.f32 %v1019_v47 }
 0x3b5   : > { %v3189_v56 = vpop.eup %2368  ;;  %2372 = vpow2.f32 %v1021_v49 }
 0x3b6   : > { %v1072_v13 = vadd.f32 %v3189_v56, %v3186_v36  ;;  %2374 = vrcp.f32 %v1047_v17 }
 0x3b7   : > { %v1053_v6 = vpop.xlane.xlu0 %1052  ;;  %2376 = vrcp.f32 %v3156_v50 }
 0x3b8   : > { %1073 = vadd.xlane.f32.xlu1 %v1072_v13 }
 0x3b9   : > { %v1425_v7 = vpop.xlane.xlu1 %1424 }
 0x3ba   : > { %v3200_v0 = vpop.eup %2370  ;;  %v1470_v29 = vsub.f32 %v3091_v45, %v1425_v7  ;;  %v1471_v26 = vsub.f32 %v3093_v46, %v1425_v7  ;;  %v3211_v45 = vpop.f32.mrf.mxu3 }
 0x3bb   : > { %v3204_v40 = vpop.eup %2372  ;;  %1157 = vmatmul.bf16.gmra.mxu1 %v1127_v22  ;;  %1206 = vmatmul.bf16.gmra.mxu2 %v1128_v8  ;;  %v3231_v7 = vpop.f32.mrf.mxu0  ;;  %v1444_v8 = vmax.f32 %v3211_v45, %v3213_v61 }
 0x3bc   : > { %v1504_v32 = vmul.f32 1.442695, %v1470_v29  ;;  %v1506_v16 = vmul.f32 1.442695, %v1471_v26  ;;  %v1069_v39 = vadd.f32 %v3204_v40, %v3200_v0  ;;  %v2375_v21 = vpop.eup %2374 }
 0x3bd   : > { %v2377_v50 = vpop.eup %2376  ;;  %v1103_v49 = vmul.f32 %v2375_v21, %v3065_v12 }
 0x3be   : > { %2378 = vpow2.f32 %v1504_v32  ;;  %1070 = vadd.xlane.f32.xlu0 %v1069_v39  ;;  %v1105_v15 = vmul.f32 %v2377_v50, %v3051_v4  ;;  %v1106_v53 = vmul.f32 %v2377_v50, %v3053_v25 }
 0x3bf   : > { %2380 = vpow2.f32 %v1506_v16  ;;  %v1422_v46 = vpop.xlane.xlu0 %1421 }
 0x3c0   : > { %v1468_v17 = vsub.f32 %v3075_v38, %v1422_v46  ;;  %v1469_v2 = vsub.f32 %v3077_v41, %v1422_v46  ;;  %1442 = vmax.xlane.f32.xlu1 %v1441_v62  ;;  %v1104_v38 = vmul.f32 %v2375_v21, %v3067_v14  ;;  %v1129_v30 = vpack.c.bf16 %v1105_v15, %v1103_v49 }
 0x3c2   : > { %v1500_v9 = vmul.f32 1.442695, %v1468_v17  ;;  %v1502_v10 = vmul.f32 1.442695, %v1469_v2  ;;  %v1130_v55 = vpack.c.bf16 %v1106_v53, %v1104_v38  ;;  %v3229_v13 = vpop.f32.mrf.mxu3 }
 0x3c3   : > { %v1447_v4 = vmax.f32 %v3229_v13, %v3231_v7 }
 0x3c4   : > { %v3217_v57 = vpop.eup %2378  ;;  %2382 = vpow2.f32 %v1500_v9 }
 0x3c5   : > { %v3221_v47 = vpop.eup %2380  ;;  %2384 = vpow2.f32 %v1502_v10 }
 0x3c6   : > { %1439 = vmax.xlane.f32.xlu0 %v1438_v37  ;;  %v1567_v41 = vadd.f32 %v3221_v47, %v3217_v57  ;;  %2386 = vrcp.f32 %v1053_v6 }
 0x3c7   : > { %2388 = vrcp.f32 %v3184_v23 }
 0x3c8   : > { %1568 = vadd.xlane.f32.xlu1 %v1567_v41 }
 0x3ca   : > { %v3233_v22 = vpop.eup %2382 }
 0x3cb   : > { %v3235_v12 = vpop.eup %2384  ;;  %1162 = vmatmul.bf16.gmra.mxu1 %v1129_v30  ;;  %1211 = vmatmul.bf16.gmra.mxu2 %v1130_v55 }
 0x3cc   : > { %v1564_v14 = vadd.f32 %v3235_v12, %v3233_v22  ;;  %v2387_v25 = vpop.eup %2386 }
 0x3cd   : > { %v2389_v29 = vpop.eup %2388  ;;  %v1107_v26 = vmul.f32 %v2387_v25, %v3087_v34  ;;  %v1108_v32 = vmul.f32 %v2387_v25, %v3089_v44 }
 0x3ce   : > { %1565 = vadd.xlane.f32.xlu0 %v1564_v14  ;;  %v1109_v6 = vmul.f32 %v2389_v29, %v3079_v42  ;;  %v1110_v16 = vmul.f32 %v2389_v29, %v3081_v33 }
 0x3d0   : > { %1448 = vmax.xlane.f32.xlu1 %v1447_v4  ;;  %v1131_v39 = vpack.c.bf16 %v1109_v6, %v1107_v26  ;;  %v1132_v62 = vpack.c.bf16 %v1110_v16, %v1108_v32 }
 0x3d6   : > { %1445 = vmax.xlane.f32.xlu0 %v1444_v8 }
 0x3db   : > { %1167 = vmatmul.bf16.gmra.mxu1 %v1131_v39  ;;  %1216 = vmatmul.bf16.gmra.mxu2 %v1132_v62 }
 0x3fb   : > { %v1059_v23 = vpop.xlane.xlu0 %1058 }
 0x3fc   : > { %2390 = vrcp.f32 %v1059_v23 }
 0x3fd   : > { %v1148_v2 = vpop.f32.mrf.mxu1 }
 0x402   : > { %v2391_v33 = vpop.eup %2390 }
 0x403   : > { %v1062_v46 = vpop.xlane.xlu1 %1061  ;;  %v1428_v17 = vpop.xlane.xlu0 %1427  ;;  %v1111_v49 = vmul.f32 %v2391_v33, %v3117_v59  ;;  %v1112_v41 = vmul.f32 %v2391_v33, %v3121_v48 }
 0x404   : > { %2392 = vrcp.f32 %v1062_v46  ;;  %v1472_v21 = vsub.f32 %v3119_v54, %v1428_v17  ;;  %v1473_v34 = vsub.f32 %v3123_v51, %v1428_v17  ;;  %v1197_v44 = vpop.f32.mrf.mxu2  ;;  %v3264_v48 = vpop.f32.mrf.mxu3 }
 0x405   : > { %v3250_v9 = vadd.f32 %v1197_v44, %v1148_v2 }
 0x406   : > { %v1508_v42 = vmul.f32 1.442695, %v1472_v21  ;;  %v1510_v10 = vmul.f32 1.442695, %v1473_v34  ;;  %v3284_v21 = vpop.f32.mrf.mxu1 }
 0x408   : > { %2394 = vpow2.f32 %v1508_v42 }
 0x409   : > { %2396 = vpow2.f32 %v1510_v10 }
 0x40a   : > { %v2393_v50 = vpop.eup %2392 }
 0x40b   : > { %v1431_v37 = vpop.xlane.xlu1 %1430  ;;  %v1113_v38 = vmul.f32 %v2393_v50, %v3127_v11  ;;  %v1114_v54 = vmul.f32 %v2393_v50, %v3131_v58  ;;  %v3266_v11 = vpop.f32.mrf.mxu0 }
 0x40c   : > { %v1474_v51 = vsub.f32 %v3135_v28, %v1431_v37  ;;  %v1475_v15 = vsub.f32 %v3137_v5, %v1431_v37  ;;  %v1450_v5 = vmax.f32 %v3264_v48, %v3266_v11  ;;  %v3276_v26 = vpop.f32.mrf.mxu3 }
 0x40d   : > { %v1133_v53 = vpack.c.bf16 %v1113_v38, %v1111_v49  ;;  %v1134_v30 = vpack.c.bf16 %v1114_v54, %v1112_v41  ;;  %v3294_v41 = vpop.f32.mrf.mxu2 }
 0x40e   : > { %v3258_v55 = vpop.eup %2394  ;;  %v1512_v14 = vmul.f32 1.442695, %v1474_v51  ;;  %v1514_v4 = vmul.f32 1.442695, %v1475_v15 }
 0x40f   : > { %v3260_v25 = vpop.eup %2396  ;;  %1172 = vmatmul.bf16.gmra.mxu1 %v1133_v53  ;;  %1221 = vmatmul.bf16.gmra.mxu2 %v1134_v30 }
 0x410   : > { %2398 = vpow2.f32 %v1512_v14  ;;  %v1570_v59 = vadd.f32 %v3260_v25, %v3258_v55 }
 0x411   : > { %2400 = vpow2.f32 %v1514_v4 }
 0x412   : > { %1571 = vadd.xlane.f32.xlu0 %v1570_v59 }
 0x413   : > { %v1065_v58 = vpop.xlane.xlu0 %1064  ;;  %v3278_v32 = vpop.f32.mrf.mxu0 }
 0x414   : > { %2402 = vrcp.f32 %v1065_v58  ;;  %v1453_v17 = vmax.f32 %v3276_v26, %v3278_v32  ;;  %v3296_v15 = vpop.f32.mrf.mxu3 }
 0x416   : > { %v3268_v28 = vpop.eup %2398 }
 0x417   : > { %v3272_v8 = vpop.eup %2400 }
 0x418   : > { %v1573_v29 = vadd.f32 %v3272_v8, %v3268_v28 }
 0x41a   : > { %1574 = vadd.xlane.f32.xlu1 %v1573_v29  ;;  %1451 = vmax.xlane.f32.xlu0 %v1450_v5  ;;  %v2403_v2 = vpop.eup %2402 }
 0x41b   : > { %v1068_v6 = vpop.xlane.xlu1 %1067  ;;  %v1434_v16 = vpop.xlane.xlu0 %1433  ;;  %v1115_v42 = vmul.f32 %v2403_v2, %v3149_v24 }
 0x41c   : > { %2404 = vrcp.f32 %v1068_v6  ;;  %v1476_v39 = vsub.f32 %v3143_v18, %v1434_v16  ;;  %v1477_v62 = vsub.f32 %v3145_v20, %v1434_v16  ;;  %v1116_v18 = vmul.f32 %v2403_v2, %v3151_v43  ;;  %v3312_v59 = vpop.f32.mrf.mxu3 }
 0x41e   : > { %v1516_v23 = vmul.f32 1.442695, %v1476_v39  ;;  %v1518_v46 = vmul.f32 1.442695, %v1477_v62 }
 0x420   : > { %2406 = vpow2.f32 %v1516_v23 }
 0x421   : > { %2408 = vpow2.f32 %v1518_v46 }
 0x422   : > { %v2405_v34 = vpop.eup %2404  ;;  %1454 = vmax.xlane.f32.xlu1 %v1453_v17 }
 0x423   : > { %v1437_v44 = vpop.xlane.xlu1 %1436  ;;  %v1117_v10 = vmul.f32 %v2405_v34, %v3162_v1  ;;  %v1118_v20 = vmul.f32 %v2405_v34, %v3166_v3  ;;  %v3300_v1 = vpop.f32.mrf.mxu0 }
 0x424   : > { %v1478_v33 = vsub.f32 %v3158_v35, %v1437_v44  ;;  %v1479_v50 = vsub.f32 %v3160_v52, %v1437_v44  ;;  %v1456_v30 = vmax.f32 %v3296_v15, %v3300_v1 }
 0x425   : > { %v1135_v37 = vpack.c.bf16 %v1117_v10, %v1115_v42  ;;  %v1136_v49 = vpack.c.bf16 %v1118_v20, %v1116_v18 }
 0x426   : > { %v3292_v38 = vpop.eup %2406  ;;  %v1520_v54 = vmul.f32 1.442695, %v1478_v33  ;;  %v1522_v51 = vmul.f32 1.442695, %v1479_v50  ;;  %v3330_v33 = vpop.f32.mrf.mxu3 }
 0x427   : > { %v3298_v24 = vpop.eup %2408  ;;  %1177 = vmatmul.bf16.gmra.mxu1 %v1135_v37  ;;  %1226 = vmatmul.bf16.gmra.mxu2 %v1136_v49 }
 0x428   : > { %2410 = vpow2.f32 %v1520_v54  ;;  %v1153_v43 = vpop.f32.mrf.mxu1  ;;  %v1576_v35 = vadd.f32 %v3298_v24, %v3292_v38 }
 0x429   : > { %2412 = vpow2.f32 %v1522_v51 }
 0x42a   : > { %1577 = vadd.xlane.f32.xlu0 %v1576_v35 }
 0x42b   : > { %v1074_v52 = vpop.xlane.xlu1 %1073  ;;  %v3318_v29 = vpop.f32.mrf.mxu0 }
 0x42c   : > { %2414 = vrcp.f32 %v1074_v52  ;;  %v1459_v44 = vmax.f32 %v3312_v59, %v3318_v29 }
 0x42e   : > { %v3304_v3 = vpop.eup %2410  ;;  %v1202_v53 = vpop.f32.mrf.mxu2 }
 0x42f   : > { %v3308_v14 = vpop.eup %2412  ;;  %v3310_v4 = vadd.f32 %v1202_v53, %v1153_v43 }
 0x430   : > { %v3314_v58 = vpop.f32.mrf.mxu1  ;;  %v1579_v5 = vadd.f32 %v3308_v14, %v3304_v3 }
 0x431   : > { %v1071_v6 = vpop.xlane.xlu0 %1070 }
 0x432   : > { %2416 = vrcp.f32 %v1071_v6  ;;  %1580 = vadd.xlane.f32.xlu1 %v1579_v5  ;;  %1457 = vmax.xlane.f32.xlu0 %v1456_v30  ;;  %v2415_v23 = vpop.eup %2414 }
 0x433   : > { %v1443_v16 = vpop.xlane.xlu1 %1442  ;;  %v1121_v10 = vmul.f32 %v2415_v23, %v3186_v36  ;;  %v3334_v49 = vpop.f32.mrf.mxu0 }
 0x434   : > { %v1482_v39 = vsub.f32 %v3194_v31, %v1443_v16  ;;  %v1483_v62 = vsub.f32 %v3198_v60, %v1443_v16  ;;  %v1122_v60 = vmul.f32 %v2415_v23, %v3189_v56  ;;  %v3352_v23 = vpop.f32.mrf.mxu3 }
 0x436   : > { %v1528_v46 = vmul.f32 1.442695, %v1482_v39  ;;  %v1530_v17 = vmul.f32 1.442695, %v1483_v62  ;;  %v3322_v2 = vpop.f32.mrf.mxu2 }
 0x438   : > { %v2417_v34 = vpop.eup %2416  ;;  %2418 = vpow2.f32 %v1528_v46  ;;  %v1158_v42 = vpop.f32.mrf.mxu1 }
 0x439   : > { %2420 = vpow2.f32 %v1530_v17  ;;  %v1440_v18 = vpop.xlane.xlu0 %1439  ;;  %v1119_v20 = vmul.f32 %v2417_v34, %v3200_v0  ;;  %v1120_v31 = vmul.f32 %v2417_v34, %v3204_v40 }
 0x43a   : > { %v1480_v50 = vsub.f32 %v3176_v19, %v1440_v18  ;;  %v1481_v37 = vsub.f32 %v3178_v63, %v1440_v18  ;;  %1460 = vmax.xlane.f32.xlu1 %v1459_v44 }
 0x43b   : > { %v1569_v54 = vpop.xlane.xlu1 %1568  ;;  %v1137_v51 = vpack.c.bf16 %v1121_v10, %v1119_v20  ;;  %v1138_v36 = vpack.c.bf16 %v1122_v60, %v1120_v31  ;;  %v3354_v46 = vpop.f32.mrf.mxu0 }
 0x43c   : > { %v1524_v43 = vmul.f32 1.442695, %v1480_v50  ;;  %v1526_v35 = vmul.f32 1.442695, %v1481_v37  ;;  %2422 = vrcp.f32 %v1569_v54 }
 0x43d   : > { %1182 = vmatmul.bf16.gmra.mxu1 %v1137_v51  ;;  %1231 = vmatmul.bf16.gmra.mxu2 %v1138_v36 }
 0x43e   : > { %v3336_v0 = vpop.eup %2418  ;;  %2424 = vpow2.f32 %v1524_v43  ;;  %v1207_v56 = vpop.f32.mrf.mxu2 }
 0x43f   : > { %v3338_v40 = vpop.eup %2420  ;;  %2426 = vpow2.f32 %v1526_v35  ;;  %v3340_v19 = vadd.f32 %v1207_v56, %v1158_v42 }
 0x440   : > { %v1585_v63 = vadd.f32 %v3338_v40, %v3336_v0  ;;  %v3344_v52 = vpop.f32.mrf.mxu1 }
 0x441   : > { %v1566_v53 = vpop.xlane.xlu0 %1565 }
 0x442   : > { %2428 = vrcp.f32 %v1566_v53  ;;  %1586 = vadd.xlane.f32.xlu1 %v1585_v63  ;;  %v2423_v30 = vpop.eup %2422 }
 0x443   : > { %v1449_v5 = vpop.xlane.xlu1 %1448  ;;  %v1630_v18 = vmul.f32 %v2423_v30, %v3217_v57 }
 0x444   : > { %v3346_v6 = vpop.eup %2424  ;;  %v1486_v16 = vsub.f32 %v3229_v13, %v1449_v5  ;;  %v1487_v39 = vsub.f32 %v3231_v7, %v1449_v5  ;;  %v1465_v13 = vmax.f32 %v3352_v23, %v3354_v46  ;;  %v1631_v7 = vmul.f32 %v2423_v30, %v3221_v47 }
 0x445   : > { %v3350_v62 = vpop.eup %2426  ;;  %v1462_v47 = vmax.f32 %v3330_v33, %v3334_v49 }
 0x446   : > { %v1536_v17 = vmul.f32 1.442695, %v1486_v16  ;;  %v1538_v34 = vmul.f32 1.442695, %v1487_v39  ;;  %v1582_v44 = vadd.f32 %v3350_v62, %v3346_v6  ;;  %v3358_v42 = vpop.f32.mrf.mxu2 }
 0x448   : > { %v2429_v10 = vpop.eup %2428  ;;  %2430 = vpow2.f32 %v1536_v17  ;;  %1583 = vadd.xlane.f32.xlu0 %v1582_v44  ;;  %v1163_v54 = vpop.f32.mrf.mxu1 }
 0x449   : > { %v1628_v20 = vmul.f32 %v2429_v10, %v3233_v22  ;;  %v1629_v31 = vmul.f32 %v2429_v10, %v3235_v12  ;;  %2432 = vpow2.f32 %v1538_v34  ;;  %v1446_v60 = vpop.xlane.xlu0 %1445 }
 0x44a   : > { %v1484_v50 = vsub.f32 %v3211_v45, %v1446_v60  ;;  %v1485_v37 = vsub.f32 %v3213_v61, %v1446_v60  ;;  %1466 = vmax.xlane.f32.xlu1 %v1465_v13 }
 0x44b   : > { %v1660_v57 = vpack.c.bf16 %v1630_v18, %v1628_v20  ;;  %v1661_v51 = vpack.c.bf16 %v1631_v7, %v1629_v31 }
 0x44c   : > { %v1532_v36 = vmul.f32 1.442695, %v1484_v50  ;;  %v1534_v43 = vmul.f32 1.442695, %v1485_v37 }
 0x44d   : > { %1690 = vmatmul.bf16.vlgmr.msra.gmra.mxu1 %v1660_v57  ;;  %1739 = vmatmul.bf16.vlgmr.msra.gmra.mxu2 %v1661_v51 }
 0x44e   : > { %v3368_v35 = vpop.eup %2430  ;;  %2434 = vpow2.f32 %v1532_v36  ;;  %v1212_v22 = vpop.f32.mrf.mxu2 }
 0x44f   : > { %v3372_v12 = vpop.eup %2432  ;;  %2436 = vpow2.f32 %v1534_v43  ;;  %v3374_v45 = vadd.f32 %v1212_v22, %v1163_v54 }
 0x450   : > { %1463 = vmax.xlane.f32.xlu0 %v1462_v47  ;;  %v1591_v61 = vadd.f32 %v3372_v12, %v3368_v35  ;;  %v3380_v63 = vpop.f32.mrf.mxu1 }
 0x452   : > { %1592 = vadd.xlane.f32.xlu1 %v1591_v61 }
 0x454   : > { %v3378_v56 = vpop.eup %2434 }
 0x455   : > { %v3382_v53 = vpop.eup %2436 }
 0x456   : > { %v1588_v30 = vadd.f32 %v3382_v53, %v3378_v56  ;;  %v3386_v5 = vpop.f32.mrf.mxu2 }
 0x458   : > { %1589 = vadd.xlane.f32.xlu0 %v1588_v30  ;;  %v1168_v16 = vpop.f32.mrf.mxu1 }
 0x45e   : > { %v1217_v39 = vpop.f32.mrf.mxu2 }
 0x45f   : > { %v3388_v17 = vadd.f32 %v1217_v39, %v1168_v16 }
 0x460   : > { %v3390_v44 = vpop.f32.mrf.mxu1 }
 0x466   : > { %v3392_v10 = vpop.f32.mrf.mxu2 }
 0x485   : > { %v1572_v34 = vpop.xlane.xlu0 %1571 }
 0x486   : > { %2438 = vrcp.f32 %v1572_v34 }
 0x48c   : > { %v1173_v50 = vpop.f32.mrf.mxu1  ;;  %v2439_v37 = vpop.eup %2438 }
 0x48d   : > { %v1575_v18 = vpop.xlane.xlu1 %1574  ;;  %v1452_v13 = vpop.xlane.xlu0 %1451  ;;  %v1632_v43 = vmul.f32 %v2439_v37, %v3258_v55  ;;  %v1633_v22 = vmul.f32 %v2439_v37, %v3260_v25 }
 0x48e   : > { %2440 = vrcp.f32 %v1575_v18  ;;  %v1488_v7 = vsub.f32 %v3264_v48, %v1452_v13  ;;  %v1489_v20 = vsub.f32 %v3266_v11, %v1452_v13 }
 0x490   : > { %v1540_v31 = vmul.f32 1.442695, %v1488_v7  ;;  %v1542_v60 = vmul.f32 1.442695, %v1489_v20 }
 0x492   : > { %2442 = vpow2.f32 %v1540_v31  ;;  %v1222_v54 = vpop.f32.mrf.mxu2 }
 0x493   : > { %2444 = vpow2.f32 %v1542_v60  ;;  %v3396_v57 = vadd.f32 %v1222_v54, %v1173_v50 }
 0x494   : > { %v2441_v51 = vpop.eup %2440  ;;  %v1175_v55 = vpop.f32.mrf.mxu1 }
 0x495   : > { %v1455_v36 = vpop.xlane.xlu1 %1454  ;;  %v1634_v47 = vmul.f32 %v2441_v51, %v3268_v28  ;;  %v1635_v48 = vmul.f32 %v2441_v51, %v3272_v8 }
 0x496   : > { %v1490_v11 = vsub.f32 %v3276_v26, %v1455_v36  ;;  %v1491_v61 = vsub.f32 %v3278_v32, %v1455_v36 }
 0x497   : > { %v1662_v30 = vpack.c.bf16 %v1634_v47, %v1632_v43  ;;  %v1663_v16 = vpack.c.bf16 %v1635_v48, %v1633_v22 }
 0x498   : > { %v3404_v39 = vpop.eup %2442  ;;  %v1544_v34 = vmul.f32 1.442695, %v1490_v11  ;;  %v1546_v18 = vmul.f32 1.442695, %v1491_v61 }
 0x499   : > { %v3406_v13 = vpop.eup %2444  ;;  %1695 = vmatmul.bf16.gmra.mxu1 %v1662_v30  ;;  %1744 = vmatmul.bf16.gmra.mxu2 %v1663_v16 }
 0x49a   : > { %2446 = vpow2.f32 %v1544_v34  ;;  %v1594_v25 = vadd.f32 %v3406_v13, %v3404_v39  ;;  %v1224_v28 = vpop.f32.mrf.mxu2 }
 0x49b   : > { %2448 = vpow2.f32 %v1546_v18  ;;  %v3410_v8 = vadd.f32 %v1224_v28, %v1175_v55 }
 0x49c   : > { %1595 = vadd.xlane.f32.xlu0 %v1594_v25 }
 0x49d   : > { %v1578_v26 = vpop.xlane.xlu0 %1577 }
 0x49e   : > { %2450 = vrcp.f32 %v1578_v26 }
 0x4a0   : > { %v3412_v32 = vpop.eup %2446 }
 0x4a1   : > { %v3414_v7 = vpop.eup %2448 }
 0x4a2   : > { %v1597_v20 = vadd.f32 %v3414_v7, %v3412_v32 }
 0x4a4   : > { %1598 = vadd.xlane.f32.xlu1 %v1597_v20  ;;  %v1178_v36 = vpop.f32.mrf.mxu1  ;;  %v2451_v43 = vpop.eup %2450 }
 0x4a5   : > { %v1581_v31 = vpop.xlane.xlu1 %1580  ;;  %v1458_v60 = vpop.xlane.xlu0 %1457  ;;  %v1636_v61 = vmul.f32 %v2451_v43, %v3292_v38  ;;  %v1637_v16 = vmul.f32 %v2451_v43, %v3298_v24 }
 0x4a6   : > { %2452 = vrcp.f32 %v1581_v31  ;;  %v1492_v50 = vsub.f32 %v3296_v15, %v1458_v60  ;;  %v1493_v37 = vsub.f32 %v3300_v1, %v1458_v60 }
 0x4a8   : > { %v1548_v54 = vmul.f32 1.442695, %v1492_v50  ;;  %v1550_v51 = vmul.f32 1.442695, %v1493_v37 }
 0x4aa   : > { %2454 = vpow2.f32 %v1548_v54  ;;  %v1227_v47 = vpop.f32.mrf.mxu2 }
 0x4ab   : > { %2456 = vpow2.f32 %v1550_v51  ;;  %v3420_v22 = vadd.f32 %v1227_v47, %v1178_v36 }
 0x4ac   : > { %v2453_v48 = vpop.eup %2452  ;;  %v1180_v38 = vpop.f32.mrf.mxu1 }
 0x4ad   : > { %v1461_v11 = vpop.xlane.xlu1 %1460  ;;  %v1638_v30 = vmul.f32 %v2453_v48, %v3304_v3  ;;  %v1639_v15 = vmul.f32 %v2453_v48, %v3308_v14 }
 0x4ae   : > { %v1494_v1 = vsub.f32 %v3312_v59, %v1461_v11  ;;  %v1495_v34 = vsub.f32 %v3318_v29, %v1461_v11 }
 0x4af   : > { %v1664_v18 = vpack.c.bf16 %v1638_v30, %v1636_v61  ;;  %v1665_v55 = vpack.c.bf16 %v1639_v15, %v1637_v16 }
 0x4b0   : > { %v3428_v25 = vpop.eup %2454  ;;  %v1552_v28 = vmul.f32 1.442695, %v1494_v1  ;;  %v1554_v26 = vmul.f32 1.442695, %v1495_v34 }
 0x4b1   : > { %v3430_v20 = vpop.eup %2456  ;;  %1700 = vmatmul.bf16.gmra.mxu1 %v1664_v18  ;;  %1749 = vmatmul.bf16.gmra.mxu2 %v1665_v55 }
 0x4b2   : > { %2458 = vpow2.f32 %v1552_v28  ;;  %v1600_v24 = vadd.f32 %v3430_v20, %v3428_v25  ;;  %v1229_v3 = vpop.f32.mrf.mxu2 }
 0x4b3   : > { %2460 = vpow2.f32 %v1554_v26  ;;  %v3434_v14 = vadd.f32 %v1229_v3, %v1180_v38 }
 0x4b4   : > { %1601 = vadd.xlane.f32.xlu0 %v1600_v24 }
 0x4b5   : > { %v1587_v59 = vpop.xlane.xlu1 %1586 }
 0x4b6   : > { %2462 = vrcp.f32 %v1587_v59 }
 0x4b8   : > { %v3436_v29 = vpop.eup %2458 }
 0x4b9   : > { %v3438_v31 = vpop.eup %2460 }
 0x4ba   : > { %v1603_v60 = vadd.f32 %v3438_v31, %v3436_v29  ;;  %v1183_v54 = vpop.f32.mrf.mxu1 }
 0x4bb   : > { %v1584_v50 = vpop.xlane.xlu0 %1583 }
 0x4bc   : > { %2464 = vrcp.f32 %v1584_v50  ;;  %1604 = vadd.xlane.f32.xlu1 %v1603_v60  ;;  %v2463_v43 = vpop.eup %2462 }
 0x4bd   : > { %v1467_v37 = vpop.xlane.xlu1 %1466  ;;  %v1642_v16 = vmul.f32 %v2463_v43, %v3336_v0 }
 0x4be   : > { %v1498_v51 = vsub.f32 %v3352_v23, %v1467_v37  ;;  %v1499_v36 = vsub.f32 %v3354_v46, %v1467_v37  ;;  %v1643_v23 = vmul.f32 %v2463_v43, %v3338_v40 }
 0x4c0   : > { %v1560_v47 = vmul.f32 1.442695, %v1498_v51  ;;  %v1562_v48 = vmul.f32 1.442695, %v1499_v36  ;;  %v1232_v11 = vpop.f32.mrf.mxu2 }
 0x4c1   : > { %v3444_v61 = vadd.f32 %v1232_v11, %v1183_v54 }
 0x4c2   : > { %v2465_v30 = vpop.eup %2464  ;;  %2466 = vpow2.f32 %v1560_v47  ;;  %v1185_v3 = vpop.f32.mrf.mxu1 }
 0x4c3   : > { %2468 = vpow2.f32 %v1562_v48  ;;  %v1464_v15 = vpop.xlane.xlu0 %1463  ;;  %v1640_v1 = vmul.f32 %v2465_v30, %v3346_v6  ;;  %v1641_v34 = vmul.f32 %v2465_v30, %v3350_v62  ;;  %v1818_v30 = vld [vmem:[%s3604_s8] sm:$0xff] }
 0x4c4   : > { %v1496_v46 = vsub.f32 %v3330_v33, %v1464_v15  ;;  %v1497_v18 = vsub.f32 %v3334_v49, %v1464_v15 }
 0x4c5   : > { %v1666_v55 = vpack.c.bf16 %v1642_v16, %v1640_v1  ;;  %v1667_v28 = vpack.c.bf16 %v1643_v23, %v1641_v34  ;;  %v1593_v24 = vpop.xlane.xlu1 %1592  ;;  %v1844_v16 = vld [vmem:[%s3646_s25] sm:$0xff]  ;;  %s3651_s25 = sld [smem:[#allocation22_spill]] }
 0x4c6   : > { %v1556_v26 = vmul.f32 1.442695, %v1496_v46  ;;  %v1558_v38 = vmul.f32 1.442695, %v1497_v18  ;;  %v1955_v34 = vld [vmem:[%s3648_s12] sm:$0xff]  ;;  %v1200_v18 = vadd.f32 %v3294_v41, %v3284_v21  ;;  %s524_s12 = sand.u32 1, %s2613_s19  }
 0x4c7   : > { %1705 = vmatmul.bf16.gmra.mxu1 %v1666_v55  ;;  %1754 = vmatmul.bf16.gmra.mxu2 %v1667_v28  ;;  %s2094_s13 = sshll.u32 %s524_s12, 3  ;;  %s1983_s29 = scalar_lea.sflag [#allocation4], %s524_s12 }
 0x4c8   : > { %v3452_v0 = vpop.eup %2466  ;;  %2470 = vpow2.f32 %v1556_v26  ;;  %v1234_v6 = vpop.f32.mrf.mxu2  ;;  %s526_s0 = scalar_lea.vmem [#allocation5], %s2094_s13 }
 0x4c9   : > { %v3454_v59 = vpop.eup %2468  ;;  %2472 = vpow2.f32 %v1558_v38  ;;  %v3456_v40 = vadd.f32 %v1234_v6, %v1185_v3  ;;  %s1997_s1 = sshll.u32 %s526_s0, 4  ;;  %s1998_s1 = int_to_ptr.vmem [resolvable:$true] %s1997_s1 }
 0x4ca   : > { %2474 = vrcp.f32 %v1593_v24  ;;  %v1609_v33 = vadd.f32 %v3454_v59, %v3452_v0 }
 0x4cb   : > { %v1590_v49 = vpop.xlane.xlu0 %1589 }
 0x4cc   : > { %2476 = vrcp.f32 %v1590_v49  ;;  %1610 = vadd.xlane.f32.xlu1 %v1609_v33 }
 0x4ce   : > { %v3460_v62 = vpop.eup %2470 }
 0x4cf   : > { %v3462_v60 = vpop.eup %2472 }
 0x4d0   : > { %v2475_v50 = vpop.eup %2474  ;;  %v1606_v37 = vadd.f32 %v3462_v60, %v3460_v62 }
 0x4d1   : > { %v1646_v36 = vmul.f32 %v2475_v50, %v3368_v35  ;;  %v1647_v47 = vmul.f32 %v2475_v50, %v3372_v12  ;;  %v1691_v35 = vpop.f32.mrf.mxu1  ;;  %v1888_v12 = vld [vmem:[%s3647_s15] sm:$0xff] }
 0x4d2   : > { %v2477_v54 = vpop.eup %2476  ;;  %1607 = vadd.xlane.f32.xlu0 %v1606_v37 }
 0x4d3   : > { %v1644_v51 = vmul.f32 %v2477_v54, %v3378_v56  ;;  %v1645_v43 = vmul.f32 %v2477_v54, %v3382_v53  ;;  %v1740_v56 = vpop.f32.mrf.mxu2 }
 0x4d4   : > { %v1741_v53 = vadd.f32 %v1740_v56, %v1691_v35 }
 0x4d5   : > { %v1668_v48 = vpack.c.bf16 %v1646_v36, %v1644_v51  ;;  %v1669_v11 = vpack.c.bf16 %v1647_v47, %v1645_v43  ;;  %v1205_v43 = vadd.f32 %v3322_v2, %v3314_v58 }
 0x4d6   : > { %v2252_v15 = vpack.i.bf16 %v3250_v9, %v1741_v53 }
 0x4d7   : > { %1710 = vmatmul.bf16.gmra.mxu1 %v1668_v48  ;;  %1759 = vmatmul.bf16.gmra.mxu2 %v1669_v11 }
 0x4d9   : > { %v1693_v23 = vpop.f32.mrf.mxu1 }
 0x4db   : > { %v1742_v1 = vpop.f32.mrf.mxu2 }
 0x4dc   : > { %v1743_v46 = vadd.f32 %v1742_v1, %v1693_v23 }
 0x4de   : > { %v2254_v55 = vpack.i.bf16 %v1200_v18, %v1743_v46 }
 0x4e5   : > { %1821 = vperm.xlu1 %2251, %v1818_v30  }
 0x4ed   : > { %1876 = vperm.xlu1 %2251, %v1844_v16  }
 0x4f5   : > { %1891 = vperm.xlu1 %2251, %v1888_v12  }
 0x4fb   : > { %2253 = vxpose.xlu0.b32.start [1/16] (narrow) %v2252_v15, 8 }
 0x4fd   : > { %1958 = vperm.xlu1 %2251, %v1955_v34   ;;  %v1210_v34 = vadd.f32 %v3358_v42, %v3344_v52 }
 0x503   : > { %2255 = vxpose.xlu0.b32.cont [2/16] (narrow) %v2254_v55, 8 }
 0x50f   : > { %v1596_v28 = vpop.xlane.xlu0 %1595 }
 0x510   : > { %2478 = vrcp.f32 %v1596_v28 }
 0x516   : > { %v1696_v38 = vpop.f32.mrf.mxu1  ;;  %v2479_v9 = vpop.eup %2478 }
 0x517   : > { %v1599_v26 = vpop.xlane.xlu1 %1598  ;;  %v1648_v33 = vmul.f32 %v2479_v9, %v3404_v39  ;;  %v1649_v37 = vmul.f32 %v2479_v9, %v3406_v13 }
 0x518   : > { %2480 = vrcp.f32 %v1599_v26 }
 0x51c   : > { %v1745_v24 = vpop.f32.mrf.mxu2 }
 0x51d   : > { %v1746_v3 = vadd.f32 %v1745_v24, %v1696_v38 }
 0x51e   : > { %v2481_v6 = vpop.eup %2480  ;;  %v1698_v51 = vpop.f32.mrf.mxu1 }
 0x51f   : > { %v2256_v49 = vpack.i.bf16 %v3310_v4, %v1746_v3  ;;  %v1650_v50 = vmul.f32 %v2481_v6, %v3412_v32  ;;  %v1651_v21 = vmul.f32 %v2481_v6, %v3414_v7 }
 0x521   : > { %2257 = vxpose.xlu0.b32.cont [3/16] (narrow) %v2256_v49, 8  ;;  %v1670_v41 = vpack.c.bf16 %v1650_v50, %v1648_v33  ;;  %v1671_v54 = vpack.c.bf16 %v1651_v21, %v1649_v37  ;;  %v1215_v33 = vadd.f32 %v3386_v5, %v3380_v63  ;;  %v1220_v21 = vadd.f32 %v3392_v10, %v3390_v44 }
 0x523   : > { %1715 = vmatmul.bf16.gmra.mxu1 %v1670_v41  ;;  %1764 = vmatmul.bf16.gmra.mxu2 %v1671_v54 }
 0x524   : > { %v1747_v36 = vpop.f32.mrf.mxu2 }
 0x525   : > { %v1748_v47 = vadd.f32 %v1747_v36, %v1698_v51 }
 0x527   : > { %v2258_v39 = vpack.i.bf16 %v1205_v43, %v1748_v47  ;;  %v1602_v4 = vpop.xlane.xlu0 %1601 }
 0x528   : > { %2482 = vrcp.f32 %v1602_v4 }
 0x529   : > { %2259 = vxpose.xlu0.b32.cont [4/16] (narrow) %v2258_v39, 8 }
 0x52e   : > { %v1701_v13 = vpop.f32.mrf.mxu1  ;;  %v2483_v48 = vpop.eup %2482 }
 0x52f   : > { %v1605_v32 = vpop.xlane.xlu1 %1604  ;;  %v1652_v16 = vmul.f32 %v2483_v48, %v3428_v25  ;;  %v1653_v58 = vmul.f32 %v2483_v48, %v3430_v20 }
 0x530   : > { %2484 = vrcp.f32 %v1605_v32 }
 0x534   : > { %v1750_v7 = vpop.f32.mrf.mxu2 }
 0x535   : > { %v1751_v11 = vadd.f32 %v1750_v7, %v1701_v13 }
 0x536   : > { %v2485_v30 = vpop.eup %2484  ;;  %v1703_v15 = vpop.f32.mrf.mxu1 }
 0x537   : > { %v2260_v56 = vpack.i.bf16 %v3340_v19, %v1751_v11  ;;  %v1654_v35 = vmul.f32 %v2485_v30, %v3436_v29  ;;  %v1655_v2 = vmul.f32 %v2485_v30, %v3438_v31 }
 0x539   : > { %2261 = vxpose.xlu0.b32.cont [5/16] (narrow) %v2260_v56, 8  ;;  %v1672_v12 = vpack.c.bf16 %v1654_v35, %v1652_v16  ;;  %v1673_v53 = vpack.c.bf16 %v1655_v2, %v1653_v58 }
 0x53b   : > { %1720 = vmatmul.bf16.gmra.mxu1 %v1672_v12  ;;  %1769 = vmatmul.bf16.gmra.mxu2 %v1673_v53 }
 0x53c   : > { %v1752_v1 = vpop.f32.mrf.mxu2 }
 0x53d   : > { %v1753_v23 = vadd.f32 %v1752_v1, %v1703_v15 }
 0x53f   : > { %v2262_v25 = vpack.i.bf16 %v1210_v34, %v1753_v23  ;;  %v1611_v46 = vpop.xlane.xlu1 %1610 }
 0x540   : > { %2486 = vrcp.f32 %v1611_v46 }
 0x541   : > { %2263 = vxpose.xlu0.b32.cont [6/16] (narrow) %v2262_v25, 8 }
 0x544   : > { %v1706_v19 = vpop.f32.mrf.mxu1 }
 0x545   : > { %v1608_v29 = vpop.xlane.xlu0 %1607 }
 0x546   : > { %2488 = vrcp.f32 %v1608_v29  ;;  %v2487_v20 = vpop.eup %2486 }
 0x547   : > { %v1658_v28 = vmul.f32 %v2487_v20, %v3452_v0  ;;  %v1659_v42 = vmul.f32 %v2487_v20, %v3454_v59 }
 0x54a   : > { %v1755_v31 = vpop.f32.mrf.mxu2 }
 0x54b   : > { %v1756_v18 = vadd.f32 %v1755_v31, %v1706_v19  ;;  %v2496_v19 = vld [vmem:[%s2855_s10] sm:$0xff] }
 0x54c   : > { %v2489_v55 = vpop.eup %2488  ;;  %v1708_v9 = vpop.f32.mrf.mxu1 }
 0x54d   : > { %v2264_v26 = vpack.i.bf16 %v3374_v45, %v1756_v18  ;;  %v1656_v38 = vmul.f32 %v2489_v55, %v3460_v62  ;;  %v1657_v52 = vmul.f32 %v2489_v55, %v3462_v60 }
 0x54f   : > { %2265 = vxpose.xlu0.b32.cont [7/16] (narrow) %v2264_v26, 8  ;;  %v1674_v24 = vpack.c.bf16 %v1658_v28, %v1656_v38  ;;  %v1675_v3 = vpack.c.bf16 %v1659_v42, %v1657_v52 }
 0x551   : > { %1725 = vmatmul.bf16.gmra.mxu1 %v1674_v24  ;;  %1774 = vmatmul.bf16.gmra.mxu2 %v1675_v3 }
 0x552   : > { %v1757_v6 = vpop.f32.mrf.mxu2 }
 0x553   : > { %v1758_v49 = vadd.f32 %v1757_v6, %v1708_v9 }
 0x554   : > { %v1711_v45 = vpop.f32.mrf.mxu1 }
 0x555   : > { %v2266_v0 = vpack.i.bf16 %v1215_v33, %v1758_v49 }
 0x557   : > { %2267 = vxpose.xlu0.b32.cont [8/16] (narrow) %v2266_v0, 8  ;;  %v1822_v23 = vpop.permute.xlu1 %1821 }
 0x55a   : > { %v1760_v50 = vpop.f32.mrf.mxu2 }
 0x55b   : > { %v1761_v62 = vadd.f32 %v1760_v50, %v1711_v45 }
 0x55c   : > { %v1713_v59 = vpop.f32.mrf.mxu1 }
 0x55d   : > { %v2268_v60 = vpack.i.bf16 %v3388_v17, %v1761_v62 }
 0x55f   : > { %2269 = vxpose.xlu0.b32.cont [9/16] (narrow) %v2268_v60, 8 }
 0x562   : > { %v1762_v37 = vpop.f32.mrf.mxu2 }
 0x563   : > { %v1763_v41 = vadd.f32 %v1762_v37, %v1713_v59 }
 0x565   : > { %v2270_v54 = vpack.i.bf16 %v1220_v21, %v1763_v41 }
 0x567   : > { %2271 = vxpose.xlu0.b32.cont [10/16] (narrow) %v2270_v54, 8 }
 0x5a0   : > { %v1716_v51 = vpop.f32.mrf.mxu1 }
 0x5a6   : > { %v1765_v36 = vpop.f32.mrf.mxu2 }
 0x5a7   : > { %v1766_v63 = vadd.f32 %v1765_v36, %v1716_v51  ;;  %v1877_v36 = vpop.permute.xlu1 %1876 }
 0x5a8   : > { %v1718_v43 = vpop.f32.mrf.mxu1 }
 0x5a9   : > { %v2272_v5 = vpack.i.bf16 %v3396_v57, %v1766_v63 }
 0x5ab   : > { %2273 = vxpose.xlu0.b32.cont [11/16] (narrow) %v2272_v5, 8 }
 0x5ae   : > { %v1767_v47 = vpop.f32.mrf.mxu2 }
 0x5af   : > { %v1768_v39 = vadd.f32 %v1767_v47, %v1718_v43 }
 0x5b1   : > { %v2274_v17 = vpack.i.bf16 %v3410_v8, %v1768_v39  ;;  %v1886_v39 = vld [vmem:[%s3651_s25] sm:$0xf] }
 0x5b3   : > { %2275 = vxpose.xlu0.b32.cont [12/16] (narrow) %v2274_v17, 8  ;;  %v1892_v17 = vpop.permute.xlu1 %1891 }
 0x5b8   : > { %v1721_v4 = vpop.f32.mrf.mxu1 }
 0x5be   : > { %v1770_v32 = vpop.f32.mrf.mxu2 }
 0x5bf   : > { %v1771_v13 = vadd.f32 %v1770_v32, %v1721_v4 }
 0x5c0   : > { %v1723_v10 = vpop.f32.mrf.mxu1 }
 0x5c1   : > { %v2276_v44 = vpack.i.bf16 %v3420_v22, %v1771_v13  ;;  %v1845_v22 = vld [vmem:[%s3649_s14] sm:$0xff]  ;;  %s2141_s14 = sshll.u32 %s1993_s9, 3 }
 0x5c2   : > { %1882 = vperm.xlu2 %2289, %v1845_v22  }
 0x5c3   : > { %2277 = vxpose.xlu0.b32.cont [13/16] (narrow) %v2276_v44, 8 }
 0x5c6   : > { %v1772_v48 = vpop.f32.mrf.mxu2 }
 0x5c7   : > { %v1773_v7 = vadd.f32 %v1772_v48, %v1723_v10 }
 0x5c9   : > { %v2278_v11 = vpack.i.bf16 %v3434_v14, %v1773_v7 }
 0x5cb   : > { %2279 = vxpose.xlu0.b32.cont [14/16] (narrow) %v2278_v11, 8 }
 0x5ce   : > { %v1726_v57 = vpop.f32.mrf.mxu1 }
 0x5d4   : > { %v1775_v30 = vpop.f32.mrf.mxu2 }
 0x5d5   : > { %v1776_v16 = vadd.f32 %v1775_v30, %v1726_v57 }
 0x5d6   : > { %v1728_v8 = vpop.f32.mrf.mxu1 }
 0x5d7   : > { %v2280_v56 = vpack.i.bf16 %v3444_v61, %v1776_v16 }
 0x5d9   : > { %2281 = vxpose.xlu0.b32.cont [15/16] (narrow) %v2280_v56, 8 }
 0x5dc   : > { %v1777_v35 = vpop.f32.mrf.mxu2 }
 0x5dd   : > { %v1778_v58 = vadd.f32 %v1777_v35, %v1728_v8 }
 0x5df   : > { %v2282_v2 = vpack.i.bf16 %v3456_v40, %v1778_v58  ;;  %v1816_v40 = vld [vmem:[%s3650_s23] sm:$0xf]  ;;  %s3654_s23 = sld [smem:[#allocation26_spill]] }
 0x5e1   : > { %2283 = vxpose.xlu0.b32.end [16/16] (narrow) %v2282_v2, 8 }
 0x5e5   : > { %s3655_s10 = smov %s3654_s23  ;;  %s1995_s27 = scalar_lea.hbm %s3654_s23, %s2141_s14 }
 0x5e6   : > { %s1999_s2 = sshll.u32 %s1995_s27, 4  ;;  %s2547_s30 = scalar_lea.hbm %s3655_s10, 32  ;;  %s2000_s2 = int_to_ptr.hbm [resolvable:$true] %s1999_s2 }
 0x5e7   : > { %s2541_s24 = sshra.s32 %s2000_s2, 4  ;;  %s2542_s24 = int_to_ptr.hbm [resolvable:$true] %s2541_s24 }
 0x5e8   : > { %s2543_s21 = scalar_lea.hbm %s2542_s24, 8  ;;  %p2548_p10 = scmp.lt.s32.totalorder %s2542_s24, %s3655_s10 }
 0x5e9   : > { %p2544_p3 = scmp.ne.s32.totalorder %s2542_s24, %s2543_s21  ;;  %p2549_p11 = scmp.lt.s32.totalorder %s2547_s30, %s2543_s21 }
 0x5eb   : > { %p2545_p7 = pnand %p2544_p3, %p2815_p12  ;;  %p2550_p13 = por %p2549_p11, %p2548_p10 }
 0x5ed   : > { %p2546_p9 = pneg %p2545_p7 }
 0x5ef   : > { %p2551_p0 = pnand %p2550_p13, %p2546_p9 }
 0x60d   : > { %v2284_v14 = vpop.trf.xlu0 }
 0x60e   : > { %v2285_v12 = vunpack.i.l.bf16 %v2284_v14  ;;  %v2288_v53 = vunpack.i.h.bf16 %v2284_v14 }
 0x610   : > { %v1813_v15 = vrot.slane %v2285_v12, 4 }
 0x612   : > { %v1815_v1 = vsel %vm657_vm10, %v2288_v53, %v1813_v15 }
 0x613   : > { %v1817_v61 = vpack.c.bf16 %v1815_v1, %v1815_v1 }
 0x615   : > { %v1828_v34 = vsel %vm657_vm10, %v1817_v61, 0 }
 0x616   : > { %1837 = vmatpush.bf16.msra.mxu3 %v1828_v34 }
 0x619   : > { %2136 = vmatmul.msk.bf16.vlgmr.msra.gmra.mxu3 %vm653_vm11, %v1816_v40 }
 0x61c   : > { %v1883_v63 = vpop.permute.xlu2 %1882 }
 0x69c   : > { %v1839_v25 = vpop.f32.mrf.mxu3 }
 0x69d   : > { %v1840_v46 = vadd.f32 %v1839_v25, %v1822_v23 }
 0x69f   : > { %v3525_v29 = vadd.f32 %v2496_v19, %v1840_v46 }
 0x6a1   : > { %v1846_v20 = vrot.slane %v3525_v29, 4 }
 0x6a3   : > { %v1847_v31 = vadd.f32 %v1846_v20, %v3525_v29 }
 0x6a4   : > { %v1841_v18 = vpop.f32.mrf.mxu3 }
 0x6a5   : > { %v1848_v55 = vrot.slane %v1847_v31, 2 }
 0x6a7   : > { %v1849_v28 = vadd.f32 %v1848_v55, %v1847_v31 }
 0x6a9   : > { %v1850_v26 = vrot.slane %v1849_v28, 1 }
 0x6ab   : > { %v1851_v38 = vadd.f32 %v1850_v26, %v1849_v28 }
 0x6ad   : > { %v1852_v52 = vmul.f32 %v1851_v38, %v2858_v27 }
 0x6af   : > { %v1853_v42 = vsub.f32 %v3525_v29, %v1852_v52 }
 0x6b1   : > { %v1854_v9 = vmul.f32 %v1853_v42, %v1853_v42 }
 0x6b3   : > { %v1855_v24 = vrot.slane %v1854_v9, 4 }
 0x6b5   : > { %v1856_v3 = vadd.f32 %v1855_v24, %v1854_v9  ;;  %v1953_v24 = vld [vmem:[%s3653_s11] sm:$0xf] }
 0x6b7   : > { %v1857_v6 = vrot.slane %v1856_v3, 2 }
 0x6b9   : > { %v1858_v33 = vadd.f32 %v1857_v6, %v1856_v3  ;;  %v1959_v3 = vpop.permute.xlu1 %1958 }
 0x6bb   : > { %v1859_v49 = vrot.slane %v1858_v33, 1 }
 0x6bd   : > { %v1860_v0 = vadd.f32 %v1859_v49, %v1858_v33 }
 0x6bf   : > { %v1861_v45 = vmul.f32 %v1860_v0, %v2858_v27 }
 0x6c1   : > { %v1862_v50 = vadd.f32 1e-05, %v1861_v45 }
 0x6c3   : > { %2490 = vrsqrt.f32 %v1862_v50  ;;  %vm1869_vm15 = vweird.f32 %v1862_v50 }
 0x6c9   : > { %v2491_v62 = vpop.eup %2490 }
 0x6ca   : > { %v1864_v60 = vmul.f32 %v2491_v62, %v1862_v50  ;;  %vm1870_vm14 = vweird.f32 %v2491_v62 }
 0x6cb   : > { %vm1871_vm0 = vmor %vm1869_vm15, %vm1870_vm14 }
 0x6cc   : > { %v1865_v59 = vmul.f32 %v2491_v62, %v1864_v60 }
 0x6ce   : > { %v1866_v37 = vmul.f32 0.5, %v1865_v59 }
 0x6d0   : > { %v1867_v21 = vsub.f32 1.5, %v1866_v37 }
 0x6d2   : > { %v1868_v41 = vmul.f32 %v2491_v62, %v1867_v21 }
 0x6d4   : > { %v1872_v54 = vsel %vm1871_vm0, %v2491_v62, %v1868_v41 }
 0x6d5   : > { %v1873_v51 = vmul.f32 %v1872_v54, %v1853_v42 }
 0x6d7   : > { %v1879_v5 = vmul.f32 %v1877_v36, %v1873_v51 }
 0x6d9   : > { %v1885_v43 = vadd.f32 %v1883_v63, %v1879_v5 }
 0x6db   : > { %v1887_v47 = vpack.c.bf16 %v1885_v43, %v1885_v43 }
 0x6dd   : > { %v1898_v27 = vsel %vm657_vm10, %v1887_v47, 0 }
 0x6de   : > { %1907 = vmatpush.bf16.msrb.mxu0 %v1898_v27 }
 0x6e1   : > { %2137 = vmatmul.msk.bf16.vlgmr.msrb.gmra.mxu0 %vm653_vm11, %v1886_v39 }
 0x75e   : > { %v1909_v4 = vpop.f32.mrf.mxu0 }
 0x75f   : > { %v1910_v32 = vadd.f32 %v1909_v4, %v1892_v17 }
 0x761   : > { %v1914_v13 = vmul.f32 0.70710677, %v1910_v32  ;;  %v1913_v26 = vmul.f32 0.5, %v1910_v32 }
 0x763   : > { %v1915_v44 = vand.u32 2147483647, %v1914_v13  ;;  %vm1948_vm5 = vcmp.ge.f32.partialorder %v1914_v13, 0.0 }
 0x765   : > { %v1916_v10 = vmul.f32 0.3275911, %v1915_v44  ;;  %v1942_v14 = vmul.f32 %v1915_v44, %v1915_v44 }
 0x766   : > { %v1911_v48 = vpop.f32.mrf.mxu0 }
 0x767   : > { %v1917_v7 = vadd.f32 1.0, %v1916_v10  ;;  %v1943_v15 = vsub.f32 0.0, %v1942_v14 }
 0x769   : > { %2492 = vrcp.f32 %v1917_v7  ;;  %v1929_v16 = vand.u32 2147483648, %v1917_v7  ;;  %v1927_v8 = vand.u32 2147483647, %v1917_v7  ;;  %vm1923_vm2 = vweird.f32 %v1917_v7 }
 0x76a   : > { %v1944_v34 = vmul.f32 1.442695, %v1943_v15 }
 0x76b   : > { %v1930_v58 = vor.u32 1.1754944e-38, %v1929_v16  ;;  %vm1928_vm4 = vcmp.eq.f32.partialorder %v1927_v8, 8.507059e+37 }
 0x76c   : > { %2494 = vpow2.f32 %v1944_v34 }
 0x76f   : > { %v2493_v11 = vpop.eup %2492 }
 0x770   : > { %v1919_v57 = vmul.f32 %v2493_v11, %v1917_v7  ;;  %vm1924_vm1 = vweird.f32 %v2493_v11 }
 0x771   : > { %vm1925_vm3 = vmor %vm1923_vm2, %vm1924_vm1 }
 0x772   : > { %v1920_v30 = vsub.f32 1.0, %v1919_v57  ;;  %v2495_v20 = vpop.eup %2494 }
 0x774   : > { %v1921_v56 = vmul.f32 %v2493_v11, %v1920_v30 }
 0x776   : > { %v1922_v35 = vadd.f32 %v2493_v11, %v1921_v56 }
 0x778   : > { %v1926_v2 = vsel %vm1925_vm3, %v2493_v11, %v1922_v35 }
 0x779   : > { %v1931_v22 = vsel %vm1928_vm4, %v1930_v58, %v1926_v2 }
 0x77a   : > { %v1933_v12 = vmul.f32 1.0614054, %v1931_v22 }
 0x77c   : > { %v1934_v53 = vadd.f32 -1.4531521, %v1933_v12 }
 0x77e   : > { %v1935_v1 = vmul.f32 %v1934_v53, %v1931_v22 }
 0x780   : > { %v1936_v61 = vadd.f32 1.4214138, %v1935_v1 }
 0x782   : > { %v1937_v40 = vmul.f32 %v1936_v61, %v1931_v22 }
 0x784   : > { %v1938_v23 = vadd.f32 -0.28449672, %v1937_v40 }
 0x786   : > { %v1939_v25 = vmul.f32 %v1938_v23, %v1931_v22 }
 0x788   : > { %v1940_v46 = vadd.f32 0.2548296, %v1939_v25 }
 0x78a   : > { %v1941_v19 = vmul.f32 %v1940_v46, %v1931_v22 }
 0x78c   : > { %v1946_v31 = vmul.f32 %v2495_v20, %v1941_v19 }
 0x78e   : > { %v1947_v18 = vsub.f32 1.0, %v1946_v31 }
 0x790   : > { %v1949_v55 = vsub.f32 0.0, %v1947_v18 }
 0x792   : > { %v1950_v28 = vsel %vm1948_vm5, %v1947_v18, %v1949_v55 }
 0x793   : > { %v1951_v38 = vadd.f32 1.0, %v1950_v28 }
 0x795   : > { %v1952_v52 = vmul.f32 %v1951_v38, %v1913_v26 }
 0x797   : > { %v1954_v42 = vpack.c.bf16 %v1952_v52, %v1952_v52 }
 0x799   : > { %v1965_v9 = vsel %vm657_vm10, %v1954_v42, 0 }
 0x79a   : > { %1974 = vmatpush.bf16.msrb.mxu1 %v1965_v9 }
 0x79d   : > { %2138 = vmatmul.msk.bf16.vlgmr.msrb.gmra.mxu1 %vm653_vm11, %v1953_v24 }
 0x81a   : > { %v1976_v6 = vpop.f32.mrf.mxu1 }
 0x81b   : > { %v1977_v33 = vadd.f32 %v1976_v6, %v1959_v3 }
 0x81d   : > { %v1980_v49 = vadd.f32 %v1977_v33, %v3525_v29 }
 0x81f   : > { %1981 = vst [vmem:[%s526_s0] sm:$0xff] %v1980_v49 }
 0x820   : > { %2554 = shalt.err (!%p2551_p0)
}
 0x821   : > { %2148 = dma.vmem_to_hbm [thread:$0]  (%p2815_p12), %s1998_s1, 128, %s2000_s2, %s1983_s29  }
 0x822   : > { %v1978_v29 = vpop.f32.mrf.mxu1 }
 0x823 PF: > { %p2159_p1 = scmp.ge.s32.totalorder %s2649_s28, 2  ;;  %s2011_s0 = sand.u32 1, %s2609_s18  }
 0x824   : > { %s2012_s12 = scalar_lea.sflag [#allocation4], %s2011_s0 }
 0x825   : > { %p2155_p4 = pnand %p2159_p1, %p2828_p2 }
 0x827   : > { %p2156_p5 = pneg %p2155_p4 }
 0x829   : > { %2604 = dma.done.wait (%p2156_p5), %s2012_s12, 128  }
 0x82a   : > { %2606 = vsyncadd (%p2156_p5), %s2012_s12, 4294967168  ;;  %s31_s28 = sadd.s32 1, %s2649_s28   ;;  %s3657_s1 = sld [smem:[#allocation8_spill]] }
 0x82b   : > { %p28_p6 = scmp.ge.s32.totalorder %s31_s28, 6   ;;  %s3658_s23 = sld [smem:[#allocation15_spill]] }
 0x82c   : > { %s3659_s24 = sld [smem:[#allocation10_spill]]  ;;  %s3663_s18 = smov %s2613_s19 }
 0x82d   : > { %s3660_s25 = sld [smem:[#allocation11_spill]]  ;;  %s3664_s19 = smov %s2617_s20 }
 0x82e   : > { %s3661_s2 = sld [smem:[#allocation12_spill]]  ;;  %s3665_s20 = smov %s2823_s26 }
 0x82f   : > { %s3662_s27 = sld [smem:[#allocation13_spill]]  ;;  %s3666_s21 = smov %s2625_s22 }
 0x830   : > { %s3667_s22 = smov %s3657_s1  ;;  %30 = sbr.rel (!%p28_p6) target bundleno = 21 (0x15), region = 126 }
 0x834   : > { %s3668_s26 = smov %s3661_s2 }
 0x835   :  { %2018 = vsyncpa [#allocation3], 1 }
 0x836   :  { %2020 = vsyncpa [#allocation3 + $0x1], 1 }
 0x837   :  { %2021 = vsyncpa [#allocation4], 1 }
 0x838   :  { %2023 = vsyncpa [#allocation4 + $0x1], 1 }

</bundles_post_ra>
